<compile_context>
chip_gen: v6e
topology: v6e:2x2x1
jax: 0.10.0
libtpu: 0.0.40
codegen_flags: <defaults>
</compile_context>

<pallas_src>
import functools

import jax
import jax.numpy as jnp
import numpy as np
from jax.experimental import pallas as pl
from jax.experimental.pallas import tpu as pltpu

_EPS_GN = 1e-5
_CP = 128          # lane-dense padded output-channel count (cls + reg <= 128)


def _det_head_kernel(
    x_ref,                     # (1, 3, H+2, W, Cin)  bf16, width-pre-shifted
    w1_ref,                    # (9, Cin, 2*Hc)       bf16 fused 3x3 weights
    b1_ref,                    # (1, 2*Hc)            f32
    gamma_ref, beta_ref,       # (1, 2*Hc)            f32
    mg_ref,                    # (2*Hc, 2*G)          f32 channel->group one-hot
    mgt_ref,                   # (2*G, 2*Hc)          f32 group->channel one-hot
    w2_ref,                    # (2*Hc, 128)          bf16 block-diag 1x1 weights
    b2_ref,                    # (1, 128)             f32
    out_ref,                   # (1, tile_h*W, 128)   f32
    s1_ref, s2_ref,            # (1, 2*Hc)            f32 scratch accumulators
    *, tile_h, w_out, hw_total, groups2, cls,
    dim_s, dim_e, ori_s, ori_e):
  p = pl.program_id(1)          # 0: statistics pass, 1: normalize/emit pass
  t = pl.program_id(2)          # spatial (row-band) tile index

  cin = x_ref.shape[-1]
  hc2 = w1_ref.shape[-1]
  cg = hc2 // groups2
  m = tile_h * w_out
  hp = jax.lax.Precision.HIGHEST

  # ---- fused 3x3 conv: 9 accumulating bf16 MXU matmuls, f32 accumulator ----
  h0 = pl.multiple_of(t * tile_h, tile_h)
  y = jnp.zeros((m, hc2), jnp.float32)
  for dx in range(3):
    band = x_ref[0, dx, pl.ds(h0, tile_h + 2), :, :]      # (tile_h+2, W, Cin)
    for dy in range(3):
      xs = band[dy:dy + tile_h].reshape(m, cin)           # leading-dim slice
      y = y + jnp.dot(xs, w1_ref[dy * 3 + dx],
                      preferred_element_type=jnp.float32)
  y = y + b1_ref[...]

  # ---- phase 0: accumulate GroupNorm sums over the full image (f32) ----
  @pl.when(jnp.logical_and(p == 0, t == 0))
  def _():
    s1_ref[...] = jnp.zeros_like(s1_ref)
    s2_ref[...] = jnp.zeros_like(s2_ref)

  @pl.when(p == 0)
  def _():
    ones = jnp.ones((1, m), jnp.float32)
    s1_ref[...] += jnp.dot(ones, y, preferred_element_type=jnp.float32,
                           precision=hp)
    s2_ref[...] += jnp.dot(ones, y * y, preferred_element_type=jnp.float32,
                           precision=hp)

  # ---- phase 1: GroupNorm + ReLU + fused 1x1 conv + post-process + store ----
  @pl.when(p == 1)
  def _():
    cnt = jnp.float32(hw_total * cg)
    g_mean = jnp.dot(s1_ref[...], mg_ref[...],
                     preferred_element_type=jnp.float32, precision=hp) / cnt
    g_msq = jnp.dot(s2_ref[...], mg_ref[...],
                    preferred_element_type=jnp.float32, precision=hp) / cnt
    g_var = g_msq - g_mean * g_mean
    mean_c = jnp.dot(g_mean, mgt_ref[...],
                     preferred_element_type=jnp.float32, precision=hp)
    var_c = jnp.dot(g_var, mgt_ref[...],
                    preferred_element_type=jnp.float32, precision=hp)
    scale = gamma_ref[...] * jax.lax.rsqrt(var_c + _EPS_GN)
    shift = beta_ref[...] - mean_c * scale
    yn = jnp.maximum(y * scale + shift, 0.0)                   # GN + ReLU

    z = jnp.dot(yn.astype(jnp.bfloat16), w2_ref[...],
                preferred_element_type=jnp.float32) + b2_ref[...]

    cp = z.shape[-1]
    col = jax.lax.broadcasted_iota(jnp.int32, (1, cp), 1)
    zs = jax.nn.sigmoid(z)
    out = z
    # sigmoid_hm on the class channels: sigmoid + clamp(1e-4, 1 - 1e-4)
    out = jnp.where(col < cls, jnp.clip(zs, 1e-4, 1.0 - 1e-4), out)
    # dim channels: sigmoid - 0.5
    dim_mask = jnp.logical_and(col >= cls + dim_s, col < cls + dim_e)
    out = jnp.where(dim_mask, zs - 0.5, out)
    # ori channels: F.normalize(dim=channel), eps = 1e-12
    ori_mask = jnp.logical_and(col >= cls + ori_s, col < cls + ori_e)
    sq = jnp.where(ori_mask, z * z, 0.0)
    nrm = jnp.sqrt(jnp.sum(sq, axis=-1, keepdims=True))
    out = jnp.where(ori_mask, z / jnp.maximum(nrm, 1e-12), out)

    out_ref[0] = out.astype(out_ref.dtype)


def _pick_tile_h(h, w, max_rows=2048):
  cands = [th for th in range(1, h + 1)
           if h % th == 0 and th * w <= max_rows and (th * w) % 8 == 0]
  return max(cands) if cands else h


@functools.partial(jax.jit, static_argnames=("reg_channels", "groups", "tile_h"))
def smoke_predictor_det_head(x_nchw, params, *, reg_channels, groups,
                             tile_h=None):
  """Pallas forward of SMOKEPredictor 'det_head' (NCHW in / NCHW out)."""
  N, cin, H, W = x_nchw.shape
  hw = H * W
  hc = params["w1c"].shape[0]
  hc2 = 2 * hc
  cls = params["w2c"].shape[0]
  reg = params["w2r"].shape[0]
  assert cls + reg <= _CP
  assert hc % groups == 0

  if tile_h is None:
    tile_h = _pick_tile_h(H, W)
  assert H % tile_h == 0
  assert tile_h == H or (tile_h * W) % 8 == 0
  T = H // tile_h

  dim_s, dim_e = sum(reg_channels[:2]), sum(reg_channels[:3])
  ori_s, ori_e = sum(reg_channels[:3]), sum(reg_channels)

  # ---- glue: NCHW -> padded NHWC, three width-shifted views, bf16 ----
  x_nhwc = jnp.transpose(x_nchw, (0, 2, 3, 1))
  x_pad = jnp.pad(x_nhwc, ((0, 0), (1, 1), (1, 1), (0, 0)))
  x_sh = jnp.stack([x_pad[:, :, dx:dx + W, :] for dx in range(3)],
                   axis=1).astype(jnp.bfloat16)            # (N, 3, H+2, W, Cin)

  # ---- fused / packed weights ----
  def conv3_w(w):   # (O, I, 3, 3) -> (9, I, O), k = dy*3 + dx
    return jnp.transpose(w, (2, 3, 1, 0)).reshape(9, w.shape[1], w.shape[0])

  row = lambda v: v.reshape(1, -1).astype(jnp.float32)

  w1f = jnp.concatenate([conv3_w(params["w1c"]), conv3_w(params["w1r"])],
                        axis=-1).astype(jnp.bfloat16)       # (9, Cin, 2*Hc)
  b1f = jnp.concatenate([row(params["b1c"]), row(params["b1r"])], axis=-1)
  gammaf = jnp.concatenate([row(params["gc_gamma"]), row(params["gr_gamma"])],
                           axis=-1)
  betaf = jnp.concatenate([row(params["gc_beta"]), row(params["gr_beta"])],
                          axis=-1)

  cg = hc // groups
  mg = (jnp.arange(hc2)[:, None] // cg
        == jnp.arange(2 * groups)[None, :]).astype(jnp.float32)   # (2Hc, 2G)
  mgt = mg.T

  w2f = jnp.zeros((hc2, _CP), jnp.float32)
  w2f = w2f.at[:hc, :cls].set(params["w2c"][:, :, 0, 0].T)
  w2f = w2f.at[hc:, cls:cls + reg].set(params["w2r"][:, :, 0, 0].T)
  w2f = w2f.astype(jnp.bfloat16)
  b2f = jnp.zeros((1, _CP), jnp.float32)
  b2f = b2f.at[0, :cls].set(params["b2c"].astype(jnp.float32))
  b2f = b2f.at[0, cls:cls + reg].set(params["b2r"].astype(jnp.float32))

  kernel = functools.partial(
      _det_head_kernel, tile_h=tile_h, w_out=W, hw_total=hw,
      groups2=2 * groups, cls=cls,
      dim_s=dim_s, dim_e=dim_e, ori_s=ori_s, ori_e=ori_e)

  def fixed_spec(a):
    return pl.BlockSpec(a.shape, lambda n, p, t, _nd=a.ndim: (0,) * _nd)

  consts = (w1f, b1f, gammaf, betaf, mg, mgt, w2f, b2f)
  in_specs = [pl.BlockSpec((1, 3, H + 2, W, cin),
                           lambda n, p, t: (n, 0, 0, 0, 0))]
  in_specs += [fixed_spec(a) for a in consts]
  # The output block stays parked on (n, 0) during phase 0 (never written
  # there) and walks the spatial tiles during phase 1, so every tile gets
  # exactly one lane-dense (128-wide) write-back.
  out_specs = pl.BlockSpec((1, tile_h * W, _CP), lambda n, p, t: (n, t * p, 0))

  out = pl.pallas_call(
      kernel,
      out_shape=jax.ShapeDtypeStruct((N, hw, _CP), jnp.float32),
      grid_spec=pltpu.PrefetchScalarGridSpec(
          num_scalar_prefetch=0,
          grid=(N, 2, T),
          in_specs=in_specs,
          out_specs=out_specs,
          scratch_shapes=[pltpu.VMEM((1, hc2), jnp.float32),
                          pltpu.VMEM((1, hc2), jnp.float32)]),
      compiler_params=pltpu.CompilerParams(
          dimension_semantics=("parallel", "arbitrary", "arbitrary"),
          vmem_limit_bytes=64 * 1024 * 1024),
  )(x_sh, *consts)

  out_cls = jnp.transpose(out[:, :, :cls].reshape(N, H, W, cls), (0, 3, 1, 2))
  out_reg = jnp.transpose(out[:, :, cls:cls + reg].reshape(N, H, W, reg),
                          (0, 3, 1, 2))
  return [out_cls, out_reg]


# --------------------- pure-JAX reference (for checking) ---------------------
def ref_forward(x_nchw, p, reg_channels, groups):
  def conv(x, w, b, pad):
    y = jax.lax.conv_general_dilated(
        x, w, window_strides=(1, 1), padding=((pad, pad), (pad, pad)),
        dimension_numbers=("NCHW", "OIHW", "NCHW"),
        precision=jax.lax.Precision.HIGHEST)
    return y + b[None, :, None, None]

  def group_norm(x, gamma, beta, G, eps=_EPS_GN):
    N, C, H, W = x.shape
    xg = x.reshape(N, G, C // G, H, W)
    m = jnp.mean(xg, axis=(2, 3, 4), keepdims=True)
    v = jnp.mean((xg - m) ** 2, axis=(2, 3, 4), keepdims=True)
    xn = ((xg - m) / jnp.sqrt(v + eps)).reshape(N, C, H, W)
    return xn * gamma[None, :, None, None] + beta[None, :, None, None]

  def head(w1, b1, g, be, w2, b2):
    y = conv(x_nchw, w1, b1, 1)
    y = jnp.maximum(group_norm(y, g, be, groups), 0.0)
    return conv(y, w2, b2, 0)

  h_cls = head(p["w1c"], p["b1c"], p["gc_gamma"], p["gc_beta"],
               p["w2c"], p["b2c"])
  h_cls = jnp.clip(jax.nn.sigmoid(h_cls), 1e-4, 1.0 - 1e-4)
  h_reg = head(p["w1r"], p["b1r"], p["gr_gamma"], p["gr_beta"],
               p["w2r"], p["b2r"])
  ds, de = sum(reg_channels[:2]), sum(reg_channels[:3])
  os_, oe = sum(reg_channels[:3]), sum(reg_channels)
  dim = jax.nn.sigmoid(h_reg[:, ds:de]) - 0.5
  ori = h_reg[:, os_:oe]
  nrm = jnp.sqrt(jnp.sum(ori * ori, axis=1, keepdims=True))
  ori = ori / jnp.maximum(nrm, 1e-12)
  h_reg = jnp.concatenate([h_reg[:, :ds], dim, ori], axis=1)
  return [h_cls, h_reg]


if __name__ == "__main__":
  N, CIN, H, W = 2, 8, 16, 16
  HEAD_CONV, CLASSES = 32, 3               # NUM_CHANNEL, DETECT_CLASSES
  REG_CHANNELS = (1, 2, 3, 2)              # -> dim slice [3:6), ori slice [6:8)
  REGRESSION = sum(REG_CHANNELS)
  GROUPS = 8                               # GroupNorm ('GN') groups

  key = jax.random.PRNGKey(0)
  k = jax.random.split(key, 10)
  scale = 0.1
  ori_s, ori_e = sum(REG_CHANNELS[:3]), sum(REG_CHANNELS)
  # A non-zero ori bias keeps the test away from the zero-vector singularity of
  # F.normalize, where comparing bf16-MXU math against an f32 reference is
  # meaningless (direction of a ~0 vector).
  b2r = jnp.zeros((REGRESSION,), jnp.float32).at[ori_s:ori_e].set(1.5)
  params = {
      "w1c": scale * jax.random.normal(k[0], (HEAD_CONV, CIN, 3, 3), jnp.float32),
      "b1c": scale * jax.random.normal(k[1], (HEAD_CONV,), jnp.float32),
      "gc_gamma": 1.0 + 0.1 * jax.random.normal(k[6], (HEAD_CONV,), jnp.float32),
      "gc_beta": 0.1 * jax.random.normal(k[7], (HEAD_CONV,), jnp.float32),
      "w2c": scale * jax.random.normal(k[2], (CLASSES, HEAD_CONV, 1, 1), jnp.float32),
      "b2c": jnp.full((CLASSES,), -2.19, jnp.float32),   # class_head[-1].bias.fill_(-2.19)
      "w1r": scale * jax.random.normal(k[3], (HEAD_CONV, CIN, 3, 3), jnp.float32),
      "b1r": scale * jax.random.normal(k[8], (HEAD_CONV,), jnp.float32),
      "gr_gamma": 1.0 + 0.1 * jax.random.normal(k[9], (HEAD_CONV,), jnp.float32),
      "gr_beta": jnp.zeros((HEAD_CONV,), jnp.float32),
      "w2r": scale * jax.random.normal(k[4], (REGRESSION, HEAD_CONV, 1, 1), jnp.float32),
      "b2r": b2r,
  }
  x = jax.random.normal(k[5], (N, CIN, H, W), jnp.float32)

  out_cls, out_reg = smoke_predictor_det_head(
      x, params, reg_channels=REG_CHANNELS, groups=GROUPS, tile_h=8)
  jax.block_until_ready((out_cls, out_reg))

  ref_cls, ref_reg = ref_forward(x, params, REG_CHANNELS, GROUPS)
  # Tolerance sized for bf16 MXU operand rounding (~2^-9 relative / operand).
  np.testing.assert_allclose(np.asarray(out_cls), np.asarray(ref_cls),
                             rtol=2e-2, atol=2e-2)
  np.testing.assert_allclose(np.asarray(out_reg), np.asarray(ref_reg),
                             rtol=2e-2, atol=2e-2)
  print("KERNEL_OK")
</pallas_src>

<mosaic_0001>
module attributes {stable_mosaic.version = 11 : i64} {
  func.func @_det_head_kernel(%arg0: i32, %arg1: i32, %arg2: i32, %arg3: memref<1x3x18x16x8xbf16, #tpu.memory_space<vmem>>, %arg4: memref<9x8x64xbf16, #tpu.memory_space<vmem>>, %arg5: memref<1x64xf32, #tpu.memory_space<vmem>>, %arg6: memref<1x64xf32, #tpu.memory_space<vmem>>, %arg7: memref<1x64xf32, #tpu.memory_space<vmem>>, %arg8: memref<64x16xf32, #tpu.memory_space<vmem>>, %arg9: memref<16x64xf32, #tpu.memory_space<vmem>>, %arg10: memref<64x128xbf16, #tpu.memory_space<vmem>>, %arg11: memref<1x128xf32, #tpu.memory_space<vmem>>, %arg12: memref<1x128x128xf32, #tpu.memory_space<vmem>>, %arg13: memref<1x64xf32, #tpu.memory_space<vmem>>, %arg14: memref<1x64xf32, #tpu.memory_space<vmem>>) attributes {dimension_semantics = [#tpu.dimension_semantics<parallel>, #tpu.dimension_semantics<arbitrary>, #tpu.dimension_semantics<arbitrary>], iteration_bounds = array<i64: 2, 2, 2>, scalar_prefetch = 0 : i64, scratch_operands = 2 : i64, tpu.core_type = #tpu.core_type<tc>, window_params = [{transform_indices = @transform_0, window_bounds = array<i64: 1, 3, 18, 16, 8>}, {pipeline_mode = #tpu.pipeline_mode<synchronous>, transform_indices = @transform_1, window_bounds = array<i64: 9, 8, 64>}, {pipeline_mode = #tpu.pipeline_mode<synchronous>, transform_indices = @transform_2, window_bounds = array<i64: 1, 64>}, {pipeline_mode = #tpu.pipeline_mode<synchronous>, transform_indices = @transform_3, window_bounds = array<i64: 1, 64>}, {pipeline_mode = #tpu.pipeline_mode<synchronous>, transform_indices = @transform_4, window_bounds = array<i64: 1, 64>}, {pipeline_mode = #tpu.pipeline_mode<synchronous>, transform_indices = @transform_5, window_bounds = array<i64: 64, 16>}, {pipeline_mode = #tpu.pipeline_mode<synchronous>, transform_indices = @transform_6, window_bounds = array<i64: 16, 64>}, {pipeline_mode = #tpu.pipeline_mode<synchronous>, transform_indices = @transform_7, window_bounds = array<i64: 64, 128>}, {pipeline_mode = #tpu.pipeline_mode<synchronous>, transform_indices = @transform_8, window_bounds = array<i64: 1, 128>}, {transform_indices = @transform_9, window_bounds = array<i64: 1, 128, 128>}]} {
    %c8_i32 = arith.constant 8 : i32
    %0 = arith.muli %arg2, %c8_i32 : i32
    %1 = tpu.assume_multiple %0, 8 : i32
    %cst = arith.constant 0.000000e+00 : f32
    %2 = vector.broadcast %cst : f32 to vector<128x64xf32>
    %c0 = arith.constant 0 : index
    %c0_0 = arith.constant 0 : index
    %3 = arith.index_cast %1 : i32 to index
    %c0_1 = arith.constant 0 : index
    %c0_2 = arith.constant 0 : index
    %4 = vector.load %arg3[%c0, %c0_0, %3, %c0_1, %c0_2] : memref<1x3x18x16x8xbf16, #tpu.memory_space<vmem>>, vector<1x1x10x16x8xbf16>
    %5 = vector.shape_cast %4 : vector<1x1x10x16x8xbf16> to vector<10x16x8xbf16>
    %6 = vector.extract_strided_slice %5 {offsets = [0, 0, 0], sizes = [8, 16, 8], strides = [1, 1, 1]} : vector<10x16x8xbf16> to vector<8x16x8xbf16>
    %7 = vector.shape_cast %6 : vector<8x16x8xbf16> to vector<128x8xbf16>
    %c0_3 = arith.constant 0 : index
    %c0_4 = arith.constant 0 : index
    %c0_5 = arith.constant 0 : index
    %8 = vector.load %arg4[%c0_3, %c0_4, %c0_5] : memref<9x8x64xbf16, #tpu.memory_space<vmem>>, vector<1x8x64xbf16>
    %9 = vector.shape_cast %8 : vector<1x8x64xbf16> to vector<8x64xbf16>
    %cst_6 = arith.constant dense<0.000000e+00> : vector<128x64xf32>
    %10 = tpu.matmul %7, %9, %cst_6 {dimension_numbers = #tpu.dot_dimension_numbers<[1], [0], [0], [1], [0, 0, 1, 1], [], []>} : vector<128x8xbf16>, vector<8x64xbf16>, vector<128x64xf32> -> vector<128x64xf32>
    %11 = arith.addf %2, %10 : vector<128x64xf32>
    %12 = vector.extract_strided_slice %5 {offsets = [1, 0, 0], sizes = [8, 16, 8], strides = [1, 1, 1]} : vector<10x16x8xbf16> to vector<8x16x8xbf16>
    %13 = vector.shape_cast %12 : vector<8x16x8xbf16> to vector<128x8xbf16>
    %c3 = arith.constant 3 : index
    %c0_7 = arith.constant 0 : index
    %c0_8 = arith.constant 0 : index
    %14 = vector.load %arg4[%c3, %c0_7, %c0_8] : memref<9x8x64xbf16, #tpu.memory_space<vmem>>, vector<1x8x64xbf16>
    %15 = vector.shape_cast %14 : vector<1x8x64xbf16> to vector<8x64xbf16>
    %cst_9 = arith.constant dense<0.000000e+00> : vector<128x64xf32>
    %16 = tpu.matmul %13, %15, %cst_9 {dimension_numbers = #tpu.dot_dimension_numbers<[1], [0], [0], [1], [0, 0, 1, 1], [], []>} : vector<128x8xbf16>, vector<8x64xbf16>, vector<128x64xf32> -> vector<128x64xf32>
    %17 = arith.addf %11, %16 : vector<128x64xf32>
    %18 = vector.extract_strided_slice %5 {offsets = [2, 0, 0], sizes = [8, 16, 8], strides = [1, 1, 1]} : vector<10x16x8xbf16> to vector<8x16x8xbf16>
    %19 = vector.shape_cast %18 : vector<8x16x8xbf16> to vector<128x8xbf16>
    %c6 = arith.constant 6 : index
    %c0_10 = arith.constant 0 : index
    %c0_11 = arith.constant 0 : index
    %20 = vector.load %arg4[%c6, %c0_10, %c0_11] : memref<9x8x64xbf16, #tpu.memory_space<vmem>>, vector<1x8x64xbf16>
    %21 = vector.shape_cast %20 : vector<1x8x64xbf16> to vector<8x64xbf16>
    %cst_12 = arith.constant dense<0.000000e+00> : vector<128x64xf32>
    %22 = tpu.matmul %19, %21, %cst_12 {dimension_numbers = #tpu.dot_dimension_numbers<[1], [0], [0], [1], [0, 0, 1, 1], [], []>} : vector<128x8xbf16>, vector<8x64xbf16>, vector<128x64xf32> -> vector<128x64xf32>
    %23 = arith.addf %17, %22 : vector<128x64xf32>
    %c0_13 = arith.constant 0 : index
    %c1 = arith.constant 1 : index
    %24 = arith.index_cast %1 : i32 to index
    %c0_14 = arith.constant 0 : index
    %c0_15 = arith.constant 0 : index
    %25 = vector.load %arg3[%c0_13, %c1, %24, %c0_14, %c0_15] : memref<1x3x18x16x8xbf16, #tpu.memory_space<vmem>>, vector<1x1x10x16x8xbf16>
    %26 = vector.shape_cast %25 : vector<1x1x10x16x8xbf16> to vector<10x16x8xbf16>
    %27 = vector.extract_strided_slice %26 {offsets = [0, 0, 0], sizes = [8, 16, 8], strides = [1, 1, 1]} : vector<10x16x8xbf16> to vector<8x16x8xbf16>
    %28 = vector.shape_cast %27 : vector<8x16x8xbf16> to vector<128x8xbf16>
    %c1_16 = arith.constant 1 : index
    %c0_17 = arith.constant 0 : index
    %c0_18 = arith.constant 0 : index
    %29 = vector.load %arg4[%c1_16, %c0_17, %c0_18] : memref<9x8x64xbf16, #tpu.memory_space<vmem>>, vector<1x8x64xbf16>
    %30 = vector.shape_cast %29 : vector<1x8x64xbf16> to vector<8x64xbf16>
    %cst_19 = arith.constant dense<0.000000e+00> : vector<128x64xf32>
    %31 = tpu.matmul %28, %30, %cst_19 {dimension_numbers = #tpu.dot_dimension_numbers<[1], [0], [0], [1], [0, 0, 1, 1], [], []>} : vector<128x8xbf16>, vector<8x64xbf16>, vector<128x64xf32> -> vector<128x64xf32>
    %32 = arith.addf %23, %31 : vector<128x64xf32>
    %33 = vector.extract_strided_slice %26 {offsets = [1, 0, 0], sizes = [8, 16, 8], strides = [1, 1, 1]} : vector<10x16x8xbf16> to vector<8x16x8xbf16>
    %34 = vector.shape_cast %33 : vector<8x16x8xbf16> to vector<128x8xbf16>
    %c4 = arith.constant 4 : index
    %c0_20 = arith.constant 0 : index
    %c0_21 = arith.constant 0 : index
    %35 = vector.load %arg4[%c4, %c0_20, %c0_21] : memref<9x8x64xbf16, #tpu.memory_space<vmem>>, vector<1x8x64xbf16>
    %36 = vector.shape_cast %35 : vector<1x8x64xbf16> to vector<8x64xbf16>
    %cst_22 = arith.constant dense<0.000000e+00> : vector<128x64xf32>
    %37 = tpu.matmul %34, %36, %cst_22 {dimension_numbers = #tpu.dot_dimension_numbers<[1], [0], [0], [1], [0, 0, 1, 1], [], []>} : vector<128x8xbf16>, vector<8x64xbf16>, vector<128x64xf32> -> vector<128x64xf32>
    %38 = arith.addf %32, %37 : vector<128x64xf32>
    %39 = vector.extract_strided_slice %26 {offsets = [2, 0, 0], sizes = [8, 16, 8], strides = [1, 1, 1]} : vector<10x16x8xbf16> to vector<8x16x8xbf16>
    %40 = vector.shape_cast %39 : vector<8x16x8xbf16> to vector<128x8xbf16>
    %c7 = arith.constant 7 : index
    %c0_23 = arith.constant 0 : index
    %c0_24 = arith.constant 0 : index
    %41 = vector.load %arg4[%c7, %c0_23, %c0_24] : memref<9x8x64xbf16, #tpu.memory_space<vmem>>, vector<1x8x64xbf16>
    %42 = vector.shape_cast %41 : vector<1x8x64xbf16> to vector<8x64xbf16>
    %cst_25 = arith.constant dense<0.000000e+00> : vector<128x64xf32>
    %43 = tpu.matmul %40, %42, %cst_25 {dimension_numbers = #tpu.dot_dimension_numbers<[1], [0], [0], [1], [0, 0, 1, 1], [], []>} : vector<128x8xbf16>, vector<8x64xbf16>, vector<128x64xf32> -> vector<128x64xf32>
    %44 = arith.addf %38, %43 : vector<128x64xf32>
    %c0_26 = arith.constant 0 : index
    %c2 = arith.constant 2 : index
    %45 = arith.index_cast %1 : i32 to index
    %c0_27 = arith.constant 0 : index
    %c0_28 = arith.constant 0 : index
    %46 = vector.load %arg3[%c0_26, %c2, %45, %c0_27, %c0_28] : memref<1x3x18x16x8xbf16, #tpu.memory_space<vmem>>, vector<1x1x10x16x8xbf16>
    %47 = vector.shape_cast %46 : vector<1x1x10x16x8xbf16> to vector<10x16x8xbf16>
    %48 = vector.extract_strided_slice %47 {offsets = [0, 0, 0], sizes = [8, 16, 8], strides = [1, 1, 1]} : vector<10x16x8xbf16> to vector<8x16x8xbf16>
    %49 = vector.shape_cast %48 : vector<8x16x8xbf16> to vector<128x8xbf16>
    %c2_29 = arith.constant 2 : index
    %c0_30 = arith.constant 0 : index
    %c0_31 = arith.constant 0 : index
    %50 = vector.load %arg4[%c2_29, %c0_30, %c0_31] : memref<9x8x64xbf16, #tpu.memory_space<vmem>>, vector<1x8x64xbf16>
    %51 = vector.shape_cast %50 : vector<1x8x64xbf16> to vector<8x64xbf16>
    %cst_32 = arith.constant dense<0.000000e+00> : vector<128x64xf32>
    %52 = tpu.matmul %49, %51, %cst_32 {dimension_numbers = #tpu.dot_dimension_numbers<[1], [0], [0], [1], [0, 0, 1, 1], [], []>} : vector<128x8xbf16>, vector<8x64xbf16>, vector<128x64xf32> -> vector<128x64xf32>
    %53 = arith.addf %44, %52 : vector<128x64xf32>
    %54 = vector.extract_strided_slice %47 {offsets = [1, 0, 0], sizes = [8, 16, 8], strides = [1, 1, 1]} : vector<10x16x8xbf16> to vector<8x16x8xbf16>
    %55 = vector.shape_cast %54 : vector<8x16x8xbf16> to vector<128x8xbf16>
    %c5 = arith.constant 5 : index
    %c0_33 = arith.constant 0 : index
    %c0_34 = arith.constant 0 : index
    %56 = vector.load %arg4[%c5, %c0_33, %c0_34] : memref<9x8x64xbf16, #tpu.memory_space<vmem>>, vector<1x8x64xbf16>
    %57 = vector.shape_cast %56 : vector<1x8x64xbf16> to vector<8x64xbf16>
    %cst_35 = arith.constant dense<0.000000e+00> : vector<128x64xf32>
    %58 = tpu.matmul %55, %57, %cst_35 {dimension_numbers = #tpu.dot_dimension_numbers<[1], [0], [0], [1], [0, 0, 1, 1], [], []>} : vector<128x8xbf16>, vector<8x64xbf16>, vector<128x64xf32> -> vector<128x64xf32>
    %59 = arith.addf %53, %58 : vector<128x64xf32>
    %60 = vector.extract_strided_slice %47 {offsets = [2, 0, 0], sizes = [8, 16, 8], strides = [1, 1, 1]} : vector<10x16x8xbf16> to vector<8x16x8xbf16>
    %61 = vector.shape_cast %60 : vector<8x16x8xbf16> to vector<128x8xbf16>
    %c8 = arith.constant 8 : index
    %c0_36 = arith.constant 0 : index
    %c0_37 = arith.constant 0 : index
    %62 = vector.load %arg4[%c8, %c0_36, %c0_37] : memref<9x8x64xbf16, #tpu.memory_space<vmem>>, vector<1x8x64xbf16>
    %63 = vector.shape_cast %62 : vector<1x8x64xbf16> to vector<8x64xbf16>
    %cst_38 = arith.constant dense<0.000000e+00> : vector<128x64xf32>
    %64 = tpu.matmul %61, %63, %cst_38 {dimension_numbers = #tpu.dot_dimension_numbers<[1], [0], [0], [1], [0, 0, 1, 1], [], []>} : vector<128x8xbf16>, vector<8x64xbf16>, vector<128x64xf32> -> vector<128x64xf32>
    %65 = arith.addf %59, %64 : vector<128x64xf32>
    %c0_39 = arith.constant 0 : index
    %c0_40 = arith.constant 0 : index
    %66 = vector.load %arg5[%c0_39, %c0_40] : memref<1x64xf32, #tpu.memory_space<vmem>>, vector<1x64xf32>
    %67 = vector.broadcast %66 : vector<1x64xf32> to vector<128x64xf32>
    %68 = arith.addf %65, %67 : vector<128x64xf32>
    %c0_i32 = arith.constant 0 : i32
    %69 = arith.cmpi eq, %arg1, %c0_i32 : i32
    %c0_i32_41 = arith.constant 0 : i32
    %70 = arith.cmpi eq, %arg2, %c0_i32_41 : i32
    %71 = arith.andi %69, %70 : i1
    %72 = arith.extui %71 : i1 to i32
    %c0_i32_42 = arith.constant 0 : i32
    %73 = arith.cmpi ne, %72, %c0_i32_42 : i32
    scf.if %73 {
      %cst_46 = arith.constant 0.000000e+00 : f32
      %80 = vector.broadcast %cst_46 : f32 to vector<1x64xf32>
      %c0_47 = arith.constant 0 : index
      %c0_48 = arith.constant 0 : index
      %81 = vector.load %arg13[%c0_47, %c0_48] : memref<1x64xf32, #tpu.memory_space<vmem>>, vector<1x64xf32>
      tpu.vector_store %arg13[%c0_47, %c0_48], %80 {strides = array<i32>} : memref<1x64xf32, #tpu.memory_space<vmem>>, vector<1x64xf32>,
      %cst_49 = arith.constant 0.000000e+00 : f32
      %82 = vector.broadcast %cst_49 : f32 to vector<1x64xf32>
      %c0_50 = arith.constant 0 : index
      %c0_51 = arith.constant 0 : index
      %83 = vector.load %arg14[%c0_50, %c0_51] : memref<1x64xf32, #tpu.memory_space<vmem>>, vector<1x64xf32>
      tpu.vector_store %arg14[%c0_50, %c0_51], %82 {strides = array<i32>} : memref<1x64xf32, #tpu.memory_space<vmem>>, vector<1x64xf32>,
    } else {
    }
    %c0_i32_43 = arith.constant 0 : i32
    %74 = arith.cmpi eq, %arg1, %c0_i32_43 : i32
    %75 = arith.extui %74 : i1 to i32
    %c0_i32_44 = arith.constant 0 : i32
    %76 = arith.cmpi ne, %75, %c0_i32_44 : i32
    scf.if %76 {
      %cst_46 = arith.constant 1.000000e+00 : f32
      %80 = vector.broadcast %cst_46 : f32 to vector<1x128xf32>
      %c0_47 = arith.constant 0 : index
      %c0_48 = arith.constant 0 : index
      %81 = vector.load %arg13[%c0_47, %c0_48] : memref<1x64xf32, #tpu.memory_space<vmem>>, vector<1x64xf32>
      %cst_49 = arith.constant dense<0.000000e+00> : vector<1x64xf32>
      %82 = tpu.matmul %80, %68, %cst_49 {dimension_numbers = #tpu.dot_dimension_numbers<[1], [0], [0], [1], [0, 0, 1, 1], [], []>, precision = #tpu.contract_precision<fp32>} : vector<1x128xf32>, vector<128x64xf32>, vector<1x64xf32> -> vector<1x64xf32>
      %83 = arith.addf %81, %82 : vector<1x64xf32>
      %c0_50 = arith.constant 0 : index
      %c0_51 = arith.constant 0 : index
      %84 = vector.load %arg13[%c0_50, %c0_51] : memref<1x64xf32, #tpu.memory_space<vmem>>, vector<1x64xf32>
      tpu.vector_store %arg13[%c0_50, %c0_51], %83 {strides = array<i32>} : memref<1x64xf32, #tpu.memory_space<vmem>>, vector<1x64xf32>,
      %c0_52 = arith.constant 0 : index
      %c0_53 = arith.constant 0 : index
      %85 = vector.load %arg14[%c0_52, %c0_53] : memref<1x64xf32, #tpu.memory_space<vmem>>, vector<1x64xf32>
      %86 = arith.mulf %68, %68 : vector<128x64xf32>
      %cst_54 = arith.constant dense<0.000000e+00> : vector<1x64xf32>
      %87 = tpu.matmul %80, %86, %cst_54 {dimension_numbers = #tpu.dot_dimension_numbers<[1], [0], [0], [1], [0, 0, 1, 1], [], []>, precision = #tpu.contract_precision<fp32>} : vector<1x128xf32>, vector<128x64xf32>, vector<1x64xf32> -> vector<1x64xf32>
      %88 = arith.addf %85, %87 : vector<1x64xf32>
      %c0_55 = arith.constant 0 : index
      %c0_56 = arith.constant 0 : index
      %89 = vector.load %arg14[%c0_55, %c0_56] : memref<1x64xf32, #tpu.memory_space<vmem>>, vector<1x64xf32>
      tpu.vector_store %arg14[%c0_55, %c0_56], %88 {strides = array<i32>} : memref<1x64xf32, #tpu.memory_space<vmem>>, vector<1x64xf32>,
    } else {
    }
    %c1_i32 = arith.constant 1 : i32
    %77 = arith.cmpi eq, %arg1, %c1_i32 : i32
    %78 = arith.extui %77 : i1 to i32
    %c0_i32_45 = arith.constant 0 : i32
    %79 = arith.cmpi ne, %78, %c0_i32_45 : i32
    scf.if %79 {
      %c0_46 = arith.constant 0 : index
      %c0_47 = arith.constant 0 : index
      %80 = vector.load %arg13[%c0_46, %c0_47] : memref<1x64xf32, #tpu.memory_space<vmem>>, vector<1x64xf32>
      %c0_48 = arith.constant 0 : index
      %c0_49 = arith.constant 0 : index
      %81 = vector.load %arg8[%c0_48, %c0_49] : memref<64x16xf32, #tpu.memory_space<vmem>>, vector<64x16xf32>
      %cst_50 = arith.constant dense<0.000000e+00> : vector<1x16xf32>
      %82 = tpu.matmul %80, %81, %cst_50 {dimension_numbers = #tpu.dot_dimension_numbers<[1], [0], [0], [1], [0, 0, 1, 1], [], []>, precision = #tpu.contract_precision<fp32>} : vector<1x64xf32>, vector<64x16xf32>, vector<1x16xf32> -> vector<1x16xf32>
      %cst_51 = arith.constant 1.024000e+03 : f32
      %83 = vector.broadcast %cst_51 : f32 to vector<1x16xf32>
      %84 = arith.divf %82, %83 : vector<1x16xf32>
      %c0_52 = arith.constant 0 : index
      %c0_53 = arith.constant 0 : index
      %85 = vector.load %arg14[%c0_52, %c0_53] : memref<1x64xf32, #tpu.memory_space<vmem>>, vector<1x64xf32>
      %c0_54 = arith.constant 0 : index
      %c0_55 = arith.constant 0 : index
      %86 = vector.load %arg8[%c0_54, %c0_55] : memref<64x16xf32, #tpu.memory_space<vmem>>, vector<64x16xf32>
      %cst_56 = arith.constant dense<0.000000e+00> : vector<1x16xf32>
      %87 = tpu.matmul %85, %86, %cst_56 {dimension_numbers = #tpu.dot_dimension_numbers<[1], [0], [0], [1], [0, 0, 1, 1], [], []>, precision = #tpu.contract_precision<fp32>} : vector<1x64xf32>, vector<64x16xf32>, vector<1x16xf32> -> vector<1x16xf32>
      %cst_57 = arith.constant 1.024000e+03 : f32
      %88 = vector.broadcast %cst_57 : f32 to vector<1x16xf32>
      %89 = arith.divf %87, %88 : vector<1x16xf32>
      %90 = arith.mulf %84, %84 : vector<1x16xf32>
      %91 = arith.subf %89, %90 : vector<1x16xf32>
      %c0_58 = arith.constant 0 : index
      %c0_59 = arith.constant 0 : index
      %92 = vector.load %arg9[%c0_58, %c0_59] : memref<16x64xf32, #tpu.memory_space<vmem>>, vector<16x64xf32>
      %cst_60 = arith.constant dense<0.000000e+00> : vector<1x64xf32>
      %93 = tpu.matmul %84, %92, %cst_60 {dimension_numbers = #tpu.dot_dimension_numbers<[1], [0], [0], [1], [0, 0, 1, 1], [], []>, precision = #tpu.contract_precision<fp32>} : vector<1x16xf32>, vector<16x64xf32>, vector<1x64xf32> -> vector<1x64xf32>
      %c0_61 = arith.constant 0 : index
      %c0_62 = arith.constant 0 : index
      %94 = vector.load %arg9[%c0_61, %c0_62] : memref<16x64xf32, #tpu.memory_space<vmem>>, vector<16x64xf32>
      %cst_63 = arith.constant dense<0.000000e+00> : vector<1x64xf32>
      %95 = tpu.matmul %91, %94, %cst_63 {dimension_numbers = #tpu.dot_dimension_numbers<[1], [0], [0], [1], [0, 0, 1, 1], [], []>, precision = #tpu.contract_precision<fp32>} : vector<1x16xf32>, vector<16x64xf32>, vector<1x64xf32> -> vector<1x64xf32>
      %c0_64 = arith.constant 0 : index
      %c0_65 = arith.constant 0 : index
      %96 = vector.load %arg6[%c0_64, %c0_65] : memref<1x64xf32, #tpu.memory_space<vmem>>, vector<1x64xf32>
      %cst_66 = arith.constant 9.99999974E-6 : f32
      %97 = vector.broadcast %cst_66 : f32 to vector<1x64xf32>
      %98 = arith.addf %95, %97 : vector<1x64xf32>
      %99 = math.rsqrt %98 : vector<1x64xf32>
      %100 = arith.mulf %96, %99 : vector<1x64xf32>
      %c0_67 = arith.constant 0 : index
      %c0_68 = arith.constant 0 : index
      %101 = vector.load %arg7[%c0_67, %c0_68] : memref<1x64xf32, #tpu.memory_space<vmem>>, vector<1x64xf32>
      %102 = arith.mulf %93, %100 : vector<1x64xf32>
      %103 = arith.subf %101, %102 : vector<1x64xf32>
      %104 = vector.broadcast %100 : vector<1x64xf32> to vector<128x64xf32>
      %105 = arith.mulf %68, %104 : vector<128x64xf32>
      %106 = vector.broadcast %103 : vector<1x64xf32> to vector<128x64xf32>
      %107 = arith.addf %105, %106 : vector<128x64xf32>
      %cst_69 = arith.constant 0.000000e+00 : f32
      %108 = vector.broadcast %cst_69 : f32 to vector<128x64xf32>
      %109 = arith.maximumf %107, %108 : vector<128x64xf32>
      %110 = arith.truncf %109 : vector<128x64xf32> to vector<128x64xbf16>
      %c0_70 = arith.constant 0 : index
      %c0_71 = arith.constant 0 : index
      %111 = vector.load %arg10[%c0_70, %c0_71] : memref<64x128xbf16, #tpu.memory_space<vmem>>, vector<64x128xbf16>
      %cst_72 = arith.constant dense<0.000000e+00> : vector<128x128xf32>
      %112 = tpu.matmul %110, %111, %cst_72 {dimension_numbers = #tpu.dot_dimension_numbers<[1], [0], [0], [1], [0, 0, 1, 1], [], []>} : vector<128x64xbf16>, vector<64x128xbf16>, vector<128x128xf32> -> vector<128x128xf32>
      %c0_73 = arith.constant 0 : index
      %c0_74 = arith.constant 0 : index
      %113 = vector.load %arg11[%c0_73, %c0_74] : memref<1x128xf32, #tpu.memory_space<vmem>>, vector<1x128xf32>
      %114 = vector.broadcast %113 : vector<1x128xf32> to vector<128x128xf32>
      %115 = arith.addf %112, %114 : vector<128x128xf32>
      %116 = tpu.iota {dimensions = array<i32: 1>} : vector<1x128xi32>
      %117 = arith.negf %115 : vector<128x128xf32>
      %118 = math.exp %117 : vector<128x128xf32>
      %cst_75 = arith.constant 1.000000e+00 : f32
      %119 = vector.broadcast %cst_75 : f32 to vector<128x128xf32>
      %120 = arith.addf %119, %118 : vector<128x128xf32>
      %121 = arith.divf %119, %120 : vector<128x128xf32>
      %c3_i32 = arith.constant 3 : i32
      %122 = vector.broadcast %c3_i32 : i32 to vector<1x128xi32>
      %123 = arith.cmpi slt, %116, %122 : vector<1x128xi32>
      %cst_76 = arith.constant 9.99999974E-5 : f32
      %cst_77 = arith.constant 0.999899983 : f32
      %124 = vector.broadcast %cst_76 : f32 to vector<128x128xf32>
      %125 = arith.maximumf %124, %121 : vector<128x128xf32>
      %126 = vector.broadcast %cst_77 : f32 to vector<128x128xf32>
      %127 = arith.minimumf %126, %125 : vector<128x128xf32>
      %128 = vector.shape_cast %123 : vector<1x128xi1> to vector<1x128xi1>
      %129 = vector.broadcast %128 : vector<1x128xi1> to vector<128x128xi1>
      %130 = arith.select %129, %127, %115 : vector<128x128xi1>, vector<128x128xf32>
      %c6_i32 = arith.constant 6 : i32
      %131 = vector.broadcast %c6_i32 : i32 to vector<1x128xi32>
      %132 = arith.cmpi sge, %116, %131 : vector<1x128xi32>
      %c9_i32 = arith.constant 9 : i32
      %133 = vector.broadcast %c9_i32 : i32 to vector<1x128xi32>
      %134 = arith.cmpi slt, %116, %133 : vector<1x128xi32>
      %135 = arith.andi %132, %134 : vector<1x128xi1>
      %cst_78 = arith.constant 5.000000e-01 : f32
      %136 = vector.broadcast %cst_78 : f32 to vector<128x128xf32>
      %137 = arith.subf %121, %136 : vector<128x128xf32>
      %138 = vector.shape_cast %135 : vector<1x128xi1> to vector<1x128xi1>
      %139 = vector.broadcast %138 : vector<1x128xi1> to vector<128x128xi1>
      %140 = arith.select %139, %137, %130 : vector<128x128xi1>, vector<128x128xf32>
      %c9_i32_79 = arith.constant 9 : i32
      %141 = vector.broadcast %c9_i32_79 : i32 to vector<1x128xi32>
      %142 = arith.cmpi sge, %116, %141 : vector<1x128xi32>
      %c11_i32 = arith.constant 11 : i32
      %143 = vector.broadcast %c11_i32 : i32 to vector<1x128xi32>
      %144 = arith.cmpi slt, %116, %143 : vector<1x128xi32>
      %145 = arith.andi %142, %144 : vector<1x128xi1>
      %146 = arith.mulf %115, %115 : vector<128x128xf32>
      %cst_80 = arith.constant 0.000000e+00 : f32
      %147 = vector.shape_cast %145 : vector<1x128xi1> to vector<1x128xi1>
      %148 = vector.broadcast %147 : vector<1x128xi1> to vector<128x128xi1>
      %149 = vector.broadcast %cst_80 : f32 to vector<128x128xf32>
      %150 = arith.select %148, %146, %149 : vector<128x128xi1>, vector<128x128xf32>
      %cst_81 = arith.constant dense<0.000000e+00> : vector<128xf32>
      %151 = vector.multi_reduction <add>, %150, %cst_81 [1] : vector<128x128xf32> to vector<128xf32>
      %152 = vector.shape_cast %151 : vector<128xf32> to vector<128x1xf32>
      %153 = math.sqrt %152 : vector<128x1xf32>
      %cst_82 = arith.constant 9.99999996E-13 : f32
      %154 = vector.broadcast %cst_82 : f32 to vector<128x1xf32>
      %155 = arith.maximumf %153, %154 : vector<128x1xf32>
      %156 = vector.broadcast %155 : vector<128x1xf32> to vector<128x128xf32>
      %157 = arith.divf %115, %156 : vector<128x128xf32>
      %158 = vector.shape_cast %145 : vector<1x128xi1> to vector<1x128xi1>
      %159 = vector.broadcast %158 : vector<1x128xi1> to vector<128x128xi1>
      %160 = arith.select %159, %157, %140 : vector<128x128xi1>, vector<128x128xf32>
      %c0_83 = arith.constant 0 : index
      %c0_84 = arith.constant 0 : index
      %c0_85 = arith.constant 0 : index
      %161 = vector.load %arg12[%c0_83, %c0_84, %c0_85] : memref<1x128x128xf32, #tpu.memory_space<vmem>>, vector<1x128x128xf32>
      %162 = vector.shape_cast %161 : vector<1x128x128xf32> to vector<128x128xf32>
      %163 = vector.shape_cast %160 : vector<128x128xf32> to vector<1x128x128xf32>
      tpu.vector_store %arg12[%c0_83, %c0_84, %c0_85], %163 {strides = array<i32>} : memref<1x128x128xf32, #tpu.memory_space<vmem>>, vector<1x128x128xf32>,
    } else {
    }
    return
  }
  func.func @transform_0(%arg0: i32, %arg1: i32, %arg2: i32) -> (i32, i32, i32, i32, i32) {
    %c0_i32 = arith.constant 0 : i32
    %c0_i32_0 = arith.constant 0 : i32
    %c0_i32_1 = arith.constant 0 : i32
    %c0_i32_2 = arith.constant 0 : i32
    %c0_i32_3 = arith.constant 0 : i32
    return %arg0, %c0_i32, %c0_i32_0, %c0_i32_1, %c0_i32_2 : i32, i32, i32, i32, i32
  }
  func.func @transform_1(%arg0: i32, %arg1: i32, %arg2: i32) -> (i32, i32, i32) {
    %c0_i32 = arith.constant 0 : i32
    %c0_i32_0 = arith.constant 0 : i32
    %c0_i32_1 = arith.constant 0 : i32
    %c0_i32_2 = arith.constant 0 : i32
    return %c0_i32, %c0_i32_0, %c0_i32_1 : i32, i32, i32
  }
  func.func @transform_2(%arg0: i32, %arg1: i32, %arg2: i32) -> (i32, i32) {
    %c0_i32 = arith.constant 0 : i32
    %c0_i32_0 = arith.constant 0 : i32
    %c0_i32_1 = arith.constant 0 : i32
    return %c0_i32, %c0_i32_0 : i32, i32
  }
  func.func @transform_3(%arg0: i32, %arg1: i32, %arg2: i32) -> (i32, i32) {
    %c0_i32 = arith.constant 0 : i32
    %c0_i32_0 = arith.constant 0 : i32
    %c0_i32_1 = arith.constant 0 : i32
    return %c0_i32, %c0_i32_0 : i32, i32
  }
  func.func @transform_4(%arg0: i32, %arg1: i32, %arg2: i32) -> (i32, i32) {
    %c0_i32 = arith.constant 0 : i32
    %c0_i32_0 = arith.constant 0 : i32
    %c0_i32_1 = arith.constant 0 : i32
    return %c0_i32, %c0_i32_0 : i32, i32
  }
  func.func @transform_5(%arg0: i32, %arg1: i32, %arg2: i32) -> (i32, i32) {
    %c0_i32 = arith.constant 0 : i32
    %c0_i32_0 = arith.constant 0 : i32
    %c0_i32_1 = arith.constant 0 : i32
    return %c0_i32, %c0_i32_0 : i32, i32
  }
  func.func @transform_6(%arg0: i32, %arg1: i32, %arg2: i32) -> (i32, i32) {
    %c0_i32 = arith.constant 0 : i32
    %c0_i32_0 = arith.constant 0 : i32
    %c0_i32_1 = arith.constant 0 : i32
    return %c0_i32, %c0_i32_0 : i32, i32
  }
  func.func @transform_7(%arg0: i32, %arg1: i32, %arg2: i32) -> (i32, i32) {
    %c0_i32 = arith.constant 0 : i32
    %c0_i32_0 = arith.constant 0 : i32
    %c0_i32_1 = arith.constant 0 : i32
    return %c0_i32, %c0_i32_0 : i32, i32
  }
  func.func @transform_8(%arg0: i32, %arg1: i32, %arg2: i32) -> (i32, i32) {
    %c0_i32 = arith.constant 0 : i32
    %c0_i32_0 = arith.constant 0 : i32
    %c0_i32_1 = arith.constant 0 : i32
    return %c0_i32, %c0_i32_0 : i32, i32
  }
  func.func @transform_9(%arg0: i32, %arg1: i32, %arg2: i32) -> (i32, i32, i32) {
    %0 = arith.muli %arg2, %arg1 : i32
    %c0_i32 = arith.constant 0 : i32
    %c0_i32_0 = arith.constant 0 : i32
    return %arg0, %0, %c0_i32 : i32, i32, i32
  }
}

</mosaic_0001>

<bundles_post_ra>
// kernel: smoke_predictor_det_head.1
= control target key start
LH: loop header
LB: loop body
LE: loop exit
PB: predicated region body
PF: predicated region fallthrough
CT: control target
= control target key end

     0   :  { %s7765_s30 = smov 0   ;;  %s7767_s10 = smov 0   ;;  %s10067_s0 = inlined_call_operand.vmem [shape: bf16[2,3,18,16,8], index: 0, kind: input, shape index: {}]   ;;  %s10068_s1 = inlined_call_operand.vmem [shape: bf16[9,8,64], index: 1, kind: input, shape index: {}]   ;;  %s10069_s2 = inlined_call_operand.vmem [shape: f32[1,64], index: 2, kind: input, shape index: {}]   ;;  %s10070_s3 = inlined_call_operand.vmem [shape: f32[1,64], index: 3, kind: input, shape index: {}]   ;;  %s10071_s4 = inlined_call_operand.vmem [shape: f32[1,64], index: 4, kind: input, shape index: {}]   ;;  %s10072_s5 = inlined_call_operand.vmem [shape: f32[64,16], index: 5, kind: input, shape index: {}]   ;;  %s10073_s6 = inlined_call_operand.vmem [shape: f32[16,64], index: 6, kind: input, shape index: {}]   ;;  %s10074_s7 = inlined_call_operand.vmem [shape: bf16[64,128], index: 7, kind: input, shape index: {}]   ;;  %s10075_s8 = inlined_call_operand.vmem [shape: f32[1,128], index: 8, kind: input, shape index: {}]   ;;  %s10076_s9 = inlined_call_operand.vmem [shape: f32[2,256,128], index: 9, kind: output, shape index: {}]  }
   0x1   :  { %s7769_s11 = smov 0   ;;  %s7771_s12 = smov 0  }
   0x2   :  { %s7773_s13 = smov 0   ;;  %s7775_s14 = smov 0  }
   0x3   :  { %s7777_s15 = smov 0  }
   0x4 LB: > { %s31_s16 = sadd.s32 1, %s7695_s12  ;;  %s34_s17 = sadd.s32 1, %s7699_s13  ;;  %s7707_s15 = sphi %s7777_s15, %s19_s15   ;;  %s7703_s14 = sphi %s7775_s14, %s10158_s14   ;;  %s7699_s13 = sphi %s7773_s13, %s10157_s13   ;;  %s7695_s12 = sphi %s7771_s12, %s10156_s12   ;;  %s7691_s11 = sphi %s7769_s11, %s10155_s11   ;;  %s7687_s10 = sphi %s7767_s10, %s10154_s10   ;;  %s7683_s30 = sphi %s7765_s30, %s10153_s30  }
   0x5   : > { %p32_p0 = scmp.ge.s32.totalorder %s31_s16, 2  ;;  %p5839_p1 = scmp.ge.s32.totalorder %s7707_s15, 1 }
   0x6   : > { %p310_p2 = scmp.lt.s32.totalorder %s7707_s15, 9  ;;  %s38_s18 = sadd.s32 1, %s7703_s14 }
   0x7   : > { %s10160_s16 = smov (%p32_p0, %s31_s16), 0  ;;  %s10162_s17 = smov (!%p32_p0, %s34_s17), %s7699_s13 }
   0x8   : > { %p311_p3 = pnand %p5839_p1, %p310_p2  ;;  %p36_p4 = scmp.ge.s32.totalorder %s10162_s17, 2 }
   0xa   : > { %s10164_s17 = smov (%p36_p4, %s10162_s17), 0  ;;  %s10166_s18 = smov (!%p36_p4, %s38_s18), %s7703_s14 }
   0xb   : > { %p40_p5 = scmp.ge.s32.totalorder %s10166_s18, 2  ;;  %314 = sbr.rel (%p311_p3) target bundleno = 1763 (0x6e3), region = 56 }
   0xd   : > { %s10168_s18 = smov (%p40_p5, %s10166_s18), 0 }
   0xe   : > { %10103 = sst [smem:[#allocation4_spill]] %s10168_s18 }
  0x10   : > { %v5847_v0 = vld [vmem:[%s10068_s1 + $0xc] sm:$0xf]  ;;  %vm461_vm0 = vcmask 1043456   ;;  %p351_p6 = scmp.lt.s32.totalorder %s7691_s11, 1  ;;  %s356_s21 = smul.u32 %s7683_s30, %s7687_s10  ;;  %v393_v2 = vld [vmem:[%s10068_s1] sm:$0xf] }
  0x11   : > { %7417 = vmatprep.subr.msk.bf16.mxu1 %vm461_vm0, %v5847_v0  ;;  %7416 = vmatprep.subr.msk.bf16.mxu0 %vm461_vm0, %v5847_v0  ;;  %v463_v1 = vsel %vm461_vm0, %v5847_v0, 0  ;;  %v5873_v3 = vld [vmem:[%s10068_s1 + $0x18] sm:$0xf]  ;;  %s6052_s28 = sshll.u32 %s7683_s30, 6  ;;  %vm436_vm1 = vcmask 64512   ;;  %v571_v10 = vsel %vm461_vm0, %v393_v2, 0 }
  0x12   : > { %7415 = vmatpush3.bf16.msra.mxu1 %v463_v1  ;;  %6497 = vmatpush3.bf16.msra.mxu0 %v463_v1  ;;  %s10170_s11 = smov (!%p351_p6, %s7691_s11), 1  ;;  %s5841_s26 = sshll.u32 %s356_s21, 4  ;;  %v681_v7 = vsel %vm461_vm0, %v5873_v3, 0  ;;  %v5905_v8 = vld [vmem:[%s10068_s1 + $0x4] sm:$0xf] }
  0x13   : > { %7418 = vmatprep.subr.msk.bf16.mxu1 %vm461_vm0, %v393_v2  ;;  %7419 = vmatprep.subr.msk.bf16.mxu0 %vm461_vm0, %v5873_v3  ;;  %s7426_s27 = smul.u32 432, %s10170_s11  ;;  %p360_p7 = scmp.lt.s32.totalorder %s5841_s26, 31  ;;  %v5922_v11 = vld [vmem:[%s10068_s1 + $0x10] sm:$0xf]  ;;  %v886_v18 = vsel %vm461_vm0, %v5905_v8, 0 }
  0x14   : > { %s5842_s22 = sshll.u32 %s10170_s11, 5  ;;  %v1012_v17 = vsel %vm461_vm0, %v5922_v11, 0  ;;  %v5932_v19 = vld [vmem:[%s10068_s1 + $0x1c] sm:$0xf]  ;;  %v5964_v20 = vld [vmem:[%s10068_s1 + $0x8] sm:$0xf] }
  0x15   : > { %s355_s20 = scalar_lea.vmem %s10067_s0, %s7426_s27  ;;  %s10172_s26 = smov (!%p360_p7, %s5841_s26), 31  ;;  %v1343_v25 = vsel %vm461_vm0, %v5964_v20, 0  ;;  %v1138_v26 = vsel %vm461_vm0, %v5932_v19, 0  ;;  %v5981_v28 = vld [vmem:[%s10068_s1 + $0x14] sm:$0xf] }
  0x16   : > { %s7835_s23 = scalar_lea.vmem %s355_s20, %s6052_s28  ;;  %s363_s21 = sadd.s32 %s5842_s22, %s10172_s26  ;;  %v5991_v29 = vld [vmem:[%s10068_s1 + $0x20] sm:$0xf]  ;;  %v1469_v38 = vsel %vm461_vm0, %v5981_v28, 0 }
  0x17   : > { %v7489_v4 = vld [vmem:[%s7835_s23 + $0x8] sm:$0xff]   ;;  %s5843_s24 = sshll.u32 %s363_s21, 3  ;;  %v7491_v6 = vld [vmem:[%s7835_s23 + $0x10] sm:$0xff]   ;;  %v7493_v12 = vld [vmem:[%s7835_s23 + $0x18] sm:$0xff]   ;;  %v1595_v37 = vsel %vm461_vm0, %v5991_v29, 0  ;;  %p1733_p8 = scmp.eq.s32.totalorder %s7687_s10, 0 }
  0x18   : > { %v7490_v5 = vld [vmem:[%s7835_s23 + $0x28] sm:$0xff]   ;;  %s7842_s29 = scalar_lea.vmem %s10076_s9, %s5843_s24  ;;  %6498 = vmatprep.mubr.msk.bf16.mxu0 %vm436_vm1, %v7489_v4  ;;  %v7492_v9 = vld [vmem:[%s7835_s23 + $0x30] sm:$0xff]   ;;  %v7494_v13 = vld [vmem:[%s7835_s23 + $0x38] sm:$0xff]   ;;  %p1734_p9 = scmp.eq.s32.totalorder %s7683_s30, 0 }
  0x19   : > { %6506 = vmatprep.mubr.msk.bf16.mxu1 %vm436_vm1, %v7490_v5  ;;  %6499 = vmatmul.mubr.msk.bf16.vlgmr.msra.gmra.mxu0 %vm436_vm1, %v7491_v6  ;;  %v7495_v14 = vld [vmem:[%s7835_s23 + $0x20] sm:$0xff]   ;;  %v7498_v21 = vld [vmem:[%s7835_s23 + $0x48] sm:$0xff]   ;;  %v7500_v22 = vld [vmem:[%s7835_s23 + $0x98] sm:$0xff]  }
  0x1a   : > { %6507 = vmatmul.mubr.msk.bf16.vlgmr.msra.gmra.mxu1 %vm436_vm1, %v7492_v9  ;;  %6533 = vmatpush3.bf16.msra.mxu0 %v681_v7  ;;  %v7496_v15 = vld [vmem:[%s7835_s23 + $0x40] sm:$0xff]   ;;  %v7499_v23 = vld [vmem:[%s7835_s23 + $0x90] sm:$0xff]   ;;  %v7502_v27 = vld [vmem:[%s7835_s23 + $0xa8] sm:$0xff]   ;;  %p7982_p10 = pnand %p1734_p9, %p1733_p8 }
  0x1b   : > { %6515 = vmatpush3.bf16.msra.mxu1 %v571_v10  ;;  %6502 = vmatprep.mubr.msk.bf16.mxu0 %vm436_vm1, %v7493_v12  ;;  %v7497_v16 = vld [vmem:[%s7835_s23] sm:$0xff]   ;;  %v7503_v30 = vld [vmem:[%s7835_s23 + $0xb0] sm:$0xff]   ;;  %v7504_v31 = vld [vmem:[%s7835_s23 + $0xb8] sm:$0xff]  }
  0x1c   : > { %6510 = vmatprep.mubr.msk.bf16.mxu1 %vm436_vm1, %v7494_v13  ;;  %7420 = vmatprep.subr.msk.bf16.mxu1 %vm461_vm0, %v5905_v8  ;;  %v7501_v24 = vld [vmem:[%s7835_s23 + $0xa0] sm:$0xff]   ;;  %v7506_v33 = vld [vmem:[%s7835_s23 + $0xc8] sm:$0xff]   ;;  %v7507_v34 = vld [vmem:[%s7835_s23 + $0xd0] sm:$0xff]  }
  0x1d   : > { %7421 = vmatprep.subr.msk.bf16.mxu0 %vm461_vm0, %v5922_v11  ;;  %v7505_v32 = vld [vmem:[%s7835_s23 + $0xc0] sm:$0xff]   ;;  %v7509_v36 = vld [vmem:[%s7835_s23 + $0x128] sm:$0xff]   ;;  %v7510_v39 = vld [vmem:[%s7835_s23 + $0x130] sm:$0xff]  }
  0x1e   : > { %v7508_v35 = vld [vmem:[%s7835_s23 + $0x120] sm:$0xff]   ;;  %v7511_v40 = vld [vmem:[%s7835_s23 + $0x138] sm:$0xff]   ;;  %v7513_v42 = vld [vmem:[%s7835_s23 + $0x148] sm:$0xff]  }
  0x1f   : > { %v7512_v41 = vld [vmem:[%s7835_s23 + $0x140] sm:$0xff]   ;;  %v7514_v43 = vld [vmem:[%s7835_s23 + $0x150] sm:$0xff]   ;;  %v7516_v44 = vld [vmem:[%s7835_s23 + $0x158] sm:$0xff]  }
  0x20   : > { %v7515_v45 = vld [vmem:[%s7835_s23 + $0xd8] sm:$0xff]   ;;  %v7517_v46 = vld [vmem:[%s7835_s23 + $0x160] sm:$0xff]   ;;  %v7518_v47 = vld [vmem:[%s7835_s23 + $0x168] sm:$0xff]  }
  0x21   : > { %6503 = vmatmul.mubr.msk.bf16.gmra.mxu0 %vm436_vm1, %v7495_v14 }
  0x22   : > { %6511 = vmatmul.mubr.msk.bf16.gmra.mxu1 %vm436_vm1, %v7496_v15  ;;  %6534 = vmatprep.mubr.msk.bf16.mxu0 %vm436_vm1, %v7491_v6 }
  0x23   : > { %6516 = vmatprep.mubr.msk.bf16.mxu1 %vm436_vm1, %v7497_v16 }
  0x29   : > { %6535 = vmatmul.mubr.msk.bf16.vlgmr.msra.gmra.mxu0 %vm436_vm1, %v7493_v12 }
  0x2a   : > { %6517 = vmatmul.mubr.msk.bf16.vlgmr.msra.gmra.mxu1 %vm436_vm1, %v7489_v4  ;;  %6569 = vmatpush3.bf16.msra.mxu0 %v1012_v17 }
  0x2b   : > { %6551 = vmatpush3.bf16.msra.mxu1 %v886_v18  ;;  %6520 = vmatprep.mubr.msk.bf16.mxu1 %vm436_vm1, %v7491_v6 }
  0x2c   : > { %6538 = vmatprep.mubr.msk.bf16.mxu0 %vm436_vm1, %v7495_v14  ;;  %7422 = vmatprep.subr.msk.bf16.mxu1 %vm461_vm0, %v5932_v19 }
  0x2d   : > { %7423 = vmatprep.subr.msk.bf16.mxu0 %vm461_vm0, %v5964_v20 }
  0x31   : > { %6539 = vmatmul.mubr.msk.bf16.gmra.mxu0 %vm436_vm1, %v7490_v5 }
  0x32   : > { %6521 = vmatmul.mubr.msk.bf16.gmra.mxu1 %vm436_vm1, %v7493_v12  ;;  %6542 = vmatprep.mubr.msk.bf16.mxu0 %vm436_vm1, %v7492_v9 }
  0x33   : > { %6524 = vmatprep.mubr.msk.bf16.mxu1 %vm436_vm1, %v7495_v14 }
  0x39   : > { %6543 = vmatmul.mubr.msk.bf16.gmra.mxu0 %vm436_vm1, %v7494_v13 }
  0x3a   : > { %6525 = vmatmul.mubr.msk.bf16.gmra.mxu1 %vm436_vm1, %v7490_v5  ;;  %6546 = vmatprep.mubr.msk.bf16.mxu0 %vm436_vm1, %v7496_v15 }
  0x3b   : > { %6528 = vmatprep.mubr.msk.bf16.mxu1 %vm436_vm1, %v7492_v9 }
  0x41   : > { %6547 = vmatmul.mubr.msk.bf16.gmra.mxu0 %vm436_vm1, %v7498_v21 }
  0x42   : > { %6529 = vmatmul.mubr.msk.bf16.gmra.mxu1 %vm436_vm1, %v7494_v13  ;;  %6570 = vmatprep.mubr.msk.bf16.mxu0 %vm436_vm1, %v7500_v22 }
  0x43   : > { %6552 = vmatprep.mubr.msk.bf16.mxu1 %vm436_vm1, %v7499_v23 }
  0x49   : > { %6571 = vmatmul.mubr.msk.bf16.vlgmr.msra.gmra.mxu0 %vm436_vm1, %v7501_v24 }
  0x4a   : > { %6553 = vmatmul.mubr.msk.bf16.vlgmr.msra.gmra.mxu1 %vm436_vm1, %v7500_v22  ;;  %6605 = vmatpush3.bf16.msra.mxu0 %v1343_v25 }
  0x4b   : > { %6587 = vmatpush3.bf16.msra.mxu1 %v1138_v26  ;;  %6556 = vmatprep.mubr.msk.bf16.mxu1 %vm436_vm1, %v7501_v24 }
  0x4c   : > { %6574 = vmatprep.mubr.msk.bf16.mxu0 %vm436_vm1, %v7502_v27  ;;  %7424 = vmatprep.subr.msk.bf16.mxu1 %vm461_vm0, %v5981_v28 }
  0x4d   : > { %7425 = vmatprep.subr.msk.bf16.mxu0 %vm461_vm0, %v5991_v29 }
  0x51   : > { %6575 = vmatmul.mubr.msk.bf16.gmra.mxu0 %vm436_vm1, %v7503_v30 }
  0x52   : > { %6557 = vmatmul.mubr.msk.bf16.gmra.mxu1 %vm436_vm1, %v7502_v27  ;;  %6578 = vmatprep.mubr.msk.bf16.mxu0 %vm436_vm1, %v7504_v31 }
  0x53   : > { %6560 = vmatprep.mubr.msk.bf16.mxu1 %vm436_vm1, %v7503_v30 }
  0x59   : > { %6579 = vmatmul.mubr.msk.bf16.gmra.mxu0 %vm436_vm1, %v7505_v32 }
  0x5a   : > { %6561 = vmatmul.mubr.msk.bf16.gmra.mxu1 %vm436_vm1, %v7504_v31  ;;  %6582 = vmatprep.mubr.msk.bf16.mxu0 %vm436_vm1, %v7506_v33 }
  0x5b   : > { %6564 = vmatprep.mubr.msk.bf16.mxu1 %vm436_vm1, %v7505_v32 }
  0x61   : > { %6583 = vmatmul.mubr.msk.bf16.gmra.mxu0 %vm436_vm1, %v7507_v34 }
  0x62   : > { %6565 = vmatmul.mubr.msk.bf16.gmra.mxu1 %vm436_vm1, %v7506_v33  ;;  %6606 = vmatprep.mubr.msk.bf16.mxu0 %vm436_vm1, %v7508_v35 }
  0x63   : > { %6588 = vmatprep.mubr.msk.bf16.mxu1 %vm436_vm1, %v7501_v24 }
  0x69   : > { %6607 = vmatmul.mubr.msk.bf16.vlgmr.msra.gmra.mxu0 %vm436_vm1, %v7509_v36 }
  0x6a   : > { %6589 = vmatmul.mubr.msk.bf16.vlgmr.msra.gmra.mxu1 %vm436_vm1, %v7502_v27  ;;  %6641 = vmatpush3.bf16.msra.mxu0 %v1595_v37 }
  0x6b   : > { %6623 = vmatpush3.bf16.msra.mxu1 %v1469_v38  ;;  %6592 = vmatprep.mubr.msk.bf16.mxu1 %vm436_vm1, %v7503_v30 }
  0x6c   : > { %6610 = vmatprep.mubr.msk.bf16.mxu0 %vm436_vm1, %v7510_v39 }
  0x71   : > { %6611 = vmatmul.mubr.msk.bf16.gmra.mxu0 %vm436_vm1, %v7511_v40 }
  0x72   : > { %6593 = vmatmul.mubr.msk.bf16.gmra.mxu1 %vm436_vm1, %v7504_v31  ;;  %6614 = vmatprep.mubr.msk.bf16.mxu0 %vm436_vm1, %v7512_v41 }
  0x73   : > { %6596 = vmatprep.mubr.msk.bf16.mxu1 %vm436_vm1, %v7505_v32 }
  0x79   : > { %6615 = vmatmul.mubr.msk.bf16.gmra.mxu0 %vm436_vm1, %v7513_v42 }
  0x7a   : > { %6597 = vmatmul.mubr.msk.bf16.gmra.mxu1 %vm436_vm1, %v7506_v33  ;;  %6618 = vmatprep.mubr.msk.bf16.mxu0 %vm436_vm1, %v7514_v43 }
  0x7b   : > { %6600 = vmatprep.mubr.msk.bf16.mxu1 %vm436_vm1, %v7507_v34 }
  0x81   : > { %6619 = vmatmul.mubr.msk.bf16.gmra.mxu0 %vm436_vm1, %v7516_v44 }
  0x82   : > { %6601 = vmatmul.mubr.msk.bf16.gmra.mxu1 %vm436_vm1, %v7515_v45  ;;  %6642 = vmatprep.mubr.msk.bf16.mxu0 %vm436_vm1, %v7510_v39 }
  0x83   : > { %6624 = vmatprep.mubr.msk.bf16.mxu1 %vm436_vm1, %v7509_v36 }
  0x89   : > { %6643 = vmatmul.mubr.msk.bf16.vlgmr.msra.gmra.mxu0 %vm436_vm1, %v7511_v40 }
  0x8a   : > { %6625 = vmatmul.mubr.msk.bf16.vlgmr.msra.gmra.mxu1 %vm436_vm1, %v7510_v39  ;;  %6646 = vmatprep.mubr.msk.bf16.mxu0 %vm436_vm1, %v7512_v41 }
  0x8b   : > { %6628 = vmatprep.mubr.msk.bf16.mxu1 %vm436_vm1, %v7511_v40 }
  0x91   : > { %6647 = vmatmul.mubr.msk.bf16.gmra.mxu0 %vm436_vm1, %v7513_v42 }
  0x92   : > { %6629 = vmatmul.mubr.msk.bf16.gmra.mxu1 %vm436_vm1, %v7512_v41  ;;  %6650 = vmatprep.mubr.msk.bf16.mxu0 %vm436_vm1, %v7514_v43 }
  0x93   : > { %6632 = vmatprep.mubr.msk.bf16.mxu1 %vm436_vm1, %v7513_v42 }
  0x99   : > { %6651 = vmatmul.mubr.msk.bf16.gmra.mxu0 %vm436_vm1, %v7516_v44 }
  0x9a   : > { %6633 = vmatmul.mubr.msk.bf16.gmra.mxu1 %vm436_vm1, %v7514_v43  ;;  %6654 = vmatprep.mubr.msk.bf16.mxu0 %vm436_vm1, %v7517_v46 }
  0x9b   : > { %6636 = vmatprep.mubr.msk.bf16.mxu1 %vm436_vm1, %v7516_v44 }
  0xa1   : > { %6655 = vmatmul.mubr.msk.bf16.gmra.mxu0 %vm436_vm1, %v7518_v47 }
  0xa2   : > { %6637 = vmatmul.mubr.msk.bf16.gmra.mxu1 %vm436_vm1, %v7517_v46 }
  0xd9   : > { %v6500_v48 = vpop.f32.mrf.mxu0 }
  0xda   : > { %v6508_v49 = vpop.f32.mrf.mxu1 }
  0xdb   : > { %v499_v50 = vpop.f32.mrf.mxu0 }
  0xdc   : > { %v531_v51 = vpop.f32.mrf.mxu1 }
  0xdd   : > { %v6501_v52 = vpop.f32.mrf.mxu0 }
  0xde   : > { %v6509_v53 = vpop.f32.mrf.mxu1 }
  0xdf   : > { %v502_v54 = vpop.f32.mrf.mxu0 }
  0xe0   : > { %v534_v55 = vpop.f32.mrf.mxu1 }
  0xe1   : > { %v6504_v56 = vpop.f32.mrf.mxu0 }
  0xe2   : > { %v6512_v57 = vpop.f32.mrf.mxu1 }
  0xe3   : > { %v515_v58 = vpop.f32.mrf.mxu0 }
  0xe4   : > { %v547_v59 = vpop.f32.mrf.mxu1 }
  0xe5   : > { %v6505_v60 = vpop.f32.mrf.mxu0 }
  0xe6   : > { %v7976_v61 = vpop.f32.mrf.mxu1 }
  0xe7   : > { %v518_v62 = vpop.f32.mrf.mxu0 }
  0xe8   : > { %v7978_v63 = vpop.f32.mrf.mxu1 }
  0xe9   : > { %v6536_v0 = vpop.f32.mrf.mxu0 }
  0xea   : > { %v6518_v1 = vpop.f32.mrf.mxu1 }
  0xeb   : > { %v616_v2 = vadd.f32 %v6518_v1, %v6500_v48  ;;  %v717_v3 = vpop.f32.mrf.mxu0 }
  0xec   : > { %v607_v4 = vpop.f32.mrf.mxu1 }
  0xed   : > { %v782_v5 = vadd.f32 %v6536_v0, %v616_v2  ;;  %v608_v6 = vadd.f32 %v607_v4, %v499_v50  ;;  %v6537_v7 = vpop.f32.mrf.mxu0 }
  0xee   : > { %v6519_v8 = vpop.f32.mrf.mxu1 }
  0xef   : > { %v780_v9 = vadd.f32 %v717_v3, %v608_v6  ;;  %v619_v10 = vadd.f32 %v6519_v8, %v6501_v52  ;;  %v720_v11 = vpop.f32.mrf.mxu0 }
  0xf0   : > { %v610_v12 = vpop.f32.mrf.mxu1 }
  0xf1   : > { %v783_v13 = vadd.f32 %v6537_v7, %v619_v10  ;;  %v611_v14 = vadd.f32 %v610_v12, %v502_v54  ;;  %v6540_v15 = vpop.f32.mrf.mxu0 }
  0xf2   : > { %v6522_v16 = vpop.f32.mrf.mxu1 }
  0xf3   : > { %v781_v17 = vadd.f32 %v720_v11, %v611_v14  ;;  %v632_v18 = vadd.f32 %v6522_v16, %v6504_v56  ;;  %v733_v19 = vpop.f32.mrf.mxu0 }
  0xf4   : > { %v623_v20 = vpop.f32.mrf.mxu1 }
  0xf5   : > { %v786_v21 = vadd.f32 %v6540_v15, %v632_v18  ;;  %v624_v22 = vadd.f32 %v623_v20, %v515_v58  ;;  %v6541_v23 = vpop.f32.mrf.mxu0 }
  0xf6   : > { %v6523_v24 = vpop.f32.mrf.mxu1 }
  0xf7   : > { %v784_v25 = vadd.f32 %v733_v19, %v624_v22  ;;  %v635_v26 = vadd.f32 %v6523_v24, %v6505_v60  ;;  %v736_v27 = vpop.f32.mrf.mxu0 }
  0xf8   : > { %v626_v28 = vpop.f32.mrf.mxu1 }
  0xf9   : > { %v787_v29 = vadd.f32 %v6541_v23, %v635_v26  ;;  %v627_v30 = vadd.f32 %v626_v28, %v518_v62  ;;  %v6544_v31 = vpop.f32.mrf.mxu0 }
  0xfa   : > { %v6526_v32 = vpop.f32.mrf.mxu1 }
  0xfb   : > { %v785_v33 = vadd.f32 %v736_v27, %v627_v30  ;;  %v648_v34 = vadd.f32 %v6526_v32, %v6508_v49  ;;  %v749_v35 = vpop.f32.mrf.mxu0 }
  0xfc   : > { %v639_v36 = vpop.f32.mrf.mxu1 }
  0xfd   : > { %v790_v37 = vadd.f32 %v6544_v31, %v648_v34  ;;  %v640_v38 = vadd.f32 %v639_v36, %v531_v51  ;;  %v6545_v39 = vpop.f32.mrf.mxu0 }
  0xfe   : > { %v6527_v40 = vpop.f32.mrf.mxu1 }
  0xff   : > { %v788_v41 = vadd.f32 %v749_v35, %v640_v38  ;;  %v651_v42 = vadd.f32 %v6527_v40, %v6509_v53  ;;  %v752_v43 = vpop.f32.mrf.mxu0 }
 0x100   : > { %v642_v44 = vpop.f32.mrf.mxu1 }
 0x101   : > { %v791_v45 = vadd.f32 %v6545_v39, %v651_v42  ;;  %v643_v46 = vadd.f32 %v642_v44, %v534_v55  ;;  %v6548_v47 = vpop.f32.mrf.mxu0 }
 0x102   : > { %v6530_v48 = vpop.f32.mrf.mxu1 }
 0x103   : > { %v789_v50 = vadd.f32 %v752_v43, %v643_v46  ;;  %v664_v52 = vadd.f32 %v6530_v48, %v6512_v57  ;;  %v765_v54 = vpop.f32.mrf.mxu0 }
 0x104   : > { %v655_v56 = vpop.f32.mrf.mxu1 }
 0x105   : > { %v7986_v58 = vadd.f32 %v6548_v47, %v664_v52  ;;  %v656_v49 = vadd.f32 %v655_v56, %v547_v59  ;;  %v6549_v60 = vpop.f32.mrf.mxu0 }
 0x106   : > { %v6531_v62 = vpop.f32.mrf.mxu1 }
 0x107   : > { %v7988_v51 = vadd.f32 %v765_v54, %v656_v49  ;;  %v667_v0 = vadd.f32 %v6531_v62, %v7976_v61  ;;  %v768_v53 = vpop.f32.mrf.mxu0 }
 0x108   : > { %v658_v1 = vpop.f32.mrf.mxu1 }
 0x109   : > { %v7991_v2 = vadd.f32 %v6549_v60, %v667_v0  ;;  %v659_v55 = vadd.f32 %v658_v1, %v7978_v63  ;;  %v6572_v3 = vpop.f32.mrf.mxu0 }
 0x10a   : > { %v6554_v4 = vpop.f32.mrf.mxu1 }
 0x10b   : > { %v7994_v57 = vadd.f32 %v768_v53, %v659_v55  ;;  %v987_v6 = vadd.f32 %v6554_v4, %v782_v5  ;;  %v1048_v7 = vpop.f32.mrf.mxu0 }
 0x10c   : > { %v922_v8 = vpop.f32.mrf.mxu1 }
 0x10d   : > { %v7996_v59 = vadd.f32 %v6572_v3, %v987_v6  ;;  %v985_v10 = vadd.f32 %v922_v8, %v780_v9  ;;  %v6573_v11 = vpop.f32.mrf.mxu0 }
 0x10e   : > { %v6555_v12 = vpop.f32.mrf.mxu1 }
 0x10f   : > { %v7998_v14 = vadd.f32 %v1048_v7, %v985_v10  ;;  %v988_v61 = vadd.f32 %v6555_v12, %v783_v13  ;;  %v1051_v15 = vpop.f32.mrf.mxu0 }
 0x110   : > { %v925_v16 = vpop.f32.mrf.mxu1 }
 0x111   : > { %v8000_v18 = vadd.f32 %v6573_v11, %v988_v61  ;;  %v986_v63 = vadd.f32 %v925_v16, %v781_v17  ;;  %v6576_v19 = vpop.f32.mrf.mxu0 }
 0x112   : > { %v6558_v20 = vpop.f32.mrf.mxu1 }
 0x113   : > { %v8002_v22 = vadd.f32 %v1051_v15, %v986_v63  ;;  %v991_v5 = vadd.f32 %v6558_v20, %v786_v21  ;;  %v1064_v23 = vpop.f32.mrf.mxu0 }
 0x114   : > { %v938_v24 = vpop.f32.mrf.mxu1 }
 0x115   : > { %v8004_v26 = vadd.f32 %v6576_v19, %v991_v5  ;;  %v989_v9 = vadd.f32 %v938_v24, %v784_v25  ;;  %v6577_v27 = vpop.f32.mrf.mxu0 }
 0x116   : > { %v6559_v28 = vpop.f32.mrf.mxu1 }
 0x117   : > { %v8006_v30 = vadd.f32 %v1064_v23, %v989_v9  ;;  %v992_v13 = vadd.f32 %v6559_v28, %v787_v29  ;;  %v1067_v31 = vpop.f32.mrf.mxu0 }
 0x118   : > { %v941_v32 = vpop.f32.mrf.mxu1 }
 0x119   : > { %v8008_v34 = vadd.f32 %v6577_v27, %v992_v13  ;;  %v990_v17 = vadd.f32 %v941_v32, %v785_v33  ;;  %v6580_v35 = vpop.f32.mrf.mxu0 }
 0x11a   : > { %v6562_v36 = vpop.f32.mrf.mxu1 }
 0x11b   : > { %v8010_v38 = vadd.f32 %v1067_v31, %v990_v17  ;;  %v995_v21 = vadd.f32 %v6562_v36, %v790_v37  ;;  %v1080_v39 = vpop.f32.mrf.mxu0 }
 0x11c   : > { %v954_v40 = vpop.f32.mrf.mxu1 }
 0x11d   : > { %v8012_v42 = vadd.f32 %v6580_v35, %v995_v21  ;;  %v993_v25 = vadd.f32 %v954_v40, %v788_v41  ;;  %v6581_v43 = vpop.f32.mrf.mxu0 }
 0x11e   : > { %v6563_v44 = vpop.f32.mrf.mxu1 }
 0x11f   : > { %v8014_v46 = vadd.f32 %v1080_v39, %v993_v25  ;;  %v996_v29 = vadd.f32 %v6563_v44, %v791_v45  ;;  %v1083_v47 = vpop.f32.mrf.mxu0 }
 0x120   : > { %v957_v48 = vpop.f32.mrf.mxu1 }
 0x121   : > { %v8016_v52 = vadd.f32 %v6581_v43, %v996_v29  ;;  %v994_v33 = vadd.f32 %v957_v48, %v789_v50  ;;  %v8018_v54 = vpop.f32.mrf.mxu0 }
 0x122   : > { %v8020_v56 = vpop.f32.mrf.mxu1 }
 0x123   : > { %v8022_v37 = vadd.f32 %v1083_v47, %v994_v33  ;;  %v8024_v49 = vpop.f32.mrf.mxu0 }
 0x124   : > { %v8026_v60 = vpop.f32.mrf.mxu1 }
 0x125   : > { %v8028_v41 = vpop.f32.mrf.mxu0 }
 0x126   : > { %v8030_v62 = vpop.f32.mrf.mxu1 }
 0x127   : > { %v8032_v45 = vpop.f32.mrf.mxu0 }
 0x128   : > { %v8034_v0 = vpop.f32.mrf.mxu1 }
 0x129   : > { %v6608_v53 = vpop.f32.mrf.mxu0 }
 0x12a   : > { %v6590_v50 = vpop.f32.mrf.mxu1 }
 0x12b   : > { %v1379_v1 = vpop.f32.mrf.mxu0  ;;  %v1239_v35 = vadd.f32 %v6590_v50, %v7996_v59 }
 0x12c   : > { %v1174_v55 = vpop.f32.mrf.mxu1 }
 0x12d   : > { %v6609_v3 = vpop.f32.mrf.mxu0  ;;  %v1237_v39 = vadd.f32 %v1174_v55, %v7998_v14  ;;  %v1444_v43 = vadd.f32 %v6608_v53, %v1239_v35  ;;  %v8074_v14 = vld [vmem:[%s10069_s2] ss:$0 sm:$0xff] }
 0x12e   : > { %v6591_v4 = vpop.f32.mrf.mxu1 }
 0x12f   : > { %v1382_v6 = vpop.f32.mrf.mxu0  ;;  %v1240_v44 = vadd.f32 %v6591_v4, %v8000_v18  ;;  %v1442_v48 = vadd.f32 %v1379_v1, %v1237_v39 }
 0x130   : > { %v1177_v7 = vpop.f32.mrf.mxu1 }
 0x131   : > { %v6612_v8 = vpop.f32.mrf.mxu0  ;;  %v1238_v33 = vadd.f32 %v1177_v7, %v8002_v22 }
 0x132   : > { %v6594_v10 = vpop.f32.mrf.mxu1 }
 0x133   : > { %v1395_v11 = vpop.f32.mrf.mxu0  ;;  %v1243_v50 = vadd.f32 %v6594_v10, %v8004_v26  ;;  %v1443_v1 = vadd.f32 %v1382_v6, %v1238_v33 }
 0x134   : > { %v1190_v12 = vpop.f32.mrf.mxu1 }
 0x135   : > { %v6613_v61 = vpop.f32.mrf.mxu0  ;;  %v1241_v18 = vadd.f32 %v1190_v12, %v8006_v30  ;;  %v1448_v10 = vadd.f32 %v6612_v8, %v1243_v50 }
 0x136   : > { %v6595_v15 = vpop.f32.mrf.mxu1 }
 0x137   : > { %v8036_v16 = vpop.f32.mrf.mxu0 }
 0x138   : > { %v1193_v63 = vpop.f32.mrf.mxu1 }
 0x139   : > { %v8038_v19 = vpop.f32.mrf.mxu0  ;;  %v1242_v6 = vadd.f32 %v1193_v63, %v8010_v38 }
 0x13a   : > { %v6598_v20 = vpop.f32.mrf.mxu1 }
 0x13b   : > { %v8040_v5 = vpop.f32.mrf.mxu0  ;;  %v1247_v8 = vadd.f32 %v6598_v20, %v8012_v42 }
 0x13c   : > { %v1206_v23 = vpop.f32.mrf.mxu1 }
 0x13d   : > { %v8042_v24 = vpop.f32.mrf.mxu0  ;;  %v1245_v38 = vadd.f32 %v1206_v23, %v8014_v46 }
 0x13e   : > { %v8044_v9 = vpop.f32.mrf.mxu1 }
 0x13f   : > { %v8046_v27 = vpop.f32.mrf.mxu0 }
 0x140   : > { %v8048_v28 = vpop.f32.mrf.mxu1 }
 0x141   : > { %v8050_v13 = vpop.f32.mrf.mxu0 }
 0x142   : > { %v8052_v31 = vpop.f32.mrf.mxu1 }
 0x143   : > { %v8054_v32 = vpop.f32.mrf.mxu0 }
 0x144   : > { %10105 = vst [vmem:[#allocation5_spill] sm:$0xff] %v8054_v32  ;;  %v8056_v17 = vpop.f32.mrf.mxu1 }
 0x145   : > { %v8059_v36 = vpop.f32.mrf.mxu0 }
 0x146   : > { %10106 = vst [vmem:[#allocation6_spill] sm:$0xff] %v8059_v36  ;;  %v8061_v21 = vpop.f32.mrf.mxu1 }
 0x147   : > { %v8064_v40 = vpop.f32.mrf.mxu0 }
 0x148   : > { %10107 = vst [vmem:[#allocation7_spill] sm:$0xff] %v8064_v40  ;;  %v8066_v25 = vpop.f32.mrf.mxu1  ;;  %v1445_v40 = vadd.f32 %v6609_v3, %v1240_v44 }
 0x149   : > { %10108 = vst [vmem:[#allocation8_spill] sm:$0xff] %v8066_v25  ;;  %v6644_v29 = vpop.f32.mrf.mxu0 }
 0x14a   : > { %v6626_v47 = vpop.f32.mrf.mxu1 }
 0x14b   : > { %v1570_v32 = vadd.f32 %v6626_v47, %v1444_v43  ;;  %v1631_v59 = vpop.f32.mrf.mxu0  ;;  %v1244_v47 = vadd.f32 %v6595_v15, %v8008_v34 }
 0x14c   : > { %v1505_v55 = vpop.f32.mrf.mxu1 }
 0x14d   : > { %v1696_v36 = vadd.f32 %v6644_v29, %v1570_v32  ;;  %v1568_v53 = vadd.f32 %v1505_v55, %v1442_v48  ;;  %v6645_v35 = vpop.f32.mrf.mxu0  ;;  %v1446_v29 = vadd.f32 %v1395_v11, %v1241_v18  ;;  %v1449_v34 = vadd.f32 %v6613_v61, %v1244_v47 }
 0x14e   : > { %v6627_v4 = vpop.f32.mrf.mxu1  ;;  %v999_v11 = vadd.f32 %v8020_v56, %v7986_v58  ;;  %v997_v18 = vadd.f32 %v8026_v60, %v7988_v51  ;;  %v1248_v58 = vadd.f32 %v8044_v9, %v8016_v52  ;;  %v1246_v60 = vadd.f32 %v8048_v28, %v8022_v37 }
 0x14f   : > { %v8078_v22 = vadd.f32 %v8074_v14, %v1696_v36  ;;  %v1694_v7 = vadd.f32 %v1631_v59, %v1568_v53  ;;  %v1571_v39 = vadd.f32 %v6627_v4, %v1445_v40  ;;  %v1634_v26 = vpop.f32.mrf.mxu0  ;;  %v1447_v53 = vadd.f32 %v8036_v16, %v1242_v6 }
 0x150   : > { %v1508_v43 = vpop.f32.mrf.mxu1  ;;  %v1452_v4 = vadd.f32 %v8038_v19, %v1247_v8 }
 0x151   : > { %v8082_v25 = vadd.f32 %v8074_v14, %v1694_v7  ;;  %v1697_v3 = vadd.f32 %v6645_v35, %v1571_v39  ;;  %v1569_v32 = vadd.f32 %v1508_v43, %v1443_v1  ;;  %v6648_v44 = vpop.f32.mrf.mxu0  ;;  %v1125_v7 = vadd.f32 %v8018_v54, %v999_v11 }
 0x152   : > { %v6630_v30 = vpop.f32.mrf.mxu1  ;;  %v1000_v39 = vadd.f32 %v8030_v62, %v7991_v2  ;;  %v1123_v43 = vadd.f32 %v8024_v49, %v997_v18  ;;  %v998_v54 = vadd.f32 %v8034_v0, %v7994_v57  ;;  %v1453_v62 = vadd.f32 %v8042_v24, %v1248_v58 }
 0x153   : > { %v8086_v12 = vadd.f32 %v8074_v14, %v1697_v3  ;;  %v1695_v36 = vadd.f32 %v1634_v26, %v1569_v32  ;;  %v1574_v40 = vadd.f32 %v6630_v30, %v1448_v10  ;;  %v1647_v48 = vpop.f32.mrf.mxu0  ;;  %v1450_v26 = vadd.f32 %v8040_v5, %v1245_v38 }
 0x154   : > { %v1521_v33 = vpop.f32.mrf.mxu1  ;;  %v1251_v47 = vadd.f32 %v8052_v31, %v1125_v7  ;;  %v1126_v32 = vadd.f32 %v8028_v41, %v1000_v39  ;;  %v1451_v49 = vadd.f32 %v8046_v27, %v1246_v60  ;;  %v1124_v24 = vadd.f32 %v8032_v45, %v998_v54  ;;  %v10109_v27 = vld [vmem:[#allocation5_spill] sm:$0xff] }
 0x155   : > { %v8090_v15 = vadd.f32 %v8074_v14, %v1695_v36  ;;  %v1700_v59 = vadd.f32 %v6648_v44, %v1574_v40  ;;  %v1572_v50 = vadd.f32 %v1521_v33, %v1446_v29  ;;  %v6649_v55 = vpop.f32.mrf.mxu0  ;;  %v1249_v44 = vadd.f32 %v8056_v17, %v1123_v43 }
 0x156   : > { %v6631_v63 = vpop.f32.mrf.mxu1  ;;  %v1456_v6 = vadd.f32 %v8050_v13, %v1251_v47  ;;  %v1252_v40 = vadd.f32 %v8061_v21, %v1126_v32 }
 0x157   : > { %v8097_v35 = vadd.f32 %v8074_v14, %v1700_v59  ;;  %v1698_v42 = vadd.f32 %v1647_v48, %v1572_v50  ;;  %v1575_v20 = vadd.f32 %v6631_v63, %v1449_v34  ;;  %v1650_v61 = vpop.f32.mrf.mxu0  ;;  %v1454_v33 = vadd.f32 %v10109_v27, %v1249_v44  ;;  %v10110_v59 = vld [vmem:[#allocation8_spill] sm:$0xff]  ;;  %v10111_v63 = vld [vmem:[#allocation6_spill] sm:$0xff] }
 0x158   : > { %v1524_v1 = vpop.f32.mrf.mxu1  ;;  %v1250_v50 = vadd.f32 %v10110_v59, %v1124_v24  ;;  %v1457_v21 = vadd.f32 %v10111_v63, %v1252_v40 }
 0x159   : > { %v8105_v46 = vadd.f32 %v8074_v14, %v1698_v42  ;;  %v1701_v56 = vadd.f32 %v6649_v55, %v1575_v20  ;;  %v1573_v16 = vadd.f32 %v1524_v1, %v1447_v53  ;;  %v6652_v23 = vpop.f32.mrf.mxu0 }
 0x15a   : > { %v6634_v51 = vpop.f32.mrf.mxu1 }
 0x15b   : > { %v8114_v19 = vadd.f32 %v8074_v14, %v1701_v56  ;;  %v1699_v52 = vadd.f32 %v1650_v61, %v1573_v16  ;;  %v1578_v9 = vadd.f32 %v6634_v51, %v1452_v4  ;;  %v1663_v10 = vpop.f32.mrf.mxu0  ;;  %v10112_v4 = vld [vmem:[#allocation7_spill] sm:$0xff] }
 0x15c   : > { %v1537_v2 = vpop.f32.mrf.mxu1  ;;  %v1455_v1 = vadd.f32 %v10112_v4, %v1250_v50 }
 0x15d   : > { %v8122_v5 = vadd.f32 %v8074_v14, %v1699_v52  ;;  %v1704_v37 = vadd.f32 %v6652_v23, %v1578_v9  ;;  %v1576_v28 = vadd.f32 %v1537_v2, %v1450_v26  ;;  %v6653_v3 = vpop.f32.mrf.mxu0 }
 0x15e   : > { %v6635_v29 = vpop.f32.mrf.mxu1 }
 0x15f   : > { %v8128_v57 = vadd.f32 %v8074_v14, %v1704_v37  ;;  %v1702_v0 = vadd.f32 %v1663_v10, %v1576_v28  ;;  %v1579_v31 = vadd.f32 %v6635_v29, %v1453_v62  ;;  %v1666_v30 = vpop.f32.mrf.mxu0 }
 0x160   : > { %v1540_v36 = vpop.f32.mrf.mxu1 }
 0x161   : > { %v8134_v41 = vadd.f32 %v8074_v14, %v1702_v0  ;;  %v1705_v17 = vadd.f32 %v6653_v3, %v1579_v31  ;;  %v1577_v48 = vadd.f32 %v1540_v36, %v1451_v49  ;;  %v6656_v8 = vpop.f32.mrf.mxu0 }
 0x162   : > { %v6638_v34 = vpop.f32.mrf.mxu1 }
 0x163   : > { %v8139_v55 = vadd.f32 %v8074_v14, %v1705_v17  ;;  %v1703_v45 = vadd.f32 %v1666_v30, %v1577_v48  ;;  %v1582_v11 = vadd.f32 %v6638_v34, %v1456_v6  ;;  %v1679_v13 = vpop.f32.mrf.mxu0 }
 0x164   : > { %v1553_v38 = vpop.f32.mrf.mxu1 }
 0x165   : > { %v8143_v53 = vadd.f32 %v8074_v14, %v1703_v45  ;;  %v1708_v42 = vadd.f32 %v6656_v8, %v1582_v11  ;;  %v1580_v20 = vadd.f32 %v1553_v38, %v1454_v33  ;;  %v6657_v18 = vpop.f32.mrf.mxu0 }
 0x166   : > { %v6639_v61 = vpop.f32.mrf.mxu1 }
 0x167   : > { %v8147_v58 = vadd.f32 %v8074_v14, %v1708_v42  ;;  %v1706_v56 = vadd.f32 %v1679_v13, %v1580_v20  ;;  %v1583_v16 = vadd.f32 %v6639_v61, %v1457_v21  ;;  %v1682_v51 = vpop.f32.mrf.mxu0 }
 0x168   : > { %v1556_v23 = vpop.f32.mrf.mxu1 }
 0x169   : > { %v8150_v7 = vadd.f32 %v8074_v14, %v1706_v56  ;;  %v1709_v39 = vadd.f32 %v6657_v18, %v1583_v16  ;;  %v1581_v26 = vadd.f32 %v1556_v23, %v1455_v1  ;;  %1738 = sbr.rel (%p7982_p10) target bundleno = 368 (0x170), region = 60 }
 0x16b   : > { %v8153_v60 = vadd.f32 %v8074_v14, %v1709_v39  ;;  %v1707_v52 = vadd.f32 %v1682_v51, %v1581_v26 }
 0x16d   : > { %v8156_v9 = vadd.f32 %v8074_v14, %v1707_v52 }
 0x16e   : > { %vm1739_vm2 = vcmask 516096   ;;  %v7709_v10 = vmov 0.0  }
 0x16f   : > { %1740 = vst.msk [vmem:[#allocation2] sm:$0x1] %vm1739_vm2, %v7709_v10  ;;  %1741 = vst.msk [vmem:[#allocation3] sm:$0x1] %vm1739_vm2, %v7709_v10 }
 0x170 PF: > { %p6002_p11 = scmp.ne.s32.totalorder %s7687_s10, 0 }
 0x172   : > { %1744 = sbr.rel (%p6002_p11) target bundleno = 785 (0x311), region = 64 }
 0x177   : > { %v8162_v43 = vand.u32 4294901760, %v8153_v60  ;;  %v8165_v54 = vand.u32 4294901760, %v8147_v58  ;;  %v8168_v14 = vand.u32 4294901760, %v8156_v9  ;;  %v7710_v47 = vmov 0.0  }
 0x178   : > { %6658 = vmatprep.subr.mxu0 %v7710_v47  ;;  %v8172_v2 = vand.u32 4294901760, %v8150_v7  ;;  %6693 = vmatprep.subr.mxu1 %v7710_v47  ;;  %v8176_v62 = vand.u32 4294901760, %v8139_v55  ;;  %v8179_v37 = vand.u32 4294901760, %v8128_v57  ;;  %v8191_v32 = vand.u32 4294901760, %v8143_v53 }
 0x179   : > { %6659 = vmatpush3.msra.mxu0 %v8162_v43  ;;  %v8184_v28 = vsub.f32 %v8153_v60, %v8162_v43  ;;  %v8188_v3 = vsub.f32 %v8147_v58, %v8165_v54  ;;  %v8195_v44 = vsub.f32 %v8156_v9, %v8168_v14  ;;  %v8216_v6 = vand.u32 4294901760, %v8134_v41 }
 0x17a   : > { %6660 = vmatprep.subr.mxu0 %v7710_v47  ;;  %v8200_v29 = vsub.f32 %v8150_v7, %v8172_v2  ;;  %v8204_v49 = vsub.f32 %v8139_v55, %v8176_v62  ;;  %v8212_v24 = vsub.f32 %v8128_v57, %v8179_v37  ;;  %v8220_v40 = vand.u32 4294901760, %v8114_v19 }
 0x17b   : > { %6661 = vmatpush3.msra.mxu0 %v8165_v54  ;;  %v1835_v0 = vand.u32 4294901760, %v8184_v28  ;;  %v1842_v31 = vand.u32 4294901760, %v8188_v3  ;;  %v1849_v30 = vand.u32 4294901760, %v8195_v44  ;;  %v8235_v33 = vsub.f32 %v8143_v53, %v8191_v32 }
 0x17c   : > { %6662 = vmatprep.subr.mxu0 %v7710_v47  ;;  %v1856_v36 = vand.u32 4294901760, %v8200_v29  ;;  %v1863_v17 = vand.u32 4294901760, %v8204_v49  ;;  %v8239_v34 = vand.u32 4294901760, %v8097_v35  ;;  %v10082_v11 = vand.u32 4294901760, %v8212_v24 }
 0x17d   : > { %6663 = vmatpush3.msra.mxu0 %v8168_v14  ;;  %v1836_v48 = vsub.f32 %v8184_v28, %v1835_v0  ;;  %v1843_v8 = vsub.f32 %v8188_v3, %v1842_v31  ;;  %v1850_v27 = vsub.f32 %v8195_v44, %v1849_v30  ;;  %v8248_v13 = vand.u32 4294901760, %v8122_v5 }
 0x17e   : > { %6664 = vmatprep.subr.mxu0 %v7710_v47  ;;  %v1857_v45 = vsub.f32 %v8200_v29, %v1856_v36  ;;  %v8252_v38 = vsub.f32 %v8134_v41, %v8216_v6  ;;  %v1864_v21 = vsub.f32 %v8204_v49, %v1863_v17  ;;  %v10080_v42 = vand.u32 4294901760, %v8235_v33 }
 0x17f   : > { %6665 = vmatpush3.msra.mxu0 %v8172_v2  ;;  %v1837_v59 = vand.u32 4294901760, %v1836_v48  ;;  %v1844_v50 = vand.u32 4294901760, %v1843_v8  ;;  %v1851_v63 = vand.u32 4294901760, %v1850_v27  ;;  %v8261_v20 = vsub.f32 %v8114_v19, %v8220_v40 }
 0x180   : > { %6666 = vmatprep.subr.mxu0 %v7710_v47  ;;  %v8266_v61 = vand.u32 4294901760, %v8105_v46  ;;  %v1858_v18 = vand.u32 4294901760, %v1857_v45  ;;  %v1871_v4 = vsub.f32 %v8212_v24, %v10082_v11  ;;  %v10079_v1 = vand.u32 4294901760, %v8252_v38 }
 0x181   : > { %6667 = vmatpush3.msra.mxu0 %v8176_v62  ;;  %6694 = vmatpush3.msra.mxu1 %v1837_v59  ;;  %v8275_v56 = vsub.f32 %v8097_v35, %v8239_v34  ;;  %v1865_v16 = vand.u32 4294901760, %v1864_v21  ;;  %v1878_v23 = vsub.f32 %v8235_v33, %v10080_v42  ;;  %v10077_v39 = vand.u32 4294901760, %v8261_v20 }
 0x182   : > { %6668 = vmatprep.subr.mxu0 %v7710_v47  ;;  %6695 = vmatprep.subr.mxu1 %v7710_v47  ;;  %v8286_v26 = vsub.f32 %v8122_v5, %v8248_v13  ;;  %v8291_v51 = vand.u32 4294901760, %v8086_v12  ;;  %v1872_v52 = vand.u32 4294901760, %v1871_v4  ;;  %v1885_v10 = vsub.f32 %v8252_v38, %v10079_v1 }
 0x183   : > { %6669 = vmatpush3.msra.mxu0 %v8179_v37  ;;  %6696 = vmatpush3.msra.mxu1 %v1844_v50  ;;  %v10078_v48 = vand.u32 4294901760, %v8275_v56  ;;  %v8300_v8 = vsub.f32 %v8105_v46, %v8266_v61  ;;  %v8305_v27 = vand.u32 4294901760, %v8078_v22  ;;  %v1879_v59 = vand.u32 4294901760, %v1878_v23 }
 0x184   : > { %6670 = vmatprep.subr.mxu0 %v7710_v47  ;;  %6697 = vmatprep.subr.mxu1 %v7710_v47  ;;  %v1892_v50 = vsub.f32 %v8261_v20, %v10077_v39  ;;  %v10081_v45 = vand.u32 4294901760, %v8286_v26  ;;  %v8319_v21 = vsub.f32 %v8086_v12, %v8291_v51  ;;  %v8329_v23 = vand.u32 4294901760, %v8082_v25 }
 0x185   : > { %6671 = vmatpush3.msra.mxu0 %v8191_v32  ;;  %6698 = vmatpush3.msra.mxu1 %v1851_v63  ;;  %v8315_v63 = vand.u32 4294901760, %v8090_v15  ;;  %v1899_v4 = vsub.f32 %v8275_v56, %v10078_v48  ;;  %v8333_v39 = vsub.f32 %v8078_v22, %v8305_v27  ;;  %vm7711_vm3 = vmmov 0  }
 0x186   : > { %6672 = vmatprep.subr.mxu0 %v7710_v47  ;;  %6699 = vmatprep.subr.mxu1 %v7710_v47  ;;  %v10084_v48 = vand.u32 4294901760, %v8319_v21  ;;  %vm2375_vm4 = vcmask 516096  }
 0x187   : > { %6673 = vmatpush3.msra.mxu0 %v8216_v6  ;;  %6700 = vmatpush3.msra.mxu1 %v1858_v18  ;;  %v1886_v18 = vand.u32 4294901760, %v1885_v10  ;;  %v1906_v10 = vsub.f32 %v8286_v26, %v10081_v45  ;;  %v8344_v1 = vsub.f32 %v8090_v15, %v8315_v63  ;;  %v1900_v42 = vand.u32 4294901760, %v1899_v4 }
 0x188   : > { %6674 = vmatprep.subr.mxu0 %v7710_v47  ;;  %6701 = vmatprep.subr.mxu1 %v7710_v47  ;;  %v8355_v45 = vsub.f32 %v8082_v25, %v8329_v23 }
 0x189   : > { %6675 = vmatpush3.msra.mxu0 %v8220_v40  ;;  %6702 = vmatpush3.msra.mxu1 %v1865_v16  ;;  %v10083_v16 = vand.u32 4294901760, %v8300_v8  ;;  %v1907_v11 = vand.u32 4294901760, %v1906_v10  ;;  %v1933_v4 = vand.u32 4294901760, %v8344_v1 }
 0x18a   : > { %6676 = vmatprep.subr.mxu0 %v7710_v47  ;;  %6703 = vmatprep.subr.mxu1 %v7710_v47  ;;  %v1940_v10 = vand.u32 4294901760, %v8355_v45 }
 0x18b   : > { %6677 = vmatpush3.msra.mxu0 %v8239_v34  ;;  %6704 = vmatpush3.msra.mxu1 %v1872_v52  ;;  %v1893_v52 = vand.u32 4294901760, %v1892_v50  ;;  %v1926_v50 = vand.u32 4294901760, %v8333_v39 }
 0x18c   : > { %6678 = vmatprep.subr.mxu0 %v7710_v47  ;;  %6705 = vmatprep.subr.mxu1 %v7710_v47 }
 0x18d   : > { %6679 = vmatpush3.msra.mxu0 %v8248_v13  ;;  %6706 = vmatpush3.msra.mxu1 %v1879_v59  ;;  %v1913_v59 = vsub.f32 %v8300_v8, %v10083_v16 }
 0x18e   : > { %6680 = vmatprep.subr.mxu0 %v7710_v47  ;;  %6707 = vmatprep.subr.mxu1 %v7710_v47 }
 0x18f   : > { %6681 = vmatpush3.msra.mxu0 %v8266_v61  ;;  %6708 = vmatpush3.msra.mxu1 %v1886_v18  ;;  %v1920_v18 = vsub.f32 %v8319_v21, %v10084_v48  ;;  %v1914_v16 = vand.u32 4294901760, %v1913_v59 }
 0x190   : > { %6682 = vmatprep.subr.mxu0 %v7710_v47  ;;  %6709 = vmatprep.subr.mxu1 %v7710_v47 }
 0x191   : > { %6683 = vmatpush3.msra.mxu0 %v8291_v51  ;;  %6710 = vmatpush3.msra.mxu1 %v1893_v52  ;;  %v1927_v52 = vsub.f32 %v8333_v39, %v1926_v50  ;;  %v1921_v48 = vand.u32 4294901760, %v1920_v18 }
 0x192   : > { %6684 = vmatprep.subr.mxu0 %v7710_v47  ;;  %6711 = vmatprep.subr.mxu1 %v7710_v47 }
 0x193   : > { %6685 = vmatpush3.msra.mxu0 %v8305_v27  ;;  %6712 = vmatpush3.msra.mxu1 %v1900_v42  ;;  %v1934_v42 = vsub.f32 %v8344_v1, %v1933_v4  ;;  %v1928_v59 = vand.u32 4294901760, %v1927_v52 }
 0x194   : > { %6686 = vmatprep.subr.mxu0 %v7710_v47  ;;  %6713 = vmatprep.subr.mxu1 %v7710_v47 }
 0x195   : > { %6687 = vmatpush3.msra.mxu0 %v8315_v63  ;;  %6714 = vmatpush3.msra.mxu1 %v1907_v11  ;;  %v1941_v11 = vsub.f32 %v8355_v45, %v1940_v10  ;;  %v1935_v18 = vand.u32 4294901760, %v1934_v42 }
 0x196   : > { %6688 = vmatprep.subr.mxu0 %v7710_v47  ;;  %6715 = vmatprep.subr.mxu1 %v7710_v47 }
 0x197   : > { %6689 = vmatpush3.msra.mxu0 %v8329_v23  ;;  %6716 = vmatpush3.msra.mxu1 %v1914_v16  ;;  %v1942_v16 = vand.u32 4294901760, %v1941_v11 }
 0x198   : > { %6690 = vmatprep.mubr.msk.f32.mxu0 %vm7711_vm3, %v7710_v47  ;;  %6717 = vmatprep.subr.mxu1 %v7710_v47 }
 0x199   : > { %6728 = vmatprep.subr.mxu0 %v7710_v47  ;;  %6691 = vmatmul.mubr.f32.vlgmr.msra.gmra.mxu0 %v7710_v47 }
 0x19a   : > { %6718 = vmatpush3.msra.mxu1 %v1921_v48  ;;  %6729 = vmatpush3.msra.mxu0 %v8184_v28  ;;  %v7712_v48 = vmov 1.0   ;;  %v10113_v28 = vand.u32 4294901760, %v8212_v24 }
 0x19b   : > { %6719 = vmatprep.subr.mxu1 %v7710_v47  ;;  %6730 = vmatprep.subr.mxu0 %v7710_v47 }
 0x19c   : > { %6720 = vmatpush3.msra.mxu1 %v1928_v59  ;;  %6731 = vmatpush3.msra.mxu0 %v8188_v3  ;;  %v10114_v3 = vand.u32 4294901760, %v8235_v33 }
 0x19d   : > { %6721 = vmatprep.subr.mxu1 %v7710_v47  ;;  %6732 = vmatprep.subr.mxu0 %v7710_v47 }
 0x19e   : > { %6722 = vmatpush3.msra.mxu1 %v1935_v18  ;;  %6733 = vmatpush3.msra.mxu0 %v8195_v44  ;;  %v10118_v44 = vand.u32 4294901760, %v8286_v26 }
 0x19f   : > { %6723 = vmatprep.subr.mxu1 %v7710_v47  ;;  %6734 = vmatprep.subr.mxu0 %v7710_v47 }
 0x1a0   : > { %6724 = vmatpush3.msra.mxu1 %v1942_v16  ;;  %6725 = vmatprep.mubr.msk.f32.mxu1 %vm7711_vm3, %v7710_v47 }
 0x1a1   : > { %6735 = vmatpush3.msra.mxu0 %v8200_v29  ;;  %6726 = vmatmul.mubr.f32.vlgmr.msra.gmra.mxu1 %v7712_v48  ;;  %v10119_v29 = vand.u32 4294901760, %v8300_v8 }
 0x1a2   : > { %6736 = vmatprep.subr.mxu0 %v7710_v47  ;;  %6763 = vmatprep.subr.mxu1 %v7710_v47 }
 0x1a3   : > { %6737 = vmatpush3.msra.mxu0 %v8204_v49  ;;  %6764 = vmatpush3.msra.mxu1 %v8162_v43 }
 0x1a4   : > { %6738 = vmatprep.subr.mxu0 %v7710_v47  ;;  %6765 = vmatprep.subr.mxu1 %v7710_v47 }
 0x1a5   : > { %6739 = vmatpush3.msra.mxu0 %v8212_v24  ;;  %6766 = vmatpush3.msra.mxu1 %v8165_v54 }
 0x1a6   : > { %6740 = vmatprep.subr.mxu0 %v7710_v47  ;;  %6767 = vmatprep.subr.mxu1 %v7710_v47 }
 0x1a7   : > { %6741 = vmatpush3.msra.mxu0 %v8235_v33  ;;  %6768 = vmatpush3.msra.mxu1 %v8168_v14 }
 0x1a8   : > { %6742 = vmatprep.subr.mxu0 %v7710_v47  ;;  %6769 = vmatprep.subr.mxu1 %v7710_v47 }
 0x1a9   : > { %6743 = vmatpush3.msra.mxu0 %v8252_v38  ;;  %6770 = vmatpush3.msra.mxu1 %v8172_v2 }
 0x1aa   : > { %6744 = vmatprep.subr.mxu0 %v7710_v47  ;;  %6771 = vmatprep.subr.mxu1 %v7710_v47 }
 0x1ab   : > { %6745 = vmatpush3.msra.mxu0 %v8261_v20  ;;  %6772 = vmatpush3.msra.mxu1 %v8176_v62 }
 0x1ac   : > { %6746 = vmatprep.subr.mxu0 %v7710_v47  ;;  %6773 = vmatprep.subr.mxu1 %v7710_v47 }
 0x1ad   : > { %6747 = vmatpush3.msra.mxu0 %v8275_v56  ;;  %6774 = vmatpush3.msra.mxu1 %v8179_v37 }
 0x1ae   : > { %6748 = vmatprep.subr.mxu0 %v7710_v47  ;;  %6775 = vmatprep.subr.mxu1 %v7710_v47 }
 0x1af   : > { %6749 = vmatpush3.msra.mxu0 %v8286_v26  ;;  %6776 = vmatpush3.msra.mxu1 %v8191_v32 }
 0x1b0   : > { %6750 = vmatprep.subr.mxu0 %v7710_v47  ;;  %6777 = vmatprep.subr.mxu1 %v7710_v47 }
 0x1b1   : > { %6751 = vmatpush3.msra.mxu0 %v8300_v8  ;;  %6778 = vmatpush3.msra.mxu1 %v8216_v6 }
 0x1b2   : > { %6752 = vmatprep.subr.mxu0 %v7710_v47  ;;  %6779 = vmatprep.subr.mxu1 %v7710_v47 }
 0x1b3   : > { %6753 = vmatpush3.msra.mxu0 %v8319_v21  ;;  %6780 = vmatpush3.msra.mxu1 %v8220_v40 }
 0x1b4   : > { %6754 = vmatprep.subr.mxu0 %v7710_v47  ;;  %6781 = vmatprep.subr.mxu1 %v7710_v47 }
 0x1b5   : > { %6755 = vmatpush3.msra.mxu0 %v8333_v39  ;;  %6782 = vmatpush3.msra.mxu1 %v8239_v34 }
 0x1b6   : > { %6756 = vmatprep.subr.mxu0 %v7710_v47  ;;  %6783 = vmatprep.subr.mxu1 %v7710_v47 }
 0x1b7   : > { %6757 = vmatpush3.msra.mxu0 %v8344_v1  ;;  %6784 = vmatpush3.msra.mxu1 %v8248_v13  ;;  %v2386_v1 = vmul.f32 %v8134_v41, %v8134_v41 }
 0x1b8   : > { %6758 = vmatprep.subr.mxu0 %v7710_v47  ;;  %6785 = vmatprep.subr.mxu1 %v7710_v47 }
 0x1b9   : > { %6759 = vmatpush3.msra.mxu0 %v8355_v45  ;;  %6760 = vmatprep.mubr.msk.f32.mxu0 %vm7711_vm3, %v7710_v47 }
 0x1ba   : > { %6786 = vmatpush3.msra.mxu1 %v8266_v61  ;;  %6761 = vmatmul.mubr.f32.vlgmr.msra.gmra.mxu0 %v7710_v47 }
 0x1bb   : > { %6787 = vmatprep.subr.mxu1 %v7710_v47  ;;  %6798 = vmatprep.subr.mxu0 %v7710_v47 }
 0x1bc   : > { %6788 = vmatpush3.msra.mxu1 %v8291_v51  ;;  %6799 = vmatpush3.msra.mxu0 %v1835_v0  ;;  %v10120_v0 = vand.u32 4294901760, %v8319_v21  ;;  %v8597_v21 = vand.u32 4294901760, %v2386_v1 }
 0x1bd   : > { %6789 = vmatprep.subr.mxu1 %v7710_v47  ;;  %6800 = vmatprep.subr.mxu0 %v7710_v47 }
 0x1be   : > { %6790 = vmatpush3.msra.mxu1 %v8305_v27  ;;  %6801 = vmatpush3.msra.mxu0 %v1842_v31  ;;  %v8629_v16 = vsub.f32 %v2386_v1, %v8597_v21  ;;  %v2380_v1 = vmul.f32 %v8078_v22, %v8078_v22 }
 0x1bf   : > { %6791 = vmatprep.subr.mxu1 %v7710_v47  ;;  %6802 = vmatprep.subr.mxu0 %v7710_v47 }
 0x1c0   : > { %6792 = vmatpush3.msra.mxu1 %v8315_v63  ;;  %6803 = vmatpush3.msra.mxu0 %v1849_v30 }
 0x1c1   : > { %6793 = vmatprep.subr.mxu1 %v7710_v47  ;;  %6804 = vmatprep.subr.mxu0 %v7710_v47 }
 0x1c2   : > { %6794 = vmatpush3.msra.mxu1 %v8329_v23  ;;  %6795 = vmatprep.mubr.msk.f32.mxu1 %vm7711_vm3, %v7710_v47 }
 0x1c3   : > { %6805 = vmatpush3.msra.mxu0 %v1856_v36  ;;  %6796 = vmatmul.mubr.f32.vlgmr.msra.gmra.mxu1 %v7710_v47 }
 0x1c4   : > { %6806 = vmatprep.subr.mxu0 %v7710_v47  ;;  %6833 = vmatprep.subr.mxu1 %v7710_v47 }
 0x1c5   : > { %6807 = vmatpush3.msra.mxu0 %v1863_v17  ;;  %6834 = vmatpush3.msra.mxu1 %v8162_v43  ;;  %v10115_v43 = vand.u32 4294901760, %v8252_v38  ;;  %v2388_v17 = vmul.f32 %v8128_v57, %v8128_v57 }
 0x1c6   : > { %6808 = vmatprep.subr.mxu0 %v7710_v47  ;;  %6835 = vmatprep.subr.mxu1 %v7710_v47 }
 0x1c7   : > { %6809 = vmatpush3.msra.mxu0 %v10113_v28  ;;  %6836 = vmatpush3.msra.mxu1 %v8165_v54  ;;  %v10116_v54 = vand.u32 4294901760, %v8261_v20 }
 0x1c8   : > { %6810 = vmatprep.subr.mxu0 %v7710_v47  ;;  %6837 = vmatprep.subr.mxu1 %v7710_v47 }
 0x1c9   : > { %6811 = vmatpush3.msra.mxu0 %v10114_v3  ;;  %6838 = vmatpush3.msra.mxu1 %v8168_v14  ;;  %v10117_v14 = vand.u32 4294901760, %v8275_v56  ;;  %v8577_v56 = vand.u32 4294901760, %v2388_v17 }
 0x1ca   : > { %6812 = vmatprep.subr.mxu0 %v7710_v47  ;;  %6839 = vmatprep.subr.mxu1 %v7710_v47 }
 0x1cb   : > { %6813 = vmatpush3.msra.mxu0 %v10115_v43  ;;  %6840 = vmatpush3.msra.mxu1 %v8172_v2  ;;  %v2393_v2 = vmul.f32 %v8153_v60, %v8153_v60 }
 0x1cc   : > { %6814 = vmatprep.subr.mxu0 %v7710_v47  ;;  %6841 = vmatprep.subr.mxu1 %v7710_v47 }
 0x1cd   : > { %6815 = vmatpush3.msra.mxu0 %v10116_v54  ;;  %6842 = vmatpush3.msra.mxu1 %v8176_v62  ;;  %v2392_v62 = vmul.f32 %v8147_v58, %v8147_v58  ;;  %v8519_v49 = vand.u32 4294901760, %v2393_v2 }
 0x1ce   : > { %6816 = vmatprep.subr.mxu0 %v7710_v47  ;;  %6843 = vmatprep.subr.mxu1 %v7710_v47 }
 0x1cf   : > { %6817 = vmatpush3.msra.mxu0 %v10117_v14  ;;  %6844 = vmatpush3.msra.mxu1 %v8179_v37  ;;  %v2391_v37 = vmul.f32 %v8156_v9, %v8156_v9  ;;  %v8528_v31 = vand.u32 4294901760, %v2392_v62  ;;  %v8538_v24 = vsub.f32 %v2393_v2, %v8519_v49 }
 0x1d0   : > { %6818 = vmatprep.subr.mxu0 %v7710_v47  ;;  %6845 = vmatprep.subr.mxu1 %v7710_v47 }
 0x1d1   : > { %6819 = vmatpush3.msra.mxu0 %v10118_v44  ;;  %6846 = vmatpush3.msra.mxu1 %v8191_v32  ;;  %v2390_v32 = vmul.f32 %v8150_v7, %v8150_v7  ;;  %v8532_v30 = vand.u32 4294901760, %v2391_v37  ;;  %v2483_v38 = vand.u32 4294901760, %v8538_v24 }
 0x1d2   : > { %6820 = vmatprep.subr.mxu0 %v7710_v47  ;;  %6847 = vmatprep.subr.mxu1 %v7710_v47 }
 0x1d3   : > { %6821 = vmatpush3.msra.mxu0 %v10119_v29  ;;  %6848 = vmatpush3.msra.mxu1 %v8216_v6  ;;  %v2389_v6 = vmul.f32 %v8139_v55, %v8139_v55  ;;  %v8544_v36 = vand.u32 4294901760, %v2390_v32  ;;  %v8557_v33 = vsub.f32 %v2391_v37, %v8532_v30  ;;  %v2484_v45 = vsub.f32 %v8538_v24, %v2483_v38 }
 0x1d4   : > { %6822 = vmatprep.subr.mxu0 %v7710_v47  ;;  %6849 = vmatprep.subr.mxu1 %v7710_v47 }
 0x1d5   : > { %6823 = vmatpush3.msra.mxu0 %v10120_v0  ;;  %6850 = vmatpush3.msra.mxu1 %v8220_v40  ;;  %v8550_v40 = vsub.f32 %v2392_v62, %v8528_v31  ;;  %v8571_v20 = vsub.f32 %v2390_v32, %v8544_v36  ;;  %v2497_v26 = vand.u32 4294901760, %v8557_v33  ;;  %v2485_v59 = vand.u32 4294901760, %v2484_v45 }
 0x1d6   : > { %6824 = vmatprep.subr.mxu0 %v7710_v47  ;;  %6851 = vmatprep.subr.mxu1 %v7710_v47  ;;  %v2381_v32 = vmul.f32 %v8086_v12, %v8086_v12 }
 0x1d7   : > { %6825 = vmatpush3.msra.mxu0 %v1926_v50  ;;  %6852 = vmatpush3.msra.mxu1 %v8239_v34  ;;  %v2387_v34 = vmul.f32 %v8143_v53, %v8143_v53  ;;  %v2490_v39 = vand.u32 4294901760, %v8550_v40  ;;  %v10091_v50 = vand.u32 4294901760, %v8571_v20  ;;  %v2498_v42 = vsub.f32 %v8557_v33, %v2497_v26 }
 0x1d8   : > { %6826 = vmatprep.subr.mxu0 %v7710_v47  ;;  %6853 = vmatprep.subr.mxu1 %v7710_v47 }
 0x1d9   : > { %6827 = vmatpush3.msra.mxu0 %v1933_v4  ;;  %6854 = vmatpush3.msra.mxu1 %v8248_v13  ;;  %v8565_v13 = vand.u32 4294901760, %v2389_v6  ;;  %v8603_v4 = vsub.f32 %v2388_v17, %v8577_v56  ;;  %v2491_v52 = vsub.f32 %v8550_v40, %v2490_v39  ;;  %v2505_v28 = vsub.f32 %v8571_v20, %v10091_v50 }
 0x1da   : > { %6828 = vmatprep.subr.mxu0 %v7710_v47  ;;  %6855 = vmatprep.subr.mxu1 %v7710_v47  ;;  %v2499_v14 = vand.u32 4294901760, %v2498_v42  ;;  %v8681_v42 = vand.u32 4294901760, %v2381_v32 }
 0x1db   : > { %6829 = vmatpush3.msra.mxu0 %v1940_v10  ;;  %6830 = vmatprep.mubr.msk.f32.mxu0 %vm7711_vm3, %v7710_v47  ;;  %v8588_v8 = vsub.f32 %v2389_v6, %v8565_v13  ;;  %v2492_v3 = vand.u32 4294901760, %v2491_v52  ;;  %v10087_v54 = vand.u32 4294901760, %v8603_v4  ;;  %v2506_v29 = vand.u32 4294901760, %v2505_v28 }
 0x1dc   : > { %6856 = vmatpush3.msra.mxu1 %v8266_v61  ;;  %6831 = vmatmul.mubr.f32.vlgmr.msra.gmra.mxu0 %v7712_v48  ;;  %v8582_v61 = vand.u32 4294901760, %v2387_v34 }
 0x1dd   : > { %6857 = vmatprep.subr.mxu1 %v7710_v47  ;;  %6868 = vmatprep.subr.mxu0 %v7710_v47  ;;  %v10089_v18 = vand.u32 4294901760, %v8588_v8  ;;  %v2519_v6 = vsub.f32 %v8603_v4, %v10087_v54 }
 0x1de   : > { %6858 = vmatpush3.msra.mxu1 %v8291_v51  ;;  %6869 = vmatpush3.msra.mxu0 %v8519_v49  ;;  %v2385_v51 = vmul.f32 %v8114_v19, %v8114_v19  ;;  %v8613_v10 = vsub.f32 %v2387_v34, %v8582_v61  ;;  %v10086_v34 = vand.u32 4294901760, %v8629_v16 }
 0x1df   : > { %6859 = vmatprep.subr.mxu1 %v7710_v47  ;;  %6870 = vmatprep.subr.mxu0 %v7710_v47  ;;  %v2512_v44 = vsub.f32 %v8588_v8, %v10089_v18 }
 0x1e0   : > { %6860 = vmatpush3.msra.mxu1 %v8305_v27  ;;  %6871 = vmatpush3.msra.mxu0 %v8528_v31  ;;  %v2384_v27 = vmul.f32 %v8097_v35, %v8097_v35  ;;  %v8620_v11 = vand.u32 4294901760, %v2385_v51  ;;  %v10085_v37 = vand.u32 4294901760, %v8613_v10 }
 0x1e1   : > { %6861 = vmatprep.subr.mxu1 %v7710_v47  ;;  %6872 = vmatprep.subr.mxu0 %v7710_v47  ;;  %v2513_v45 = vand.u32 4294901760, %v2512_v44  ;;  %v8695_v44 = vand.u32 4294901760, %v2380_v1 }
 0x1e2   : > { %6862 = vmatpush3.msra.mxu1 %v8315_v63  ;;  %6873 = vmatpush3.msra.mxu0 %v8532_v30  ;;  %v2383_v63 = vmul.f32 %v8122_v5, %v8122_v5  ;;  %v8636_v43 = vand.u32 4294901760, %v2384_v27  ;;  %v8645_v2 = vsub.f32 %v2385_v51, %v8620_v11  ;;  %v2526_v52 = vsub.f32 %v8613_v10, %v10085_v37 }
 0x1e3   : > { %6863 = vmatprep.subr.mxu1 %v7710_v47  ;;  %6874 = vmatprep.subr.mxu0 %v7710_v47  ;;  %v2378_v37 = vmul.f32 %v8082_v25, %v8082_v25  ;;  %v8719_v18 = vsub.f32 %v2380_v1, %v8695_v44 }
 0x1e4   : > { %6864 = vmatpush3.msra.mxu1 %v8329_v23  ;;  %6865 = vmatprep.mubr.msk.f32.mxu1 %vm7711_vm3, %v7710_v47  ;;  %v2382_v23 = vmul.f32 %v8105_v46, %v8105_v46  ;;  %v8650_v62 = vand.u32 4294901760, %v2383_v63  ;;  %v8659_v0 = vsub.f32 %v2384_v27, %v8636_v43  ;;  %v10088_v27 = vand.u32 4294901760, %v8645_v2 }
 0x1e5   : > { %6875 = vmatpush3.msra.mxu0 %v8544_v36  ;;  %6866 = vmatmul.mubr.f32.vlgmr.msra.gmra.mxu1 %v7712_v48 }
 0x1e6   : > { %6876 = vmatprep.subr.mxu0 %v7710_v47  ;;  %6903 = vmatprep.subr.mxu1 %v7710_v47  ;;  %v8664_v17 = vand.u32 4294901760, %v2382_v23  ;;  %v8673_v51 = vsub.f32 %v2383_v63, %v8650_v62  ;;  %v2520_v63 = vand.u32 4294901760, %v2519_v6 }
 0x1e7   : > { %6877 = vmatpush3.msra.mxu0 %v8565_v13  ;;  %6904 = vmatpush3.msra.mxu1 %v2485_v59  ;;  %v2379_v59 = vmul.f32 %v8090_v15, %v8090_v15 }
 0x1e8   : > { %6878 = vmatprep.subr.mxu0 %v7710_v47  ;;  %6905 = vmatprep.subr.mxu1 %v7710_v47  ;;  %v8687_v28 = vsub.f32 %v2382_v23, %v8664_v17  ;;  %v2527_v23 = vand.u32 4294901760, %v2526_v52  ;;  %v10092_v6 = vand.u32 4294901760, %v8673_v51 }
 0x1e9   : > { %6879 = vmatpush3.msra.mxu0 %v8577_v56  ;;  %6906 = vmatpush3.msra.mxu1 %v2492_v3  ;;  %v2533_v3 = vsub.f32 %v8629_v16, %v10086_v34  ;;  %v8707_v34 = vsub.f32 %v2381_v32, %v8681_v42  ;;  %v8709_v54 = vand.u32 4294901760, %v2379_v59  ;;  %v8721_v32 = vand.u32 4294901760, %v2378_v37 }
 0x1ea   : > { %6880 = vmatprep.subr.mxu0 %v7710_v47  ;;  %6907 = vmatprep.subr.mxu1 %v7710_v47 }
 0x1eb   : > { %6881 = vmatpush3.msra.mxu0 %v8582_v61  ;;  %6908 = vmatpush3.msra.mxu1 %v2499_v14  ;;  %v10090_v14 = vand.u32 4294901760, %v8659_v0  ;;  %v10093_v1 = vand.u32 4294901760, %v8707_v34 }
 0x1ec   : > { %6882 = vmatprep.subr.mxu0 %v7710_v47  ;;  %6909 = vmatprep.subr.mxu1 %v7710_v47 }
 0x1ed   : > { %6883 = vmatpush3.msra.mxu0 %v8597_v21  ;;  %6910 = vmatpush3.msra.mxu1 %v2506_v29  ;;  %v2540_v29 = vsub.f32 %v8645_v2, %v10088_v27  ;;  %v2547_v52 = vsub.f32 %v8659_v0, %v10090_v14  ;;  %v2560_v27 = vand.u32 4294901760, %v8687_v28  ;;  %v8730_v14 = vsub.f32 %v2379_v59, %v8709_v54 }
 0x1ee   : > { %6884 = vmatprep.subr.mxu0 %v7710_v47  ;;  %6911 = vmatprep.subr.mxu1 %v7710_v47  ;;  %v2574_v59 = vand.u32 4294901760, %v8719_v18 }
 0x1ef   : > { %6885 = vmatpush3.msra.mxu0 %v8620_v11  ;;  %6912 = vmatpush3.msra.mxu1 %v2513_v45  ;;  %v2534_v45 = vand.u32 4294901760, %v2533_v3  ;;  %v2554_v3 = vsub.f32 %v8673_v51, %v10092_v6  ;;  %v2548_v50 = vand.u32 4294901760, %v2547_v52  ;;  %v2581_v52 = vand.u32 4294901760, %v8730_v14 }
 0x1f0   : > { %6886 = vmatprep.subr.mxu0 %v7710_v47  ;;  %6913 = vmatprep.subr.mxu1 %v7710_v47 }
 0x1f1   : > { %6887 = vmatpush3.msra.mxu0 %v8636_v43  ;;  %6914 = vmatpush3.msra.mxu1 %v2520_v63  ;;  %v2541_v63 = vand.u32 4294901760, %v2540_v29  ;;  %v8740_v29 = vsub.f32 %v2378_v37, %v8721_v32  ;;  %v2555_v6 = vand.u32 4294901760, %v2554_v3 }
 0x1f2   : > { %6888 = vmatprep.subr.mxu0 %v7710_v47  ;;  %6915 = vmatprep.subr.mxu1 %v7710_v47 }
 0x1f3   : > { %6889 = vmatpush3.msra.mxu0 %v8650_v62  ;;  %6916 = vmatpush3.msra.mxu1 %v2527_v23  ;;  %v2561_v23 = vsub.f32 %v8687_v28, %v2560_v27  ;;  %v2588_v3 = vand.u32 4294901760, %v8740_v29 }
 0x1f4   : > { %6890 = vmatprep.subr.mxu0 %v7710_v47  ;;  %6917 = vmatprep.subr.mxu1 %v7710_v47 }
 0x1f5   : > { %6891 = vmatpush3.msra.mxu0 %v8664_v17  ;;  %6918 = vmatpush3.msra.mxu1 %v2534_v45  ;;  %v2568_v45 = vsub.f32 %v8707_v34, %v10093_v1  ;;  %v2562_v37 = vand.u32 4294901760, %v2561_v23 }
 0x1f6   : > { %6892 = vmatprep.subr.mxu0 %v7710_v47  ;;  %6919 = vmatprep.subr.mxu1 %v7710_v47 }
 0x1f7   : > { %6893 = vmatpush3.msra.mxu0 %v8681_v42  ;;  %6920 = vmatpush3.msra.mxu1 %v2541_v63  ;;  %v2575_v63 = vsub.f32 %v8719_v18, %v2574_v59  ;;  %v2569_v1 = vand.u32 4294901760, %v2568_v45 }
 0x1f8   : > { %6894 = vmatprep.subr.mxu0 %v7710_v47  ;;  %6921 = vmatprep.subr.mxu1 %v7710_v47 }
 0x1f9   : > { %6895 = vmatpush3.msra.mxu0 %v8695_v44  ;;  %6922 = vmatpush3.msra.mxu1 %v2548_v50  ;;  %v2582_v50 = vsub.f32 %v8730_v14, %v2581_v52  ;;  %v2576_v23 = vand.u32 4294901760, %v2575_v63 }
 0x1fa   : > { %6896 = vmatprep.subr.mxu0 %v7710_v47  ;;  %6923 = vmatprep.subr.mxu1 %v7710_v47 }
 0x1fb   : > { %6897 = vmatpush3.msra.mxu0 %v8709_v54  ;;  %6924 = vmatpush3.msra.mxu1 %v2555_v6  ;;  %v2589_v6 = vsub.f32 %v8740_v29, %v2588_v3  ;;  %v2583_v45 = vand.u32 4294901760, %v2582_v50 }
 0x1fc   : > { %6898 = vmatprep.subr.mxu0 %v7710_v47  ;;  %6925 = vmatprep.subr.mxu1 %v7710_v47 }
 0x1fd   : > { %6899 = vmatpush3.msra.mxu0 %v8721_v32  ;;  %6926 = vmatpush3.msra.mxu1 %v2562_v37  ;;  %v2590_v37 = vand.u32 4294901760, %v2589_v6 }
 0x1fe   : > { %6900 = vmatprep.mubr.msk.f32.mxu0 %vm7711_vm3, %v7710_v47  ;;  %6927 = vmatprep.subr.mxu1 %v7710_v47 }
 0x1ff   : > { %6938 = vmatprep.subr.mxu0 %v7710_v47  ;;  %6901 = vmatmul.mubr.f32.vlgmr.msra.gmra.mxu0 %v7710_v47 }
 0x200   : > { %6928 = vmatpush3.msra.mxu1 %v2569_v1  ;;  %6939 = vmatpush3.msra.mxu0 %v8538_v24  ;;  %v10121_v24 = vand.u32 4294901760, %v8571_v20 }
 0x201   : > { %6929 = vmatprep.subr.mxu1 %v7710_v47  ;;  %6940 = vmatprep.subr.mxu0 %v7710_v47 }
 0x202   : > { %6930 = vmatpush3.msra.mxu1 %v2576_v23  ;;  %6941 = vmatpush3.msra.mxu0 %v8550_v40  ;;  %v10122_v40 = vand.u32 4294901760, %v8588_v8 }
 0x203   : > { %6931 = vmatprep.subr.mxu1 %v7710_v47  ;;  %6942 = vmatprep.subr.mxu0 %v7710_v47 }
 0x204   : > { %6932 = vmatpush3.msra.mxu1 %v2583_v45  ;;  %6943 = vmatpush3.msra.mxu0 %v8557_v33  ;;  %v10123_v33 = vand.u32 4294901760, %v8603_v4 }
 0x205   : > { %6933 = vmatprep.subr.mxu1 %v7710_v47  ;;  %6944 = vmatprep.subr.mxu0 %v7710_v47 }
 0x206   : > { %6934 = vmatpush3.msra.mxu1 %v2590_v37  ;;  %6935 = vmatprep.mubr.msk.f32.mxu1 %vm7711_vm3, %v7710_v47 }
 0x207   : > { %6945 = vmatpush3.msra.mxu0 %v8571_v20  ;;  %6936 = vmatmul.mubr.f32.vlgmr.msra.gmra.mxu1 %v7712_v48 }
 0x208   : > { %6946 = vmatprep.subr.mxu0 %v7710_v47  ;;  %6973 = vmatprep.subr.mxu1 %v7710_v47 }
 0x209   : > { %6947 = vmatpush3.msra.mxu0 %v8588_v8  ;;  %6974 = vmatpush3.msra.mxu1 %v8519_v49 }
 0x20a   : > { %6948 = vmatprep.subr.mxu0 %v7710_v47  ;;  %6975 = vmatprep.subr.mxu1 %v7710_v47 }
 0x20b   : > { %6949 = vmatpush3.msra.mxu0 %v8603_v4  ;;  %6976 = vmatpush3.msra.mxu1 %v8528_v31 }
 0x20c   : > { %6950 = vmatprep.subr.mxu0 %v7710_v47  ;;  %6977 = vmatprep.subr.mxu1 %v7710_v47 }
 0x20d   : > { %6951 = vmatpush3.msra.mxu0 %v8613_v10  ;;  %6978 = vmatpush3.msra.mxu1 %v8532_v30 }
 0x20e   : > { %6952 = vmatprep.subr.mxu0 %v7710_v47  ;;  %6979 = vmatprep.subr.mxu1 %v7710_v47 }
 0x20f   : > { %6953 = vmatpush3.msra.mxu0 %v8629_v16  ;;  %6980 = vmatpush3.msra.mxu1 %v8544_v36 }
 0x210   : > { %6954 = vmatprep.subr.mxu0 %v7710_v47  ;;  %6981 = vmatprep.subr.mxu1 %v7710_v47 }
 0x211   : > { %6955 = vmatpush3.msra.mxu0 %v8645_v2  ;;  %6982 = vmatpush3.msra.mxu1 %v8565_v13 }
 0x212   : > { %6956 = vmatprep.subr.mxu0 %v7710_v47  ;;  %6983 = vmatprep.subr.mxu1 %v7710_v47 }
 0x213   : > { %6957 = vmatpush3.msra.mxu0 %v8659_v0  ;;  %6984 = vmatpush3.msra.mxu1 %v8577_v56 }
 0x214   : > { %6958 = vmatprep.subr.mxu0 %v7710_v47  ;;  %6985 = vmatprep.subr.mxu1 %v7710_v47 }
 0x215   : > { %6959 = vmatpush3.msra.mxu0 %v8673_v51  ;;  %6986 = vmatpush3.msra.mxu1 %v8582_v61 }
 0x216   : > { %6960 = vmatprep.subr.mxu0 %v7710_v47  ;;  %6987 = vmatprep.subr.mxu1 %v7710_v47 }
 0x217   : > { %6961 = vmatpush3.msra.mxu0 %v8687_v28  ;;  %6988 = vmatpush3.msra.mxu1 %v8597_v21 }
 0x218   : > { %6962 = vmatprep.subr.mxu0 %v7710_v47  ;;  %6989 = vmatprep.subr.mxu1 %v7710_v47 }
 0x219   : > { %6963 = vmatpush3.msra.mxu0 %v8707_v34  ;;  %6990 = vmatpush3.msra.mxu1 %v8620_v11 }
 0x21a   : > { %6964 = vmatprep.subr.mxu0 %v7710_v47  ;;  %6991 = vmatprep.subr.mxu1 %v7710_v47 }
 0x21b   : > { %6965 = vmatpush3.msra.mxu0 %v8719_v18  ;;  %6992 = vmatpush3.msra.mxu1 %v8636_v43 }
 0x21c   : > { %6966 = vmatprep.subr.mxu0 %v7710_v47  ;;  %6993 = vmatprep.subr.mxu1 %v7710_v47 }
 0x21d   : > { %6967 = vmatpush3.msra.mxu0 %v8730_v14  ;;  %6994 = vmatpush3.msra.mxu1 %v8650_v62 }
 0x21e   : > { %6968 = vmatprep.subr.mxu0 %v7710_v47  ;;  %6995 = vmatprep.subr.mxu1 %v7710_v47 }
 0x21f   : > { %6969 = vmatpush3.msra.mxu0 %v8740_v29  ;;  %6970 = vmatprep.mubr.msk.f32.mxu0 %vm7711_vm3, %v7710_v47 }
 0x220   : > { %6996 = vmatpush3.msra.mxu1 %v8664_v17  ;;  %6971 = vmatmul.mubr.f32.vlgmr.msra.gmra.mxu0 %v7710_v47 }
 0x221   : > { %6997 = vmatprep.subr.mxu1 %v7710_v47  ;;  %7008 = vmatprep.subr.mxu0 %v7710_v47 }
 0x222   : > { %6998 = vmatpush3.msra.mxu1 %v8681_v42  ;;  %7009 = vmatpush3.msra.mxu0 %v2483_v38  ;;  %v10124_v38 = vand.u32 4294901760, %v8613_v10 }
 0x223   : > { %6999 = vmatprep.subr.mxu1 %v7710_v47  ;;  %7010 = vmatprep.subr.mxu0 %v7710_v47 }
 0x224   : > { %7000 = vmatpush3.msra.mxu1 %v8695_v44  ;;  %7011 = vmatpush3.msra.mxu0 %v2490_v39 }
 0x225   : > { %7001 = vmatprep.subr.mxu1 %v7710_v47  ;;  %7012 = vmatprep.subr.mxu0 %v7710_v47 }
 0x226   : > { %7002 = vmatpush3.msra.mxu1 %v8709_v54  ;;  %7013 = vmatpush3.msra.mxu0 %v2497_v26 }
 0x227   : > { %7003 = vmatprep.subr.mxu1 %v7710_v47  ;;  %7014 = vmatprep.subr.mxu0 %v7710_v47 }
 0x228   : > { %7004 = vmatpush3.msra.mxu1 %v8721_v32  ;;  %7005 = vmatprep.mubr.msk.f32.mxu1 %vm7711_vm3, %v7710_v47 }
 0x229   : > { %7015 = vmatpush3.msra.mxu0 %v10121_v24  ;;  %7006 = vmatmul.mubr.f32.vlgmr.msra.gmra.mxu1 %v7710_v47 }
 0x22a   : > { %7016 = vmatprep.subr.mxu0 %v7710_v47  ;;  %7043 = vmatprep.subr.mxu1 %v7710_v47 }
 0x22b   : > { %7017 = vmatpush3.msra.mxu0 %v10122_v40  ;;  %7044 = vmatpush3.msra.mxu1 %v8519_v49  ;;  %v10125_v49 = vand.u32 4294901760, %v8629_v16 }
 0x22c   : > { %7018 = vmatprep.subr.mxu0 %v7710_v47  ;;  %7045 = vmatprep.subr.mxu1 %v7710_v47 }
 0x22d   : > { %7019 = vmatpush3.msra.mxu0 %v10123_v33  ;;  %7046 = vmatpush3.msra.mxu1 %v8528_v31  ;;  %v10126_v31 = vand.u32 4294901760, %v8645_v2  ;;  %v1745_v2 = vld [vmem:[#allocation2] sm:$0x1] }
 0x22e   : > { %7020 = vmatprep.subr.mxu0 %v7710_v47  ;;  %7047 = vmatprep.subr.mxu1 %v7710_v47 }
 0x22f   : > { %7021 = vmatpush3.msra.mxu0 %v10124_v38  ;;  %7048 = vmatpush3.msra.mxu1 %v8532_v30  ;;  %v10127_v30 = vand.u32 4294901760, %v8659_v0 }
 0x230   : > { %7022 = vmatprep.subr.mxu0 %v7710_v47  ;;  %7049 = vmatprep.subr.mxu1 %v7710_v47 }
 0x231   : > { %7023 = vmatpush3.msra.mxu0 %v10125_v49  ;;  %7050 = vmatpush3.msra.mxu1 %v8544_v36  ;;  %v10128_v36 = vand.u32 4294901760, %v8673_v51 }
 0x232   : > { %7024 = vmatprep.subr.mxu0 %v7710_v47  ;;  %7051 = vmatprep.subr.mxu1 %v7710_v47 }
 0x233   : > { %7025 = vmatpush3.msra.mxu0 %v10126_v31  ;;  %7052 = vmatpush3.msra.mxu1 %v8565_v13  ;;  %v10129_v13 = vand.u32 4294901760, %v8707_v34 }
 0x234   : > { %7026 = vmatprep.subr.mxu0 %v7710_v47  ;;  %7053 = vmatprep.subr.mxu1 %v7710_v47 }
 0x235   : > { %7027 = vmatpush3.msra.mxu0 %v10127_v30  ;;  %7054 = vmatpush3.msra.mxu1 %v8577_v56 }
 0x236   : > { %7028 = vmatprep.subr.mxu0 %v7710_v47  ;;  %7055 = vmatprep.subr.mxu1 %v7710_v47 }
 0x237   : > { %7029 = vmatpush3.msra.mxu0 %v10128_v36  ;;  %7056 = vmatpush3.msra.mxu1 %v8582_v61 }
 0x238   : > { %7030 = vmatprep.subr.mxu0 %v7710_v47  ;;  %7057 = vmatprep.subr.mxu1 %v7710_v47 }
 0x239   : > { %7031 = vmatpush3.msra.mxu0 %v2560_v27  ;;  %7058 = vmatpush3.msra.mxu1 %v8597_v21 }
 0x23a   : > { %7032 = vmatprep.subr.mxu0 %v7710_v47  ;;  %7059 = vmatprep.subr.mxu1 %v7710_v47 }
 0x23b   : > { %7033 = vmatpush3.msra.mxu0 %v10129_v13  ;;  %7060 = vmatpush3.msra.mxu1 %v8620_v11 }
 0x23c   : > { %7034 = vmatprep.subr.mxu0 %v7710_v47  ;;  %7061 = vmatprep.subr.mxu1 %v7710_v47 }
 0x23d   : > { %7035 = vmatpush3.msra.mxu0 %v2574_v59  ;;  %7062 = vmatpush3.msra.mxu1 %v8636_v43 }
 0x23e   : > { %7036 = vmatprep.subr.mxu0 %v7710_v47  ;;  %7063 = vmatprep.subr.mxu1 %v7710_v47 }
 0x23f   : > { %7037 = vmatpush3.msra.mxu0 %v2581_v52  ;;  %7064 = vmatpush3.msra.mxu1 %v8650_v62 }
 0x240   : > { %7038 = vmatprep.subr.mxu0 %v7710_v47  ;;  %7065 = vmatprep.subr.mxu1 %v7710_v47 }
 0x241   : > { %7039 = vmatpush3.msra.mxu0 %v2588_v3  ;;  %7040 = vmatprep.mubr.msk.f32.mxu0 %vm7711_vm3, %v7710_v47  ;;  %v2377_v3 = vld [vmem:[#allocation3] sm:$0x1] }
 0x242   : > { %7066 = vmatpush3.msra.mxu1 %v8664_v17  ;;  %7041 = vmatmul.mubr.f32.vlgmr.msra.gmra.mxu0 %v7712_v48 }
 0x243   : > { %7067 = vmatprep.subr.mxu1 %v7710_v47  ;;  %7075 = vmatprep.mubr.msk.f32.mxu1 %vm7711_vm3, %v7710_v47 }
 0x244   : > { %7068 = vmatpush3.msra.mxu1 %v8681_v42 }
 0x245   : > { %7069 = vmatprep.subr.mxu1 %v7710_v47 }
 0x246   : > { %7070 = vmatpush3.msra.mxu1 %v8695_v44 }
 0x247   : > { %7071 = vmatprep.subr.mxu1 %v7710_v47 }
 0x248   : > { %7072 = vmatpush3.msra.mxu1 %v8709_v54 }
 0x249   : > { %7073 = vmatprep.subr.mxu1 %v7710_v47 }
 0x24a   : > { %7074 = vmatpush3.msra.mxu1 %v8721_v32 }
 0x24b   : > { %7076 = vmatmul.mubr.f32.vlgmr.msra.gmra.mxu1 %v7712_v48 }
 0x259   : > { %v1828_v20 = vpop.f32.mrf.mxu0 }
 0x25b   : > { %v6692_v56 = vpop.f32.mrf.mxu0 }
 0x261   : > { %v1978_v39 = vpop.f32.mrf.mxu1 }
 0x262   : > { %v1979_v11 = vadd.f32 %v1978_v39, %v1828_v20 }
 0x263   : > { %v6727_v61 = vpop.f32.mrf.mxu1 }
 0x27a   : > { %v2080_v26 = vpop.f32.mrf.mxu0 }
 0x27b   : > { %v2081_v16 = vadd.f32 %v2080_v26, %v1979_v11 }
 0x27c   : > { %v6762_v8 = vpop.f32.mrf.mxu0 }
 0x283   : > { %v2166_v21 = vpop.f32.mrf.mxu1 }
 0x284   : > { %v2167_v43 = vadd.f32 %v2166_v21, %v2081_v16 }
 0x285   : > { %v6797_v4 = vpop.f32.mrf.mxu1 }
 0x29c   : > { %v2284_v10 = vpop.f32.mrf.mxu0 }
 0x29d   : > { %v2285_v54 = vadd.f32 %v2284_v10, %v2167_v43 }
 0x29e   : > { %v6832_v18 = vpop.f32.mrf.mxu0 }
 0x2a5   : > { %v2370_v47 = vpop.f32.mrf.mxu1 }
 0x2a6   : > { %v2371_v62 = vadd.f32 %v2370_v47, %v2285_v54 }
 0x2a7   : > { %v6867_v0 = vpop.f32.mrf.mxu1 }
 0x2a8   : > { %v2374_v48 = vadd.f32 %v2371_v62, %v1745_v2 }
 0x2aa   : > { %2376 = vst.msk [vmem:[#allocation2] sm:$0x1] %vm2375_vm4, %v2374_v48 }
 0x2bf   : > { %v2476_v17 = vpop.f32.mrf.mxu0 }
 0x2c1   : > { %v6902_v34 = vpop.f32.mrf.mxu0 }
 0x2c7   : > { %v2626_v51 = vpop.f32.mrf.mxu1 }
 0x2c8   : > { %v2627_v1 = vadd.f32 %v2626_v51, %v2476_v17 }
 0x2c9   : > { %v6937_v27 = vpop.f32.mrf.mxu1 }
 0x2e0   : > { %v2728_v42 = vpop.f32.mrf.mxu0 }
 0x2e1   : > { %v2729_v59 = vadd.f32 %v2728_v42, %v2627_v1 }
 0x2e2   : > { %v6972_v28 = vpop.f32.mrf.mxu0 }
 0x2e9   : > { %v2814_v14 = vpop.f32.mrf.mxu1 }
 0x2ea   : > { %v2815_v52 = vadd.f32 %v2814_v14, %v2729_v59 }
 0x2eb   : > { %v7007_v44 = vpop.f32.mrf.mxu1 }
 0x302   : > { %v2932_v32 = vpop.f32.mrf.mxu0 }
 0x303   : > { %v2933_v63 = vadd.f32 %v2932_v32, %v2815_v52 }
 0x304   : > { %v7042_v29 = vpop.f32.mrf.mxu0 }
 0x30b   : > { %v3018_v50 = vpop.f32.mrf.mxu1 }
 0x30c   : > { %v3019_v23 = vadd.f32 %v3018_v50, %v2933_v63 }
 0x30d   : > { %v7077_v6 = vpop.f32.mrf.mxu1 }
 0x30e   : > { %v3022_v45 = vadd.f32 %v3019_v23, %v2377_v3 }
 0x310   : > { %3023 = vst.msk [vmem:[#allocation3] sm:$0x1] %vm2375_vm4, %v3022_v45 }
 0x311 PF: > { %p6003_p12 = scmp.ne.s32.totalorder %s7687_s10, 1 }
 0x313   : > { %3027 = sbr.rel (%p6003_p12) target bundleno = 1763 (0x6e3), region = 68 }
 0x318   : > { %v3036_v37 = vld [vmem:[%s10072_s5 + $0x38] sm:$0xff]  ;;  %v3035_v24 = vld [vmem:[%s10072_s5 + $0x30] sm:$0xff]  ;;  %v3034_v40 = vld [vmem:[%s10072_s5 + $0x28] sm:$0xff]  ;;  %v7713_v33 = vmov 0.0   ;;  %vm7714_vm5 = vmmov 0   ;;  %vm3037_vm6 = vcmask 523264  }
 0x319   : > { %7078 = vmatprep.subr.mxu1 %v7713_v33  ;;  %v8946_v38 = vand.u32 4294901760, %v3036_v37  ;;  %v8948_v49 = vand.u32 4294901760, %v3035_v24  ;;  %7094 = vmatprep.mubr.msk.f32.mxu1 %vm7714_vm5, %v7713_v33  ;;  %v3033_v31 = vld [vmem:[%s10072_s5 + $0x20] sm:$0xff]  ;;  %v8959_v30 = vand.u32 4294901760, %v3034_v40  ;;  %v3032_v36 = vld [vmem:[%s10072_s5 + $0x18] sm:$0xff]  ;;  %v3031_v21 = vld [vmem:[%s10072_s5 + $0x10] sm:$0xff] }
 0x31a   : > { %7116 = vmatprep.subr.mxu0 %v7713_v33  ;;  %7132 = vmatprep.mubr.msk.f32.mxu0 %vm7714_vm5, %v7713_v33  ;;  %v3028_v13 = vld [vmem:[#allocation2] sm:$0x1]  ;;  %v8970_v39 = vand.u32 4294901760, %v3033_v31  ;;  %v8979_v8 = vand.u32 4294901760, %v3032_v36  ;;  %v3030_v4 = vld [vmem:[%s10072_s5 + $0x8] sm:$0xff]  ;;  %v9002_v16 = vand.u32 4294901760, %v3031_v21 }
 0x31b   : > { %7079 = vmatpush3.msra.mxu1 %v8946_v38  ;;  %v8965_v20 = vsub.f32 %v3036_v37, %v8946_v38  ;;  %v3039_v56 = vsel %vm3037_vm6, %v3028_v13, 0  ;;  %v8975_v26 = vsub.f32 %v3035_v24, %v8948_v49  ;;  %v8996_v18 = vsub.f32 %v3034_v40, %v8959_v30  ;;  %v3029_v62 = vld [vmem:[%s10072_s5] sm:$0xff] }
 0x31c   : > { %7080 = vmatprep.subr.mxu1 %v7713_v33  ;;  %v8972_v61 = vand.u32 4294901760, %v3039_v56  ;;  %v9009_v2 = vsub.f32 %v3033_v31, %v8970_v39  ;;  %v9013_v47 = vand.u32 4294901760, %v3030_v4  ;;  %v9029_v34 = vsub.f32 %v3032_v36, %v8979_v8 }
 0x31d   : > { %7081 = vmatpush3.msra.mxu1 %v8948_v49  ;;  %7117 = vmatpush3.msra.mxu0 %v8965_v20  ;;  %v8993_v11 = vand.u32 4294901760, %v8965_v20  ;;  %v9006_v54 = vand.u32 4294901760, %v8975_v26  ;;  %v9026_v17 = vand.u32 4294901760, %v8996_v18  ;;  %v9035_v51 = vand.u32 4294901760, %v3029_v62 }
 0x31e   : > { %7082 = vmatprep.subr.mxu1 %v7713_v33  ;;  %7118 = vmatprep.subr.mxu0 %v7713_v33  ;;  %v8990_v10 = vsub.f32 %v3039_v56, %v8972_v61  ;;  %v9040_v42 = vand.u32 4294901760, %v9009_v2  ;;  %v9043_v28 = vsub.f32 %v3031_v21, %v9002_v16  ;;  %v9054_v1 = vand.u32 4294901760, %v9029_v34 }
 0x31f   : > { %7083 = vmatpush3.msra.mxu1 %v8959_v30  ;;  %7119 = vmatpush3.msra.mxu0 %v8975_v26  ;;  %v3144_v48 = vsub.f32 %v8965_v20, %v8993_v11  ;;  %v3151_v27 = vsub.f32 %v8975_v26, %v9006_v54  ;;  %v3158_v32 = vsub.f32 %v8996_v18, %v9026_v17  ;;  %vm4126_vm7 = vcmask 130048  }
 0x320   : > { %7084 = vmatprep.subr.mxu1 %v7713_v33  ;;  %7120 = vmatprep.subr.mxu0 %v7713_v33  ;;  %v3116_v43 = vand.u32 4294901760, %v8990_v10  ;;  %v9057_v29 = vsub.f32 %v3030_v4, %v9013_v47  ;;  %v3165_v52 = vsub.f32 %v9009_v2, %v9040_v42  ;;  %v9068_v63 = vand.u32 4294901760, %v9043_v28  ;;  %v3580_v4 = vld [vmem:[#allocation3] sm:$0x1] }
 0x321   : > { %7085 = vmatpush3.msra.mxu1 %v8970_v39  ;;  %7121 = vmatpush3.msra.mxu0 %v8996_v18  ;;  %v9049_v44 = vand.u32 4294901760, %v3144_v48  ;;  %v9063_v59 = vand.u32 4294901760, %v3151_v27  ;;  %v9071_v3 = vsub.f32 %v3029_v62, %v9035_v51  ;;  %v9076_v50 = vand.u32 4294901760, %v3158_v32 }
 0x322   : > { %7086 = vmatprep.subr.mxu1 %v7713_v33  ;;  %7122 = vmatprep.subr.mxu0 %v7713_v33  ;;  %v3117_v0 = vsub.f32 %v8990_v10, %v3116_v43  ;;  %v3172_v23 = vsub.f32 %v9029_v34, %v9054_v1  ;;  %v9081_v6 = vand.u32 4294901760, %v9057_v29  ;;  %v9088_v45 = vand.u32 4294901760, %v3165_v52 }
 0x323   : > { %7087 = vmatpush3.msra.mxu1 %v8979_v8  ;;  %7123 = vmatpush3.msra.mxu0 %v9009_v2  ;;  %v3179_v37 = vsub.f32 %v9043_v28, %v9068_v63  ;;  %v9093_v24 = vand.u32 4294901760, %v9071_v3  ;;  %v3582_v62 = vsel %vm3037_vm6, %v3580_v4, 0 }
 0x324   : > { %7088 = vmatprep.subr.mxu1 %v7713_v33  ;;  %7124 = vmatprep.subr.mxu0 %v7713_v33  ;;  %v3118_v14 = vand.u32 4294901760, %v3117_v0  ;;  %v9099_v40 = vand.u32 4294901760, %v3172_v23  ;;  %v3186_v31 = vsub.f32 %v9057_v29, %v9081_v6  ;;  %v9155_v0 = vand.u32 4294901760, %v3582_v62 }
 0x325   : > { %7089 = vmatpush3.msra.mxu1 %v9002_v16  ;;  %7125 = vmatpush3.msra.mxu0 %v9029_v34  ;;  %v9107_v36 = vand.u32 4294901760, %v3179_v37  ;;  %v3193_v13 = vsub.f32 %v9071_v3, %v9093_v24 }
 0x326   : > { %7090 = vmatprep.subr.mxu1 %v7713_v33  ;;  %7126 = vmatprep.subr.mxu0 %v7713_v33  ;;  %v9115_v56 = vand.u32 4294901760, %v3186_v31  ;;  %v9166_v48 = vsub.f32 %v3582_v62, %v9155_v0 }
 0x327   : > { %7091 = vmatpush3.msra.mxu1 %v9013_v47  ;;  %7127 = vmatpush3.msra.mxu0 %v9043_v28  ;;  %v9121_v21 = vand.u32 4294901760, %v3193_v13 }
 0x328   : > { %7092 = vmatprep.subr.mxu1 %v7713_v33  ;;  %7128 = vmatprep.subr.mxu0 %v7713_v33  ;;  %v3659_v27 = vand.u32 4294901760, %v9166_v48 }
 0x329   : > { %7093 = vmatpush3.msra.mxu1 %v9035_v51  ;;  %7129 = vmatpush3.msra.mxu0 %v9057_v29 }
 0x32a   : > { %7095 = vmatmul.mubr.f32.vlgmr.msra.gmra.mxu1 %v3118_v14  ;;  %7097 = vmatprep.subr.mxu1 %v7713_v33 }
 0x32b   : > { %7098 = vmatpush3.msra.mxu1 %v9049_v44  ;;  %7113 = vmatprep.mubr.msk.f32.mxu1 %vm7714_vm5, %v7713_v33 }
 0x32c   : > { %7099 = vmatprep.subr.mxu1 %v7713_v33  ;;  %7130 = vmatprep.subr.mxu0 %v7713_v33 }
 0x32d   : > { %7100 = vmatpush3.msra.mxu1 %v9063_v59  ;;  %7131 = vmatpush3.msra.mxu0 %v9071_v3 }
 0x32e   : > { %7101 = vmatprep.subr.mxu1 %v7713_v33  ;;  %7133 = vmatmul.mubr.f32.vlgmr.msra.gmra.mxu0 %v8990_v10  ;;  %v3660_v10 = vsub.f32 %v9166_v48, %v3659_v27 }
 0x32f   : > { %7102 = vmatpush3.msra.mxu1 %v9076_v50  ;;  %7154 = vmatprep.subr.mxu0 %v7713_v33 }
 0x330   : > { %7103 = vmatprep.subr.mxu1 %v7713_v33  ;;  %7155 = vmatpush3.msra.mxu0 %v8993_v11 }
 0x331   : > { %7104 = vmatpush3.msra.mxu1 %v9088_v45  ;;  %7156 = vmatprep.subr.mxu0 %v7713_v33 }
 0x332   : > { %7105 = vmatprep.subr.mxu1 %v7713_v33  ;;  %7157 = vmatpush3.msra.mxu0 %v9006_v54 }
 0x333   : > { %7106 = vmatpush3.msra.mxu1 %v9099_v40  ;;  %7158 = vmatprep.subr.mxu0 %v7713_v33 }
 0x334   : > { %7107 = vmatprep.subr.mxu1 %v7713_v33  ;;  %7159 = vmatpush3.msra.mxu0 %v9026_v17 }
 0x335   : > { %7108 = vmatpush3.msra.mxu1 %v9107_v36  ;;  %7160 = vmatprep.subr.mxu0 %v7713_v33 }
 0x336   : > { %7109 = vmatprep.subr.mxu1 %v7713_v33  ;;  %7161 = vmatpush3.msra.mxu0 %v9040_v42 }
 0x337   : > { %7110 = vmatpush3.msra.mxu1 %v9115_v56  ;;  %7162 = vmatprep.subr.mxu0 %v7713_v33 }
 0x338   : > { %7111 = vmatprep.subr.mxu1 %v7713_v33  ;;  %7163 = vmatpush3.msra.mxu0 %v9054_v1 }
 0x339   : > { %7112 = vmatpush3.msra.mxu1 %v9121_v21  ;;  %7164 = vmatprep.subr.mxu0 %v7713_v33 }
 0x33a   : > { %7114 = vmatmul.mubr.f32.vlgmr.msra.gmra.mxu1 %v8972_v61  ;;  %7135 = vmatprep.subr.mxu1 %v7713_v33 }
 0x33b   : > { %7136 = vmatpush3.msra.mxu1 %v8946_v38  ;;  %7165 = vmatpush3.msra.mxu0 %v9068_v63 }
 0x33c   : > { %7137 = vmatprep.subr.mxu1 %v7713_v33  ;;  %7166 = vmatprep.subr.mxu0 %v7713_v33 }
 0x33d   : > { %7138 = vmatpush3.msra.mxu1 %v8948_v49  ;;  %7151 = vmatprep.mubr.msk.f32.mxu1 %vm7714_vm5, %v7713_v33 }
 0x33e   : > { %7139 = vmatprep.subr.mxu1 %v7713_v33  ;;  %7167 = vmatpush3.msra.mxu0 %v9081_v6 }
 0x33f   : > { %7140 = vmatpush3.msra.mxu1 %v8959_v30  ;;  %7168 = vmatprep.subr.mxu0 %v7713_v33 }
 0x340   : > { %7141 = vmatprep.subr.mxu1 %v7713_v33  ;;  %7169 = vmatpush3.msra.mxu0 %v9093_v24 }
 0x341   : > { %7142 = vmatpush3.msra.mxu1 %v8970_v39  ;;  %7170 = vmatprep.mubr.msk.f32.mxu0 %vm7714_vm5, %v7713_v33 }
 0x342   : > { %7143 = vmatprep.subr.mxu1 %v7713_v33  ;;  %7171 = vmatmul.mubr.f32.vlgmr.msra.gmra.mxu0 %v8972_v61 }
 0x343   : > { %7144 = vmatpush3.msra.mxu1 %v8979_v8  ;;  %7192 = vmatprep.subr.mxu0 %v7713_v33 }
 0x344   : > { %7145 = vmatprep.subr.mxu1 %v7713_v33  ;;  %7193 = vmatpush3.msra.mxu0 %v8946_v38 }
 0x345   : > { %7146 = vmatpush3.msra.mxu1 %v9002_v16  ;;  %7194 = vmatprep.subr.mxu0 %v7713_v33 }
 0x346   : > { %7147 = vmatprep.subr.mxu1 %v7713_v33  ;;  %7195 = vmatpush3.msra.mxu0 %v8948_v49 }
 0x347   : > { %7148 = vmatpush3.msra.mxu1 %v9013_v47  ;;  %7196 = vmatprep.subr.mxu0 %v7713_v33 }
 0x348   : > { %7149 = vmatprep.subr.mxu1 %v7713_v33  ;;  %7197 = vmatpush3.msra.mxu0 %v8959_v30 }
 0x349   : > { %7150 = vmatpush3.msra.mxu1 %v9035_v51  ;;  %7198 = vmatprep.subr.mxu0 %v7713_v33 }
 0x34a   : > { %7152 = vmatmul.mubr.f32.vlgmr.msra.gmra.mxu1 %v3116_v43  ;;  %7173 = vmatprep.subr.mxu1 %v7713_v33  ;;  %v3661_v43 = vand.u32 4294901760, %v3660_v10 }
 0x34b   : > { %7174 = vmatpush3.msra.mxu1 %v8946_v38  ;;  %7199 = vmatpush3.msra.mxu0 %v8970_v39 }
 0x34c   : > { %7175 = vmatprep.subr.mxu1 %v7713_v33  ;;  %7200 = vmatprep.subr.mxu0 %v7713_v33 }
 0x34d   : > { %7176 = vmatpush3.msra.mxu1 %v8948_v49  ;;  %7201 = vmatpush3.msra.mxu0 %v8979_v8 }
 0x34e   : > { %7177 = vmatprep.subr.mxu1 %v7713_v33  ;;  %7202 = vmatprep.subr.mxu0 %v7713_v33 }
 0x34f   : > { %7178 = vmatpush3.msra.mxu1 %v8959_v30  ;;  %7203 = vmatpush3.msra.mxu0 %v9002_v16 }
 0x350   : > { %7179 = vmatprep.subr.mxu1 %v7713_v33  ;;  %7204 = vmatprep.subr.mxu0 %v7713_v33 }
 0x351   : > { %7180 = vmatpush3.msra.mxu1 %v8970_v39  ;;  %7189 = vmatprep.mubr.msk.f32.mxu1 %vm7714_vm5, %v7713_v33 }
 0x352   : > { %7181 = vmatprep.subr.mxu1 %v7713_v33  ;;  %7205 = vmatpush3.msra.mxu0 %v9013_v47 }
 0x353   : > { %7182 = vmatpush3.msra.mxu1 %v8979_v8  ;;  %7206 = vmatprep.subr.mxu0 %v7713_v33 }
 0x354   : > { %7183 = vmatprep.subr.mxu1 %v7713_v33  ;;  %7207 = vmatpush3.msra.mxu0 %v9035_v51 }
 0x355   : > { %7184 = vmatpush3.msra.mxu1 %v9002_v16  ;;  %7208 = vmatprep.mubr.msk.f32.mxu0 %vm7714_vm5, %v7713_v33 }
 0x356   : > { %7185 = vmatprep.subr.mxu1 %v7713_v33  ;;  %7230 = vmatprep.subr.mxu0 %v7713_v33 }
 0x357   : > { %7186 = vmatpush3.msra.mxu1 %v9013_v47  ;;  %7209 = vmatmul.mubr.f32.vlgmr.msra.gmra.mxu0 %v3661_v43 }
 0x358   : > { %7187 = vmatprep.subr.mxu1 %v7713_v33  ;;  %7231 = vmatpush3.msra.mxu0 %v8965_v20 }
 0x359   : > { %7188 = vmatpush3.msra.mxu1 %v9035_v51  ;;  %7232 = vmatprep.subr.mxu0 %v7713_v33 }
 0x35a   : > { %7190 = vmatmul.mubr.f32.vlgmr.msra.gmra.mxu1 %v8972_v61  ;;  %7211 = vmatprep.subr.mxu1 %v7713_v33 }
 0x35b   : > { %7212 = vmatpush3.msra.mxu1 %v9049_v44  ;;  %7233 = vmatpush3.msra.mxu0 %v8975_v26 }
 0x35c   : > { %7213 = vmatprep.subr.mxu1 %v7713_v33  ;;  %7234 = vmatprep.subr.mxu0 %v7713_v33 }
 0x35d   : > { %7214 = vmatpush3.msra.mxu1 %v9063_v59  ;;  %7235 = vmatpush3.msra.mxu0 %v8996_v18 }
 0x35e   : > { %7215 = vmatprep.subr.mxu1 %v7713_v33  ;;  %7236 = vmatprep.subr.mxu0 %v7713_v33 }
 0x35f   : > { %7216 = vmatpush3.msra.mxu1 %v9076_v50  ;;  %7237 = vmatpush3.msra.mxu0 %v9009_v2 }
 0x360   : > { %7217 = vmatprep.subr.mxu1 %v7713_v33  ;;  %7238 = vmatprep.subr.mxu0 %v7713_v33 }
 0x361   : > { %7218 = vmatpush3.msra.mxu1 %v9088_v45  ;;  %7239 = vmatpush3.msra.mxu0 %v9029_v34 }
 0x362   : > { %7219 = vmatprep.subr.mxu1 %v7713_v33  ;;  %7240 = vmatprep.subr.mxu0 %v7713_v33 }
 0x363   : > { %7220 = vmatpush3.msra.mxu1 %v9099_v40  ;;  %7241 = vmatpush3.msra.mxu0 %v9043_v28 }
 0x364   : > { %7221 = vmatprep.subr.mxu1 %v7713_v33  ;;  %7242 = vmatprep.subr.mxu0 %v7713_v33 }
 0x365   : > { %7222 = vmatpush3.msra.mxu1 %v9107_v36  ;;  %7227 = vmatprep.mubr.msk.f32.mxu1 %vm7714_vm5, %v7713_v33 }
 0x366   : > { %7223 = vmatprep.subr.mxu1 %v7713_v33  ;;  %7243 = vmatpush3.msra.mxu0 %v9057_v29 }
 0x367   : > { %7224 = vmatpush3.msra.mxu1 %v9115_v56  ;;  %7244 = vmatprep.subr.mxu0 %v7713_v33 }
 0x368   : > { %7225 = vmatprep.subr.mxu1 %v7713_v33  ;;  %7245 = vmatpush3.msra.mxu0 %v9071_v3 }
 0x369   : > { %7226 = vmatpush3.msra.mxu1 %v9121_v21  ;;  %7246 = vmatprep.mubr.msk.f32.mxu0 %vm7714_vm5, %v7713_v33 }
 0x36a   : > { %7228 = vmatmul.mubr.f32.vlgmr.msra.gmra.mxu1 %v9155_v0  ;;  %7249 = vmatprep.subr.mxu1 %v7713_v33 }
 0x36b   : > { %7250 = vmatpush3.msra.mxu1 %v8946_v38  ;;  %7247 = vmatmul.mubr.f32.vlgmr.msra.gmra.mxu0 %v9166_v48 }
 0x36c   : > { %7251 = vmatprep.subr.mxu1 %v7713_v33  ;;  %7268 = vmatprep.subr.mxu0 %v7713_v33 }
 0x36d   : > { %7252 = vmatpush3.msra.mxu1 %v8948_v49  ;;  %7269 = vmatpush3.msra.mxu0 %v8993_v11 }
 0x36e   : > { %7253 = vmatprep.subr.mxu1 %v7713_v33  ;;  %7270 = vmatprep.subr.mxu0 %v7713_v33 }
 0x36f   : > { %7254 = vmatpush3.msra.mxu1 %v8959_v30  ;;  %7271 = vmatpush3.msra.mxu0 %v9006_v54 }
 0x370   : > { %7255 = vmatprep.subr.mxu1 %v7713_v33  ;;  %7272 = vmatprep.subr.mxu0 %v7713_v33 }
 0x371   : > { %7256 = vmatpush3.msra.mxu1 %v8970_v39  ;;  %7273 = vmatpush3.msra.mxu0 %v9026_v17 }
 0x372   : > { %7257 = vmatprep.subr.mxu1 %v7713_v33  ;;  %7274 = vmatprep.subr.mxu0 %v7713_v33 }
 0x373   : > { %7258 = vmatpush3.msra.mxu1 %v8979_v8  ;;  %7275 = vmatpush3.msra.mxu0 %v9040_v42 }
 0x374   : > { %7259 = vmatprep.subr.mxu1 %v7713_v33  ;;  %7276 = vmatprep.subr.mxu0 %v7713_v33 }
 0x375   : > { %7260 = vmatpush3.msra.mxu1 %v9002_v16  ;;  %7277 = vmatpush3.msra.mxu0 %v9054_v1 }
 0x376   : > { %7261 = vmatprep.subr.mxu1 %v7713_v33  ;;  %7278 = vmatprep.subr.mxu0 %v7713_v33 }
 0x377   : > { %7262 = vmatpush3.msra.mxu1 %v9013_v47  ;;  %7279 = vmatpush3.msra.mxu0 %v9068_v63 }
 0x378   : > { %7263 = vmatprep.subr.mxu1 %v7713_v33  ;;  %7280 = vmatprep.subr.mxu0 %v7713_v33 }
 0x379   : > { %7264 = vmatpush3.msra.mxu1 %v9035_v51  ;;  %7265 = vmatprep.mubr.msk.f32.mxu1 %vm7714_vm5, %v7713_v33 }
 0x37a   : > { %7281 = vmatpush3.msra.mxu0 %v9081_v6  ;;  %7266 = vmatmul.mubr.f32.vlgmr.msra.gmra.mxu1 %v3659_v27 }
 0x37b   : > { %7282 = vmatprep.subr.mxu0 %v7713_v33  ;;  %7287 = vmatprep.subr.mxu1 %v7713_v33 }
 0x37c   : > { %7283 = vmatpush3.msra.mxu0 %v9093_v24  ;;  %7284 = vmatprep.mubr.msk.f32.mxu0 %vm7714_vm5, %v7713_v33 }
 0x37d   : > { %7288 = vmatpush3.msra.mxu1 %v8946_v38  ;;  %7285 = vmatmul.mubr.f32.vlgmr.msra.gmra.mxu0 %v9155_v0  ;;  %v4125_v38 = vld [vmem:[%s10073_s6 + $0x8] sm:$0xff] }
 0x37e   : > { %7289 = vmatprep.subr.mxu1 %v7713_v33  ;;  %7303 = vmatprep.mubr.msk.f32.mxu1 %vm7714_vm5, %v7713_v33 }
 0x37f   : > { %7290 = vmatpush3.msra.mxu1 %v8948_v49  ;;  %7320 = vmatprep.subr.mxu0 %v7713_v33  ;;  %v9313_v49 = vand.u32 4294901760, %v4125_v38 }
 0x380   : > { %7291 = vmatprep.subr.mxu1 %v7713_v33  ;;  %7324 = vmatprep.mubr.msk.f32.mxu0 %vm7714_vm5, %v7713_v33 }
 0x381   : > { %7292 = vmatpush3.msra.mxu1 %v8959_v30  ;;  %v4124_v30 = vld [vmem:[%s10073_s6] sm:$0xff]  ;;  %v9319_v20 = vsub.f32 %v4125_v38, %v9313_v49 }
 0x382   : > { %7293 = vmatprep.subr.mxu1 %v7713_v33 }
 0x383   : > { %7294 = vmatpush3.msra.mxu1 %v8970_v39  ;;  %v9321_v39 = vand.u32 4294901760, %v4124_v30  ;;  %7321 = vmatpush3.msra.mxu0 %v9319_v20  ;;  %v9341_v50 = vand.u32 4294901760, %v9319_v20 }
 0x384   : > { %7295 = vmatprep.subr.mxu1 %v7713_v33  ;;  %7322 = vmatprep.subr.mxu0 %v7713_v33 }
 0x385   : > { %7296 = vmatpush3.msra.mxu1 %v8979_v8  ;;  %v9327_v61 = vsub.f32 %v4124_v30, %v9321_v39  ;;  %v4239_v45 = vsub.f32 %v9319_v20, %v9341_v50 }
 0x386   : > { %7297 = vmatprep.subr.mxu1 %v7713_v33 }
 0x387   : > { %7298 = vmatpush3.msra.mxu1 %v9002_v16  ;;  %7323 = vmatpush3.msra.mxu0 %v9327_v61  ;;  %v9344_v6 = vand.u32 4294901760, %v9327_v61  ;;  %v4240_v31 = vand.u32 4294901760, %v4239_v45 }
 0x388   : > { %7299 = vmatprep.subr.mxu1 %v7713_v33  ;;  %7334 = vmatprep.subr.mxu0 %v7713_v33 }
 0x389   : > { %7300 = vmatpush3.msra.mxu1 %v9013_v47  ;;  %v4246_v24 = vsub.f32 %v9327_v61, %v9344_v6 }
 0x38a   : > { %7301 = vmatprep.subr.mxu1 %v7713_v33 }
 0x38b   : > { %7302 = vmatpush3.msra.mxu1 %v9035_v51  ;;  %v4247_v13 = vand.u32 4294901760, %v4246_v24 }
 0x38c   : > { %7304 = vmatmul.mubr.f32.vlgmr.msra.gmra.mxu1 %v9155_v0  ;;  %7306 = vmatprep.subr.mxu1 %v7713_v33 }
 0x38d   : > { %7310 = vmatprep.mubr.msk.f32.mxu1 %vm7714_vm5, %v7713_v33  ;;  %7307 = vmatpush3.msra.mxu1 %v9313_v49 }
 0x38e   : > { %7308 = vmatprep.subr.mxu1 %v7713_v33 }
 0x38f   : > { %7309 = vmatpush3.msra.mxu1 %v9321_v39 }
 0x390   : > { %7313 = vmatprep.subr.mxu1 %v7713_v33 }
 0x3ea   : > { %v3120_v26 = vpop.f32.mrf.mxu1 }
 0x3ec   : > { %v7096_v8 = vpop.f32.mrf.mxu1 }
 0x3ee   : > { %v3319_v11 = vpop.f32.mrf.mxu0 }
 0x3f0   : > { %v7134_v18 = vpop.f32.mrf.mxu0 }
 0x3fa   : > { %v3231_v16 = vpop.f32.mrf.mxu1 }
 0x3fb   : > { %v3232_v51 = vadd.f32 %v3231_v16, %v3120_v26 }
 0x3fc   : > { %v7115_v54 = vpop.f32.mrf.mxu1 }
 0x3fd   : > { %v3320_v42 = vadd.f32 %v3319_v11, %v3232_v51 }
 0x402   : > { %v3495_v2 = vpop.f32.mrf.mxu0 }
 0x404   : > { %v7172_v47 = vpop.f32.mrf.mxu0 }
 0x40a   : > { %v3400_v17 = vpop.f32.mrf.mxu1 }
 0x40b   : > { %v3401_v28 = vadd.f32 %v3400_v17, %v3320_v42 }
 0x40c   : > { %v7153_v34 = vpop.f32.mrf.mxu1 }
 0x40d   : > { %v3496_v44 = vadd.f32 %v3495_v2, %v3401_v28 }
 0x417   : > { %v9334_v14 = vpop.f32.mrf.mxu0 }
 0x419   : > { %v7210_v32 = vpop.f32.mrf.mxu0 }
 0x41a   : > { %v3574_v1 = vpop.f32.mrf.mxu1 }
 0x41b   : > { %v3575_v29 = vadd.f32 %v3574_v1, %v3496_v44 }
 0x41c   : > { %v7191_v59 = vpop.f32.mrf.mxu1 }
 0x41d   : > { %v9336_v52 = vmul.f32 0.0009765625, %v3575_v29 }
 0x41f   : > { %v4128_v63 = vsel %vm4126_vm7, %v9336_v52, 0  ;;  %v4122_v16 = vmul.f32 %v9336_v52, %v9336_v52 }
 0x420   : > { %v4197_v3 = vand.u32 4294901760, %v4128_v63 }
 0x422   : > { %v4198_v23 = vsub.f32 %v4128_v63, %v4197_v3 }
 0x424   : > { %v4199_v37 = vand.u32 4294901760, %v4198_v23  ;;  %7325 = vmatmul.mubr.f32.vlgmr.msra.gmra.mxu0 %v4198_v23 }
 0x425   : > { %7335 = vmatpush3.msra.mxu0 %v9341_v50  ;;  %7338 = vmatprep.mubr.msk.f32.mxu0 %vm7714_vm5, %v7713_v33 }
 0x426   : > { %7336 = vmatprep.subr.mxu0 %v7713_v33  ;;  %v4200_v40 = vsub.f32 %v4198_v23, %v4199_v37 }
 0x427   : > { %7337 = vmatpush3.msra.mxu0 %v9344_v6 }
 0x428   : > { %7339 = vmatmul.mubr.f32.vlgmr.msra.gmra.mxu0 %v4197_v3  ;;  %v4201_v36 = vand.u32 4294901760, %v4200_v40  ;;  %7348 = vmatprep.subr.mxu0 %v7713_v33 }
 0x429   : > { %7349 = vmatpush3.msra.mxu0 %v9313_v49  ;;  %7352 = vmatprep.mubr.msk.f32.mxu0 %vm7714_vm5, %v7713_v33 }
 0x42a   : > { %v3774_v56 = vpop.f32.mrf.mxu1  ;;  %7311 = vmatmul.mubr.f32.vlgmr.msra.gmra.mxu1 %v4201_v36  ;;  %7350 = vmatprep.subr.mxu0 %v7713_v33 }
 0x42b   : > { %7314 = vmatpush3.msra.mxu1 %v4240_v31  ;;  %v3862_v21 = vpop.f32.mrf.mxu0  ;;  %7317 = vmatprep.mubr.msk.f32.mxu1 %vm7714_vm5, %v7713_v33  ;;  %v3775_v43 = vadd.f32 %v3774_v56, %v9334_v14 }
 0x42c   : > { %v7229_v4 = vpop.f32.mrf.mxu1  ;;  %7315 = vmatprep.subr.mxu1 %v7713_v33  ;;  %7351 = vmatpush3.msra.mxu0 %v9321_v39 }
 0x42d   : > { %7316 = vmatpush3.msra.mxu1 %v4247_v13  ;;  %v7248_v62 = vpop.f32.mrf.mxu0  ;;  %7362 = vmatprep.subr.mxu0 %v7713_v33  ;;  %v3863_v38 = vadd.f32 %v3862_v21, %v3775_v43 }
 0x42e   : > { %7318 = vmatmul.mubr.f32.vlgmr.msra.gmra.mxu1 %v4197_v3  ;;  %7327 = vmatprep.subr.mxu1 %v7713_v33 }
 0x42f   : > { %7328 = vmatpush3.msra.mxu1 %v9313_v49  ;;  %7331 = vmatprep.mubr.msk.f32.mxu1 %vm7714_vm5, %v7713_v33 }
 0x430   : > { %7329 = vmatprep.subr.mxu1 %v7713_v33 }
 0x431   : > { %7330 = vmatpush3.msra.mxu1 %v9321_v39 }
 0x432   : > { %7332 = vmatmul.mubr.f32.vlgmr.msra.gmra.mxu1 %v4199_v37  ;;  %7341 = vmatprep.subr.mxu1 %v7713_v33 }
 0x433   : > { %7342 = vmatpush3.msra.mxu1 %v9313_v49  ;;  %7345 = vmatprep.mubr.msk.f32.mxu1 %vm7714_vm5, %v7713_v33 }
 0x434   : > { %7343 = vmatprep.subr.mxu1 %v7713_v33 }
 0x435   : > { %7344 = vmatpush3.msra.mxu1 %v9321_v39 }
 0x436   : > { %7346 = vmatmul.mubr.f32.vlgmr.msra.gmra.mxu1 %v4197_v3  ;;  %7355 = vmatprep.subr.mxu1 %v7713_v33 }
 0x437   : > { %7356 = vmatpush3.msra.mxu1 %v4240_v31  ;;  %7359 = vmatprep.mubr.msk.f32.mxu1 %vm7714_vm5, %v7713_v33 }
 0x438   : > { %7357 = vmatprep.subr.mxu1 %v7713_v33 }
 0x439   : > { %7358 = vmatpush3.msra.mxu1 %v4247_v13 }
 0x43a   : > { %v3943_v0 = vpop.f32.mrf.mxu1  ;;  %7369 = vmatprep.subr.mxu1 %v7713_v33 }
 0x43b   : > { %v3944_v30 = vadd.f32 %v3943_v0, %v3863_v38 }
 0x43c   : > { %v7267_v48 = vpop.f32.mrf.mxu1 }
 0x43d   : > { %v4038_v27 = vpop.f32.mrf.mxu0 }
 0x43e   : > { %v4039_v26 = vadd.f32 %v4038_v27, %v3944_v30 }
 0x43f   : > { %v7286_v10 = vpop.f32.mrf.mxu0 }
 0x44c   : > { %v4117_v8 = vpop.f32.mrf.mxu1 }
 0x44d   : > { %v4118_v11 = vadd.f32 %v4117_v8, %v4039_v26 }
 0x44e   : > { %v7305_v18 = vpop.f32.mrf.mxu1 }
 0x44f   : > { %v4121_v54 = vmul.f32 0.0009765625, %v4118_v11 }
 0x451   : > { %v4123_v2 = vsub.f32 %v4121_v54, %v4122_v16  ;;  %v5058_v16 = vlaneseq }
 0x453   : > { %v4591_v47 = vsel %vm4126_vm7, %v4123_v2, 0  ;;  %v5059_v54 = vshrl.u32 %v5058_v16, 7  ;;  %v4589_v2 = vld [vmem:[%s10070_s3] sm:$0x1] }
 0x454   : > { %v4660_v17 = vand.u32 4294901760, %v4591_v47 }
 0x456   : > { %v4661_v34 = vsub.f32 %v4591_v47, %v4660_v17  ;;  %7360 = vmatmul.mubr.f32.vlgmr.msra.gmra.mxu1 %v4660_v17  ;;  %v5060_v47 = vsub.s32 0, %v5059_v54 }
 0x457   : > { %7370 = vmatpush3.msra.mxu1 %v9313_v49  ;;  %7373 = vmatprep.mubr.msk.f32.mxu1 %vm7714_vm5, %v7713_v33 }
 0x458   : > { %7371 = vmatprep.subr.mxu1 %v7713_v33  ;;  %v4662_v51 = vand.u32 4294901760, %v4661_v34 }
 0x459   : > { %7372 = vmatpush3.msra.mxu1 %v9321_v39 }
 0x45a   : > { %7374 = vmatmul.mubr.f32.vlgmr.msra.gmra.mxu1 %v4662_v51  ;;  %7383 = vmatprep.subr.mxu1 %v7713_v33  ;;  %v4663_v42 = vsub.f32 %v4661_v34, %v4662_v51  ;;  %v5054_v51 = vld [vmem:[%s10071_s4] sm:$0x1] }
 0x45b   : > { %7384 = vmatpush3.msra.mxu1 %v9313_v49  ;;  %7387 = vmatprep.mubr.msk.f32.mxu1 %vm7714_vm5, %v7713_v33  ;;  %v7519_v49 = vld [vmem:[%s10074_s7 + $0x18] sm:$0xff]  }
 0x45c   : > { %7385 = vmatprep.subr.mxu1 %v7713_v33  ;;  %v4664_v28 = vand.u32 4294901760, %v4663_v42 }
 0x45d   : > { %7386 = vmatpush3.msra.mxu1 %v9321_v39  ;;  %v7521_v39 = vld [vmem:[%s10074_s7 + $0x8] sm:$0xff]  }
 0x45e   : > { %7353 = vmatmul.mubr.f32.vlgmr.msra.gmra.mxu0 %v4664_v28  ;;  %7388 = vmatmul.mubr.f32.vlgmr.msra.gmra.mxu1 %v4660_v17 }
 0x45f   : > { %7363 = vmatpush3.msra.mxu0 %v9319_v20  ;;  %7366 = vmatprep.mubr.msk.f32.mxu0 %vm7714_vm5, %v7713_v33  ;;  %v7520_v20 = vld [vmem:[%s10074_s7 + $0x10] sm:$0xff]  }
 0x460   : > { %7364 = vmatprep.subr.mxu0 %v7713_v33 }
 0x461   : > { %7365 = vmatpush3.msra.mxu0 %v9327_v61 }
 0x462   : > { %7376 = vmatprep.subr.mxu0 %v7713_v33  ;;  %7367 = vmatmul.mubr.f32.vlgmr.msra.gmra.mxu0 %v4661_v34 }
 0x463   : > { %7377 = vmatpush3.msra.mxu0 %v9341_v50  ;;  %7380 = vmatprep.mubr.msk.f32.mxu0 %vm7714_vm5, %v7713_v33 }
 0x464   : > { %7378 = vmatprep.subr.mxu0 %v7713_v33  ;;  %v7522_v33 = vld [vmem:[%s10074_s7] sm:$0xff]  }
 0x465   : > { %7379 = vmatpush3.msra.mxu0 %v9344_v6 }
 0x466   : > { %7381 = vmatmul.mubr.f32.vlgmr.msra.gmra.mxu0 %v4660_v17  ;;  %7390 = vmatprep.subr.bf16.mxu0 %v7519_v49 }
 0x467   : > { %7391 = vmatpush3.bf16.msra.mxu0 %v7519_v49 }
 0x468   : > { %7392 = vmatprep.subr.bf16.mxu0 %v7520_v20 }
 0x46b   : > { %7393 = vmatpush3.bf16.msra.mxu0 %v7520_v20 }
 0x46c   : > { %7394 = vmatprep.subr.bf16.mxu0 %v7521_v39 }
 0x46f   : > { %7395 = vmatpush3.bf16.msra.mxu0 %v7521_v39 }
 0x470   : > { %7396 = vmatprep.subr.bf16.mxu0 %v7522_v33 }
 0x473   : > { %7397 = vmatpush3.bf16.msra.mxu0 %v7522_v33 }
 0x4e4   : > { %v4360_v61 = vpop.f32.mrf.mxu0 }
 0x4e6   : > { %v7326_v14 = vpop.f32.mrf.mxu0 }
 0x4e8   : > { %v4512_v44 = vpop.f32.mrf.mxu0 }
 0x4ea   : > { %v4203_v32 = vpop.f32.mrf.mxu1  ;;  %v7340_v1 = vpop.f32.mrf.mxu0 }
 0x4ec   : > { %v7312_v29 = vpop.f32.mrf.mxu1 }
 0x4ee   : > { %v4284_v59 = vpop.f32.mrf.mxu1 }
 0x4ef   : > { %v4285_v52 = vadd.f32 %v4284_v59, %v4203_v32 }
 0x4f0   : > { %v7319_v63 = vpop.f32.mrf.mxu1 }
 0x4f1   : > { %v4361_v3 = vadd.f32 %v4360_v61, %v4285_v52 }
 0x4f2   : > { %v4435_v50 = vpop.f32.mrf.mxu1 }
 0x4f3   : > { %v4436_v23 = vadd.f32 %v4435_v50, %v4361_v3 }
 0x4f4   : > { %v7333_v6 = vpop.f32.mrf.mxu1 }
 0x4f5   : > { %v4513_v45 = vadd.f32 %v4512_v44, %v4436_v23 }
 0x4f6   : > { %v4585_v37 = vpop.f32.mrf.mxu1 }
 0x4f7   : > { %v4586_v24 = vadd.f32 %v4585_v37, %v4513_v45 }
 0x4f8   : > { %v7347_v40 = vpop.f32.mrf.mxu1 }
 0x516   : > { %v4747_v31 = vpop.f32.mrf.mxu1 }
 0x518   : > { %v7361_v36 = vpop.f32.mrf.mxu1 }
 0x51a   : > { %v4898_v13 = vpop.f32.mrf.mxu1 }
 0x51c   : > { %v7375_v56 = vpop.f32.mrf.mxu1 }
 0x51e   : > { %v4666_v21 = vpop.f32.mrf.mxu0  ;;  %v5048_v4 = vpop.f32.mrf.mxu1 }
 0x51f   : > { %v4667_v62 = vadd.f32 1e-05, %v4666_v21 }
 0x520   : > { %v7354_v0 = vpop.f32.mrf.mxu0  ;;  %v7389_v48 = vpop.f32.mrf.mxu1 }
 0x521   : > { %v4748_v27 = vadd.f32 %v4747_v31, %v4667_v62 }
 0x522   : > { %v4823_v10 = vpop.f32.mrf.mxu0 }
 0x523   : > { %v4824_v43 = vadd.f32 %v4823_v10, %v4748_v27 }
 0x524   : > { %v7368_v38 = vpop.f32.mrf.mxu0 }
 0x525   : > { %v4899_v30 = vadd.f32 %v4898_v13, %v4824_v43 }
 0x526   : > { %v4975_v26 = vpop.f32.mrf.mxu0 }
 0x527   : > { %v4976_v8 = vadd.f32 %v4975_v26, %v4899_v30 }
 0x528   : > { %v7382_v11 = vpop.f32.mrf.mxu0 }
 0x529   : > { %v5049_v18 = vadd.f32 %v5048_v4, %v4976_v8 }
 0x52b   : > { %7523 = vrsqrt.f32 %v5049_v18 }
 0x538   : > { %v7524_v17 = vpop.eup %7523 }
 0x539   : > { %v5053_v34 = vmul.f32 %v7524_v17, %v4589_v2 }
 0x53b   : > { %v5055_v42 = vmul.f32 %v5053_v34, %v4586_v24  ;;  %v5061_v28 = vrot.slane %v5053_v34, %v5060_v47 }
 0x53d   : > { %v5056_v49 = vsub.f32 %v5054_v51, %v5055_v42  ;;  %v5063_v20 = vmul.f32 %v5061_v28, %v8082_v25  ;;  %v5064_v33 = vmul.f32 %v5061_v28, %v8090_v15  ;;  %v5065_v61 = vmul.f32 %v5061_v28, %v8078_v22 }
 0x53e   : > { %v5066_v14 = vmul.f32 %v5061_v28, %v8086_v12  ;;  %v5067_v44 = vmul.f32 %v5061_v28, %v8105_v46  ;;  %v5068_v32 = vmul.f32 %v5061_v28, %v8122_v5  ;;  %v5069_v22 = vmul.f32 %v5061_v28, %v8097_v35 }
 0x53f   : > { %v5083_v39 = vrot.slane %v5056_v49, %v5060_v47  ;;  %v5070_v12 = vmul.f32 %v5061_v28, %v8114_v19  ;;  %v5071_v5 = vmul.f32 %v5061_v28, %v8134_v41  ;;  %v5072_v24 = vmul.f32 %v5061_v28, %v8143_v53 }
 0x540   : > { %v5073_v62 = vmul.f32 %v5061_v28, %v8128_v57  ;;  %v5074_v41 = vmul.f32 %v5061_v28, %v8139_v55  ;;  %v5075_v53 = vmul.f32 %v5061_v28, %v8150_v7  ;;  %v5076_v0 = vmul.f32 %v5061_v28, %v8156_v9 }
 0x541   : > { %v5085_v1 = vadd.f32 %v5083_v39, %v5063_v20  ;;  %v5086_v29 = vadd.f32 %v5083_v39, %v5064_v33  ;;  %v5087_v59 = vadd.f32 %v5083_v39, %v5065_v61  ;;  %v5088_v52 = vadd.f32 %v5083_v39, %v5066_v14 }
 0x542   : > { %v5089_v63 = vadd.f32 %v5083_v39, %v5067_v44  ;;  %v5090_v3 = vadd.f32 %v5083_v39, %v5068_v32  ;;  %v5091_v40 = vadd.f32 %v5083_v39, %v5069_v22  ;;  %v5092_v31 = vadd.f32 %v5083_v39, %v5070_v12 }
 0x543   : > { %v5101_v50 = vmax.f32 %v5085_v1, 0.0  ;;  %v5102_v23 = vmax.f32 %v5086_v29, 0.0  ;;  %v5103_v25 = vmax.f32 %v5087_v59, 0.0  ;;  %v5104_v6 = vmax.f32 %v5088_v52, 0.0 }
 0x544   : > { %v5105_v45 = vmax.f32 %v5089_v63, 0.0  ;;  %v5106_v15 = vmax.f32 %v5090_v3, 0.0  ;;  %v5093_v13 = vadd.f32 %v5083_v39, %v5071_v5  ;;  %v5094_v56 = vadd.f32 %v5083_v39, %v5072_v24 }
 0x545   : > { %v5117_v37 = vpack.c.bf16 %v5102_v23, %v5101_v50  ;;  %v5118_v46 = vpack.c.bf16 %v5104_v6, %v5103_v25  ;;  %v5107_v35 = vmax.f32 %v5091_v40, 0.0  ;;  %v5108_v21 = vmax.f32 %v5092_v31, 0.0 }
 0x546   : > { %v5119_v36 = vpack.c.bf16 %v5106_v15, %v5105_v45  ;;  %v5109_v19 = vmax.f32 %v5093_v13, 0.0  ;;  %v5110_v4 = vmax.f32 %v5094_v56, 0.0  ;;  %v5095_v27 = vadd.f32 %v5083_v39, %v5073_v62 }
 0x547   : > { %7398 = vmatprep.mubr.msk.bf16.mxu0 %vm3037_vm6, %v5117_v37  ;;  %v5120_v48 = vpack.c.bf16 %v5108_v21, %v5107_v35  ;;  %v5096_v10 = vadd.f32 %v5083_v39, %v5074_v41  ;;  %v5097_v38 = vadd.f32 %v5083_v39, %v5075_v53  ;;  %v5098_v30 = vadd.f32 %v5083_v39, %v5076_v0 }
 0x548   : > { %7399 = vmatmul.mubr.msk.bf16.vlgmr.msra.gmra.mxu0 %vm3037_vm6, %v5118_v46  ;;  %v5121_v43 = vpack.c.bf16 %v5110_v4, %v5109_v19  ;;  %v5111_v26 = vmax.f32 %v5095_v27, 0.0  ;;  %v5077_v55 = vmul.f32 %v5061_v28, %v8147_v58  ;;  %v5078_v7 = vmul.f32 %v5061_v28, %v8153_v60  ;;  %v9457_v58 = vld [vmem:[%s10075_s8] ss:$0 sm:$0xff] }
 0x549   : > { %7402 = vmatprep.mubr.msk.bf16.mxu0 %vm3037_vm6, %v5119_v36  ;;  %v5112_v8 = vmax.f32 %v5096_v10, 0.0  ;;  %v5113_v11 = vmax.f32 %v5097_v38, 0.0  ;;  %v5114_v57 = vmax.f32 %v5098_v30, 0.0  ;;  %v9452_v51 = vand.u32 127, %v5058_v16 }
 0x54a   : > { %v5099_v9 = vadd.f32 %v5083_v39, %v5077_v55  ;;  %v5100_v54 = vadd.f32 %v5083_v39, %v5078_v7 }
 0x54b   : > { %v5122_v18 = vpack.c.bf16 %v5112_v8, %v5111_v26  ;;  %v5123_v2 = vpack.c.bf16 %v5114_v57, %v5113_v11  ;;  %vm5471_vm8 = vcmp.ge.s32.totalorder %v9452_v51, 9  ;;  %vm5472_vm9 = vcmp.lt.s32.totalorder %v9452_v51, 11 }
 0x54c   : > { %v5115_v47 = vmax.f32 %v5099_v9, 0.0  ;;  %v5116_v17 = vmax.f32 %v5100_v54, 0.0  ;;  %vm9464_vm10 = vmand %vm5471_vm8, %vm5472_vm9  ;;  %vm5383_vm11 = vcmp.lt.s32.totalorder %v9452_v51, 3  ;;  %vm5434_vm12 = vcmp.ge.s32.totalorder %v9452_v51, 6 }
 0x54d   : > { %vm5435_vm13 = vcmp.lt.s32.totalorder %v9452_v51, 9 }
 0x54e   : > { %v5124_v34 = vpack.c.bf16 %v5116_v17, %v5115_v47  ;;  %vm9600_vm14 = vmand %vm5434_vm12, %vm5435_vm13 }
 0x550   : > { %7403 = vmatmul.mubr.msk.bf16.gmra.mxu0 %vm3037_vm6, %v5120_v48 }
 0x551   : > { %7406 = vmatprep.mubr.msk.bf16.mxu0 %vm3037_vm6, %v5121_v43 }
 0x558   : > { %7407 = vmatmul.mubr.msk.bf16.gmra.mxu0 %vm3037_vm6, %v5122_v18 }
 0x559   : > { %7410 = vmatprep.mubr.msk.bf16.mxu0 %vm3037_vm6, %v5123_v2 }
 0x560   : > { %7411 = vmatmul.mubr.msk.bf16.gmra.mxu0 %vm3037_vm6, %v5124_v34 }
 0x608   : > { %v7400_v60 = vpop.f32.mrf.mxu0 }
 0x609   : > { %v9462_v42 = vadd.f32 %v7400_v60, %v9457_v58 }
 0x60a   : > { %v5222_v49 = vpop.f32.mrf.mxu0 }
 0x60b   : > { %v9469_v16 = vadd.f32 %v9457_v58, %v5222_v49  ;;  %v5476_v20 = vmul.f32 %v9462_v42, %v9462_v42 }
 0x60c   : > { %v7401_v39 = vpop.f32.mrf.mxu0 }
 0x60d   : > { %v9474_v33 = vadd.f32 %v7401_v39, %v9457_v58  ;;  %v5494_v61 = vsel %vm9464_vm10, %v5476_v20, 0.0  ;;  %v5474_v44 = vmul.f32 %v9469_v16, %v9469_v16  ;;  %v6019_v20 = vmul.f32 -1.442695, %v9462_v42 }
 0x60e   : > { %5512 = vadd.xlane.f32.xlu1 %v5494_v61  ;;  %v5225_v14 = vpop.f32.mrf.mxu0  ;;  %v6017_v39 = vmul.f32 -1.442695, %v9469_v16 }
 0x60f   : > { %v9481_v32 = vadd.f32 %v9457_v58, %v5225_v14  ;;  %v5477_v1 = vmul.f32 %v9474_v33, %v9474_v33  ;;  %v5492_v59 = vsel %vm9464_vm10, %v5474_v44, 0.0  ;;  %7525 = vpow2.f32 %v6019_v20 }
 0x610   : > { %v7404_v29 = vpop.f32.mrf.mxu0  ;;  %5508 = vadd.xlane.f32.xlu0 %v5492_v59  ;;  %v6020_v61 = vmul.f32 -1.442695, %v9474_v33  ;;  %7527 = vpow2.f32 %v6017_v39 }
 0x611   : > { %v9488_v52 = vadd.f32 %v7404_v29, %v9457_v58  ;;  %v5495_v63 = vsel %vm9464_vm10, %v5477_v1, 0.0  ;;  %v5475_v50 = vmul.f32 %v9481_v32, %v9481_v32  ;;  %v6018_v14 = vmul.f32 -1.442695, %v9481_v32 }
 0x612   : > { %5514 = vadd.xlane.f32.xlu1 %v5495_v63  ;;  %v5238_v3 = vpop.f32.mrf.mxu0  ;;  %7529 = vpow2.f32 %v6020_v61 }
 0x613   : > { %v9495_v23 = vadd.f32 %v9457_v58, %v5238_v3  ;;  %v5493_v6 = vsel %vm9464_vm10, %v5475_v50, 0.0  ;;  %v5480_v45 = vmul.f32 %v9488_v52, %v9488_v52  ;;  %v6023_v44 = vmul.f32 -1.442695, %v9488_v52 }
 0x614   : > { %v7405_v25 = vpop.f32.mrf.mxu0  ;;  %5510 = vadd.xlane.f32.xlu0 %v5493_v6  ;;  %7531 = vpow2.f32 %v6018_v14 }
 0x615   : > { %v9502_v15 = vadd.f32 %v7405_v25, %v9457_v58  ;;  %v5498_v5 = vsel %vm9464_vm10, %v5480_v45, 0.0  ;;  %v5478_v24 = vmul.f32 %v9495_v23, %v9495_v23  ;;  %v6021_v1 = vmul.f32 -1.442695, %v9495_v23 }
 0x616   : > { %v5241_v22 = vpop.f32.mrf.mxu0  ;;  %7533 = vpow2.f32 %v6023_v44 }
 0x617   : > { %v9505_v12 = vadd.f32 %v9457_v58, %v5241_v22  ;;  %v5481_v37 = vmul.f32 %v9502_v15, %v9502_v15  ;;  %v5496_v21 = vsel %vm9464_vm10, %v5478_v24, 0.0  ;;  %v6024_v29 = vmul.f32 -1.442695, %v9502_v15 }
 0x618   : > { %v7408_v46 = vpop.f32.mrf.mxu0  ;;  %5520 = vadd.xlane.f32.xlu0 %v5498_v5  ;;  %7535 = vpow2.f32 %v6021_v1 }
 0x619   : > { %v9514_v40 = vadd.f32 %v7408_v46, %v9457_v58  ;;  %v5499_v31 = vsel %vm9464_vm10, %v5481_v37, 0.0  ;;  %v5479_v13 = vmul.f32 %v9505_v12, %v9505_v12  ;;  %v6022_v59 = vmul.f32 -1.442695, %v9505_v12 }
 0x61a   : > { %5522 = vadd.xlane.f32.xlu1 %v5499_v31  ;;  %v5254_v36 = vpop.f32.mrf.mxu0  ;;  %7537 = vpow2.f32 %v6024_v29 }
 0x61b   : > { %v9521_v56 = vadd.f32 %v9457_v58, %v5254_v36  ;;  %v5484_v19 = vmul.f32 %v9514_v40, %v9514_v40  ;;  %v5497_v62 = vsel %vm9464_vm10, %v5479_v13, 0.0  ;;  %v6027_v63 = vmul.f32 -1.442695, %v9514_v40 }
 0x61c   : > { %v7409_v35 = vpop.f32.mrf.mxu0  ;;  %5516 = vadd.xlane.f32.xlu0 %v5496_v21  ;;  %7539 = vpow2.f32 %v6022_v59  ;;  %v7526_v3 = vpop.eup %7525 }
 0x61d   : > { %v9528_v4 = vadd.f32 %v7409_v35, %v9457_v58  ;;  %v5502_v48 = vsel %vm9464_vm10, %v5484_v19, 0.0  ;;  %v5482_v10 = vmul.f32 %v9521_v56, %v9521_v56  ;;  %7541 = vpow2.f32 %v6027_v63  ;;  %v7528_v6 = vpop.eup %7527 }
 0x61e   : > { %v5257_v41 = vpop.f32.mrf.mxu0  ;;  %5518 = vadd.xlane.f32.xlu1 %v5497_v62  ;;  %v6025_v50 = vmul.f32 -1.442695, %v9521_v56  ;;  %v5337_v45 = vadd.f32 1.0, %v7526_v3  ;;  %v5335_v46 = vadd.f32 1.0, %v7528_v6 }
 0x61f   : > { %v9533_v53 = vadd.f32 %v9457_v58, %v5257_v41  ;;  %v5485_v27 = vmul.f32 %v9528_v4, %v9528_v4  ;;  %v5500_v57 = vsel %vm9464_vm10, %v5482_v10, 0.0  ;;  %v6028_v25 = vmul.f32 -1.442695, %v9528_v4  ;;  %v7530_v22 = vpop.eup %7529 }
 0x620   : > { %v7412_v0 = vpop.f32.mrf.mxu0  ;;  %5528 = vadd.xlane.f32.xlu0 %v5502_v48  ;;  %7543 = vpow2.f32 %v6025_v50  ;;  %v5338_v24 = vadd.f32 1.0, %v7530_v22 }
 0x621   : > { %v5503_v38 = vsel %vm9464_vm10, %v5485_v27, 0.0  ;;  %v5483_v30 = vmul.f32 %v9533_v53, %v9533_v53  ;;  %v9549_v8 = vadd.f32 %v7412_v0, %v9457_v58  ;;  %v7532_v37 = vpop.eup %7531  ;;  %7545 = vpow2.f32 %v6028_v25 }
 0x622   : > { %v5270_v43 = vpop.f32.mrf.mxu0  ;;  %5530 = vadd.xlane.f32.xlu1 %v5503_v38  ;;  %7547 = vrcp.f32 %v5337_v45  ;;  %v5336_v31 = vadd.f32 1.0, %v7532_v37  ;;  %v6026_v13 = vmul.f32 -1.442695, %v9533_v53 }
 0x623   : > { %v9546_v26 = vadd.f32 %v9457_v58, %v5270_v43  ;;  %10133 = vst [vmem:[#allocation10_spill] sm:$0xff] %v9549_v8  ;;  %v5501_v7 = vsel %vm9464_vm10, %v5483_v30, 0.0  ;;  %v5488_v47 = vmul.f32 %v9549_v8, %v9549_v8  ;;  %v7534_v5 = vpop.eup %7533  ;;  %7549 = vrcp.f32 %v5335_v46 }
 0x624   : > { %v7413_v11 = vpop.f32.mrf.mxu0  ;;  %5524 = vadd.xlane.f32.xlu0 %v5500_v57  ;;  %v5341_v21 = vadd.f32 1.0, %v7534_v5  ;;  %7551 = vrcp.f32 %v5338_v24  ;;  %v6031_v62 = vmul.f32 -1.442695, %v9549_v8 }
 0x625   : > { %10132 = vst [vmem:[#allocation9_spill] sm:$0xff] %v9546_v26  ;;  %v5486_v18 = vmul.f32 %v9546_v26, %v9546_v26  ;;  %v9558_v9 = vadd.f32 %v7413_v11, %v9457_v58  ;;  %v7536_v36 = vpop.eup %7535  ;;  %7553 = vrcp.f32 %v5336_v31  ;;  %v6029_v10 = vmul.f32 -1.442695, %v9546_v26 }
 0x626   : > { %v5273_v55 = vpop.f32.mrf.mxu0  ;;  %5526 = vadd.xlane.f32.xlu1 %v5501_v7  ;;  %v5339_v41 = vadd.f32 1.0, %v7536_v36  ;;  %7555 = vpow2.f32 %v6026_v13 }
 0x627   : > { %10134 = vst [vmem:[#allocation11_spill] sm:$0xff] %v9558_v9  ;;  %v9561_v54 = vadd.f32 %v9457_v58, %v5273_v55  ;;  %v5504_v2 = vsel %vm9464_vm10, %v5486_v18, 0.0  ;;  %v5489_v60 = vmul.f32 %v9558_v9, %v9558_v9  ;;  %v5506_v58 = vsel %vm9464_vm10, %v5488_v47, 0.0  ;;  %v7538_v35 = vpop.eup %7537 }
 0x628   : > { %5532 = vadd.xlane.f32.xlu0 %v5504_v2  ;;  %v5342_v0 = vadd.f32 1.0, %v7538_v35  ;;  %7557 = vrcp.f32 %v5341_v21  ;;  %v6032_v43 = vmul.f32 -1.442695, %v9558_v9 }
 0x629   : > { %10135 = vst [vmem:[#allocation12_spill] sm:$0xff] %v9561_v54  ;;  %v5487_v17 = vmul.f32 %v9561_v54, %v9561_v54  ;;  %v5507_v49 = vsel %vm9464_vm10, %v5489_v60, 0.0  ;;  %v7540_v19 = vpop.eup %7539  ;;  %7559 = vpow2.f32 %v6031_v62  ;;  %v6030_v55 = vmul.f32 -1.442695, %v9561_v54 }
 0x62a   : > { %v7542_v48 = vpop.eup %7541  ;;  %v5340_v27 = vadd.f32 1.0, %v7540_v19  ;;  %7561 = vrcp.f32 %v5339_v41 }
 0x62b   : > { %v5505_v34 = vsel %vm9464_vm10, %v5487_v17, 0.0  ;;  %7563 = vrcp.f32 %v5342_v0  ;;  %v5345_v38 = vadd.f32 1.0, %v7542_v48 }
 0x62c   : > { %5534 = vadd.xlane.f32.xlu1 %v5505_v34  ;;  %5536 = vadd.xlane.f32.xlu0 %v5506_v58  ;;  %7565 = vrcp.f32 %v5340_v27 }
 0x62d   : > { %v7544_v30 = vpop.eup %7543  ;;  %7567 = vpow2.f32 %v6029_v10 }
 0x62e   : > { %v7546_v11 = vpop.eup %7545  ;;  %7569 = vpow2.f32 %v6032_v43  ;;  %v5343_v7 = vadd.f32 1.0, %v7544_v30 }
 0x62f   : > { %v7548_v57 = vpop.eup %7547  ;;  %7571 = vrcp.f32 %v5345_v38  ;;  %v5346_v18 = vadd.f32 1.0, %v7546_v11 }
 0x630   : > { %5538 = vadd.xlane.f32.xlu1 %v5507_v49  ;;  %v7550_v2 = vpop.eup %7549  ;;  %v5386_v47 = vmax.f32 %v7548_v57, 0.0001  ;;  %7573 = vpow2.f32 %v6030_v55  ;;  %v9609_v50 = vadd.f32 -0.5, %v7548_v57 }
 0x631   : > { %v7552_v17 = vpop.eup %7551  ;;  %7575 = vrcp.f32 %v5343_v7  ;;  %v5384_v58 = vmax.f32 %v7550_v2, 0.0001  ;;  %v9612_v5 = vadd.f32 -0.5, %v7550_v2 }
 0x632   : > { %v7554_v34 = vpop.eup %7553  ;;  %7577 = vrcp.f32 %v5346_v18  ;;  %v5402_v20 = vmin.f32 %v5386_v47, 0.9999  ;;  %v5387_v61 = vmax.f32 %v7552_v17, 0.0001  ;;  %v9614_v24 = vadd.f32 -0.5, %v7552_v17 }
 0x633   : > { %v7556_v60 = vpop.eup %7555  ;;  %v5400_v1 = vmin.f32 %v5384_v58, 0.9999  ;;  %v5385_v25 = vmax.f32 %v7554_v34, 0.0001  ;;  %v9631_v48 = vadd.f32 -0.5, %v7554_v34 }
 0x634   : > { %v9607_v3 = vsel %vm5383_vm11, %v5402_v20, %v9462_v42  ;;  %v5403_v45 = vmin.f32 %v5387_v61, 0.9999  ;;  %v5344_v36 = vadd.f32 1.0, %v7556_v60 }
 0x635   : > { %v7558_v49 = vpop.eup %7557  ;;  %v9625_v19 = vsel %vm5383_vm11, %v5400_v1, %v9469_v16  ;;  %v5401_v0 = vmin.f32 %v5385_v25, 0.9999 }
 0x636   : > { %v7560_v39 = vpop.eup %7559  ;;  %v5390_v22 = vmax.f32 %v7558_v49, 0.0001  ;;  %v9637_v10 = vsel %vm5383_vm11, %v5403_v45, %v9474_v33  ;;  %v9647_v17 = vadd.f32 -0.5, %v7558_v49 }
 0x637   : > { %v7562_v14 = vpop.eup %7561  ;;  %v5349_v27 = vadd.f32 1.0, %v7560_v39  ;;  %v9659_v20 = vsel %vm5383_vm11, %v5401_v0, %v9481_v32 }
 0x638   : > { %v7564_v44 = vpop.eup %7563  ;;  %v5388_v37 = vmax.f32 %v7562_v14, 0.0001  ;;  %v5406_v43 = vmin.f32 %v5390_v22, 0.9999  ;;  %v9661_v39 = vadd.f32 -0.5, %v7562_v14 }
 0x639   : > { %v9598_v59 = vpop.eup %7565  ;;  %v5391_v31 = vmax.f32 %v7564_v44, 0.0001  ;;  %v9681_v22 = vadd.f32 -0.5, %v7564_v44 }
 0x63a   : > { %v7568_v6 = vpop.eup %7567  ;;  %v5389_v62 = vmax.f32 %v9598_v59, 0.0001  ;;  %v5404_v38 = vmin.f32 %v5388_v37, 0.9999  ;;  %v9666_v49 = vsel %vm5383_vm11, %v5406_v43, %v9488_v52 }
 0x63b   : > { %v7570_v46 = vpop.eup %7569  ;;  %v5347_v30 = vadd.f32 1.0, %v7568_v6  ;;  %v5407_v57 = vmin.f32 %v5391_v31, 0.9999 }
 0x63c   : > { %v7572_v35 = vpop.eup %7571  ;;  %v5350_v7 = vadd.f32 1.0, %v7570_v46  ;;  %v5405_v34 = vmin.f32 %v5389_v62, 0.9999  ;;  %v9671_v61 = vsel %vm5383_vm11, %v5404_v38, %v9495_v23  ;;  %v9701_v62 = vadd.f32 -0.5, %v9598_v59 }
 0x63d   : > { %v7574_v11 = vpop.eup %7573  ;;  %v5394_v55 = vmax.f32 %v7572_v35, 0.0001  ;;  %v9676_v25 = vsel %vm5383_vm11, %v5407_v57, %v9502_v15  ;;  %v9712_v38 = vadd.f32 -0.5, %v7572_v35 }
 0x63e   : > { %v9641_v2 = vpop.eup %7575  ;;  %v5348_v1 = vadd.f32 1.0, %v7574_v11  ;;  %v9686_v37 = vsel %vm5383_vm11, %v5405_v34, %v9505_v12 }
 0x63f   : > { %v9650_v60 = vpop.eup %7577  ;;  %v5410_v14 = vmin.f32 %v5394_v55, 0.9999  ;;  %v5392_v6 = vmax.f32 %v9641_v2, 0.0001 }
 0x640   : > { %v5395_v46 = vmax.f32 %v9650_v60, 0.0001 }
 0x641   : > { %v9723_v11 = vmin.f32 %v5392_v6, 0.9999 }
 0x697   : > { %v9596_v29 = vpop.xlane.xlu1 %5512 }
 0x698   : > { %7579 = vrsqrt.f32 %v9596_v29  ;;  %vm5556_vm15 = vcmp.eq.f32.partialorder %v9596_v29, inf  ;;  %v5559_v35 = vand.u32 2147483648, %v9596_v29  ;;  %vm5558_vm0 = vcmp.eq.f32.partialorder %v9596_v29, 0.0 }
 0x699   : > { %v9616_v13 = vpop.xlane.xlu0 %5508 }
 0x69a   : > { %7581 = vrsqrt.f32 %v9616_v13  ;;  %vm5542_vm1 = vcmp.eq.f32.partialorder %v9616_v13, inf  ;;  %vm5544_vm2 = vcmp.eq.f32.partialorder %v9616_v13, 0.0  ;;  %v5545_v59 = vand.u32 2147483648, %v9616_v13 }
 0x69b   : > { %v9629_v41 = vpop.xlane.xlu1 %5514 }
 0x69c   : > { %7583 = vrsqrt.f32 %v9629_v41  ;;  %vm5563_vm3 = vcmp.eq.f32.partialorder %v9629_v41, inf  ;;  %vm5565_vm4 = vcmp.eq.f32.partialorder %v9629_v41, 0.0 }
 0x69d   : > { %7585 = vrcp.f32 %v5344_v36  ;;  %v9639_v18 = vpop.xlane.xlu0 %5510 }
 0x69e   : > { %7587 = vrsqrt.f32 %v9639_v18  ;;  %vm5549_vm5 = vcmp.eq.f32.partialorder %v9639_v18, inf  ;;  %vm5551_vm6 = vcmp.eq.f32.partialorder %v9639_v18, 0.0 }
 0x69f   : > { %7589 = vrcp.f32 %v5349_v27 }
 0x6a0   : > { %7591 = vrcp.f32 %v5347_v30  ;;  %v9721_v30 = vsel %vm5383_vm11, %v5410_v14, %v9514_v40 }
 0x6a1   : > { %7593 = vrcp.f32 %v5350_v7  ;;  %v9679_v45 = vpop.xlane.xlu0 %5520  ;;  %v9728_v7 = vmin.f32 %v5395_v46, 0.9999 }
 0x6a2   : > { %7595 = vrsqrt.f32 %v9679_v45  ;;  %vm5584_vm7 = vcmp.eq.f32.partialorder %v9679_v45, inf  ;;  %vm5586_vm8 = vcmp.eq.f32.partialorder %v9679_v45, 0.0 }
 0x6a3   : > { %v9690_v31 = vpop.xlane.xlu1 %5522 }
 0x6a4   : > { %7597 = vrsqrt.f32 %v9690_v31  ;;  %vm5591_vm9 = vcmp.eq.f32.partialorder %v9690_v31, inf  ;;  %vm5593_vm12 = vcmp.eq.f32.partialorder %v9690_v31, 0.0 }
 0x6a5   : > { %v7580_v0 = vpop.eup %7579  ;;  %7599 = vrcp.f32 %v5348_v1  ;;  %v9726_v55 = vpop.xlane.xlu0 %5516 }
 0x6a6   : > { %v5555_v57 = vmul.f32 %v7580_v0, %v9596_v29  ;;  %7601 = vrsqrt.f32 %v9726_v55  ;;  %vm5570_vm13 = vcmp.eq.f32.partialorder %v9726_v55, inf }
 0x6a7   : > { %v9733_v34 = vpop.xlane.xlu1 %5518  ;;  %v7582_v1 = vpop.eup %7581 }
 0x6a8   : > { %v5557_v14 = vsel %vm5556_vm15, %v9596_v29, %v5555_v57  ;;  %7603 = vrsqrt.f32 %v9733_v34  ;;  %v5541_v0 = vmul.f32 %v7582_v1, %v9616_v13  ;;  %vm5572_vm15 = vcmp.eq.f32.partialorder %v9726_v55, 0.0 }
 0x6a9   : > { %v7584_v6 = vpop.eup %7583  ;;  %v5560_v46 = vsel %vm5558_vm0, %v5559_v35, %v5557_v14  ;;  %v9745_v29 = vpop.xlane.xlu0 %5528  ;;  %v5566_v35 = vand.u32 2147483648, %v9629_v41  ;;  %vm5577_vm0 = vcmp.eq.f32.partialorder %v9733_v34, inf  ;;  %v5580_v8 = vand.u32 2147483648, %v9733_v34 }
 0x6aa   : > { %v5654_v27 = vmax.f32 %v5560_v46, 1e-12  ;;  %v5562_v43 = vmul.f32 %v7584_v6, %v9629_v41  ;;  %v9747_v57 = vpop.eup %7585  ;;  %v5543_v44 = vsel %vm5542_vm1, %v9616_v13, %v5541_v0  ;;  %7605 = vrsqrt.f32 %v9745_v29 }
 0x6ab   : > { %v7588_v1 = vpop.eup %7587  ;;  %v5546_v14 = vsel %vm5544_vm2, %v5545_v59, %v5543_v44  ;;  %v9755_v46 = vpop.xlane.xlu1 %5530  ;;  %v5587_v59 = vand.u32 2147483648, %v9679_v45  ;;  %vm5579_vm1 = vcmp.eq.f32.partialorder %v9733_v34, 0.0  ;;  %vm5612_vm2 = vcmp.eq.f32.partialorder %v9745_v29, inf }
 0x6ac   : > { %7607 = vrcp.f32 %v5654_v27  ;;  %v5564_v6 = vsel %vm5563_vm3, %v9629_v41, %v5562_v43  ;;  %v9757_v36 = vpop.eup %7589  ;;  %v5652_v58 = vmax.f32 %v5546_v14, 1e-12  ;;  %v5548_v13 = vmul.f32 %v7588_v1, %v9639_v18 }
 0x6ad   : > { %v5567_v47 = vsel %vm5565_vm4, %v5566_v35, %v5564_v6  ;;  %7609 = vrsqrt.f32 %v9755_v46  ;;  %v9761_v0 = vpop.eup %7591  ;;  %v5552_v27 = vand.u32 2147483648, %v9639_v18  ;;  %v9766_v41 = vpop.xlane.xlu0 %5524  ;;  %v5594_v1 = vand.u32 2147483648, %v9690_v31 }
 0x6ae   : > { %v5655_v21 = vmax.f32 %v5567_v47, 1e-12  ;;  %v9768_v44 = vpop.eup %7593  ;;  %7611 = vrcp.f32 %v5652_v58  ;;  %v5550_v43 = vsel %vm5549_vm5, %v9639_v18, %v5548_v13  ;;  %v5573_v18 = vand.u32 2147483648, %v9726_v55 }
 0x6af   : > { %10138 = vst [vmem:[#allocation13_spill] sm:$0xff] %v9768_v44  ;;  %v7596_v47 = vpop.eup %7595  ;;  %v5553_v35 = vsel %vm5551_vm6, %v5552_v27, %v5550_v43  ;;  %v9779_v14 = vpop.xlane.xlu1 %5526  ;;  %vm5614_vm3 = vcmp.eq.f32.partialorder %v9745_v29, 0.0  ;;  %vm5619_vm4 = vcmp.eq.f32.partialorder %v9755_v46, inf  ;;  %vm5621_vm5 = vcmp.eq.f32.partialorder %v9755_v46, 0.0 }
 0x6b0   : > { %7613 = vrcp.f32 %v5655_v21  ;;  %v5653_v6 = vmax.f32 %v5553_v35, 1e-12  ;;  %v5583_v9 = vmul.f32 %v7596_v47, %v9679_v45  ;;  %vm5598_vm6 = vcmp.eq.f32.partialorder %v9766_v41, inf }
 0x6b1   : > { %v7598_v58 = vpop.eup %7597  ;;  %7615 = vrsqrt.f32 %v9766_v41  ;;  %v9790_v27 = vpop.xlane.xlu0 %5532 }
 0x6b2   : > { %v9784_v13 = vpop.eup %7599  ;;  %v5590_v21 = vmul.f32 %v7598_v58, %v9690_v31  ;;  %7617 = vrsqrt.f32 %v9779_v14  ;;  %v5585_v43 = vsel %vm5584_vm7, %v9679_v45, %v5583_v9  ;;  %vm5600_vm7 = vcmp.eq.f32.partialorder %v9766_v41, 0.0 }
 0x6b3   : > { %7619 = vrcp.f32 %v5653_v6  ;;  %v7602_v47 = vpop.eup %7601  ;;  %v5588_v35 = vsel %vm5586_vm8, %v5587_v59, %v5585_v43  ;;  %vm5605_vm8 = vcmp.eq.f32.partialorder %v9779_v14, inf }
 0x6b4   : > { %v5592_v58 = vsel %vm5591_vm9, %v9690_v31, %v5590_v21  ;;  %7621 = vrsqrt.f32 %v9790_v27  ;;  %v5658_v54 = vmax.f32 %v5588_v35, 1e-12  ;;  %v5569_v44 = vmul.f32 %v7602_v47, %v9726_v55 }
 0x6b5   : > { %v7604_v6 = vpop.eup %7603  ;;  %v5595_v9 = vsel %vm5593_vm12, %v5594_v1, %v5592_v58  ;;  %v9808_v26 = vpop.xlane.xlu1 %5534  ;;  %v5615_v1 = vand.u32 2147483648, %v9745_v29  ;;  %vm5607_vm9 = vcmp.eq.f32.partialorder %v9779_v14, 0.0  ;;  %vm5626_vm12 = vcmp.eq.f32.partialorder %v9790_v27, inf }
 0x6b6   : > { %v5659_v45 = vmax.f32 %v5595_v9, 1e-12  ;;  %v5576_v59 = vmul.f32 %v7604_v6, %v9733_v34  ;;  %7623 = vrsqrt.f32 %v9808_v26  ;;  %v9813_v21 = vpop.xlane.xlu0 %5536  ;;  %v5571_v31 = vsel %vm5570_vm13, %v9726_v55, %v5569_v44 }
 0x6b7   : > { %7625 = vrcp.f32 %v5658_v54  ;;  %v7606_v43 = vpop.eup %7605  ;;  %v5574_v47 = vsel %vm5572_vm15, %v5573_v18, %v5571_v31  ;;  %vm5628_vm13 = vcmp.eq.f32.partialorder %v9790_v27, 0.0  ;;  %vm5633_vm15 = vcmp.eq.f32.partialorder %v9808_v26, inf }
 0x6b8   : > { %7627 = vrcp.f32 %v5659_v45  ;;  %v5578_v35 = vsel %vm5577_vm0, %v9733_v34, %v5576_v59  ;;  %v5656_v58 = vmax.f32 %v5574_v47, 1e-12  ;;  %v5611_v6 = vmul.f32 %v7606_v43, %v9745_v29 }
 0x6b9   : > { %v7608_v54 = vpop.eup %7607  ;;  %v5581_v44 = vsel %vm5579_vm1, %v5580_v8, %v5578_v35  ;;  %7629 = vrsqrt.f32 %v9813_v21  ;;  %v5622_v45 = vand.u32 2147483648, %v9755_v46  ;;  %v9833_v59 = vpop.xlane.xlu1 %5538  ;;  %v5601_v35 = vand.u32 2147483648, %v9766_v41 }
 0x6ba   : > { %v7610_v9 = vpop.eup %7609  ;;  %v5673_v55 = vmul.f32 %v7608_v54, %v9462_v42  ;;  %v5657_v18 = vmax.f32 %v5581_v44, 1e-12  ;;  %7631 = vrcp.f32 %v5656_v58  ;;  %v5613_v8 = vsel %vm5612_vm2, %v9745_v29, %v5611_v6 }
 0x6bb   : > { %v5618_v34 = vmul.f32 %v7610_v9, %v9755_v46  ;;  %v7612_v31 = vpop.eup %7611  ;;  %v10139_v42 = vsel %vm9600_vm14, %v9609_v50, %v9607_v3  ;;  %v5616_v47 = vsel %vm5614_vm3, %v5615_v1, %v5613_v8  ;;  %vm5635_vm0 = vcmp.eq.f32.partialorder %v9808_v26, 0.0 }
 0x6bc   : > { %v5702_v43 = vsel %vm9464_vm10, %v5673_v55, %v10139_v42  ;;  %7633 = vrcp.f32 %v5657_v18  ;;  %v5669_v58 = vmul.f32 %v7612_v31, %v9469_v16  ;;  %v5662_v44 = vmax.f32 %v5616_v47, 1e-12 }
 0x6bd   : > { %v7614_v54 = vpop.eup %7613  ;;  %5718 = vst [vmem:[%s7842_s29 + $0x10] sm:$0xff] %v5702_v43  ;;  %v5620_v6 = vsel %vm5619_vm4, %v9755_v46, %v5618_v34  ;;  %7635 = vrsqrt.f32 %v9833_v59  ;;  %v10140_v16 = vsel %vm9600_vm14, %v9612_v5, %v9625_v19  ;;  %v10141_v18 = vsel %vm9600_vm14, %v9614_v24, %v9637_v10 }
 0x6be   : > { %v7616_v3 = vpop.eup %7615  ;;  %v5675_v50 = vmul.f32 %v7614_v54, %v9474_v33  ;;  %v5623_v29 = vsel %vm5621_vm5, %v5622_v45, %v5620_v6  ;;  %v5700_v9 = vsel %vm9464_vm10, %v5669_v58, %v10140_v16  ;;  %7637 = vrcp.f32 %v5662_v44 }
 0x6bf   : > { %v7618_v1 = vpop.eup %7617  ;;  %v5663_v55 = vmax.f32 %v5623_v29, 1e-12  ;;  %v5597_v33 = vmul.f32 %v7616_v3, %v9766_v41  ;;  %5716 = vst [vmem:[%s7842_s29] sm:$0xff] %v5700_v9  ;;  %v5608_v5 = vand.u32 2147483648, %v9779_v14  ;;  %v5629_v43 = vand.u32 2147483648, %v9790_v27 }
 0x6c0   : > { %v7620_v46 = vpop.eup %7619  ;;  %v5703_v45 = vsel %vm9464_vm10, %v5675_v50, %v10141_v18  ;;  %v5604_v8 = vmul.f32 %v7618_v1, %v9779_v14  ;;  %v5636_v50 = vand.u32 2147483648, %v9808_v26  ;;  %vm5640_vm1 = vcmp.eq.f32.partialorder %v9813_v21, inf }
 0x6c1   : > { %v7622_v19 = vpop.eup %7621  ;;  %5719 = vst [vmem:[%s7842_s29 + $0x18] sm:$0xff] %v5703_v45  ;;  %v5671_v34 = vmul.f32 %v7620_v46, %v9481_v32  ;;  %7639 = vrcp.f32 %v5663_v55  ;;  %v5599_v31 = vsel %vm5598_vm6, %v9766_v41, %v5597_v33  ;;  %v10142_v32 = vsel %vm9600_vm14, %v9631_v48, %v9659_v20 }
 0x6c2   : > { %v5602_v24 = vsel %vm5600_vm7, %v5601_v35, %v5599_v31  ;;  %v5606_v10 = vsel %vm5605_vm8, %v9779_v14, %v5604_v8  ;;  %v5625_v42 = vmul.f32 %v7622_v19, %v9790_v27  ;;  %v6044_v45 = vadd.f32 -0.5, %v9650_v60 }
 0x6c3   : > { %v7624_v47 = vpop.eup %7623  ;;  %v5701_v54 = vsel %vm9464_vm10, %v5671_v34, %v10142_v32  ;;  %v5660_v58 = vmax.f32 %v5602_v24, 1e-12  ;;  %v5609_v41 = vsel %vm5607_vm9, %v5608_v5, %v5606_v10  ;;  %vm5642_vm2 = vcmp.eq.f32.partialorder %v9813_v21, 0.0 }
 0x6c4   : > { %v7626_v35 = vpop.eup %7625  ;;  %5717 = vst [vmem:[%s7842_s29 + $0x8] sm:$0xff] %v5701_v54  ;;  %v5661_v44 = vmax.f32 %v5609_v41, 1e-12  ;;  %v5627_v6 = vsel %vm5626_vm12, %v9790_v27, %v5625_v42  ;;  %v5632_v3 = vmul.f32 %v7624_v47, %v9808_v26  ;;  %v5429_v60 = vsel %vm5383_vm11, %v9728_v7, %v9528_v4 }
 0x6c5   : > { %v7628_v48 = vpop.eup %7627  ;;  %v5681_v20 = vmul.f32 %v7626_v35, %v9488_v52  ;;  %7641 = vrcp.f32 %v5660_v58  ;;  %v5630_v14 = vsel %vm5628_vm13, %v5629_v43, %v5627_v6  ;;  %v10143_v52 = vsel %vm9600_vm14, %v9647_v17, %v9666_v49 }
 0x6c6   : > { %v7630_v29 = vpop.eup %7629  ;;  %v5683_v1 = vmul.f32 %v7628_v48, %v9502_v15  ;;  %7643 = vrcp.f32 %v5661_v44  ;;  %v5664_v16 = vmax.f32 %v5630_v14, 1e-12  ;;  %v5634_v9 = vsel %vm5633_vm15, %v9808_v26, %v5632_v3 }
 0x6c7   : > { %v5706_v27 = vsel %vm9464_vm10, %v5681_v20, %v10143_v52  ;;  %v5637_v55 = vsel %vm5635_vm0, %v5636_v50, %v5634_v9  ;;  %v5639_v33 = vmul.f32 %v7630_v29, %v9813_v21  ;;  %v7632_v15 = vpop.eup %7631  ;;  %v10144_v26 = vsel %vm9600_vm14, %v9681_v22, %v9676_v25 }
 0x6c8   : > { %5722 = vst [vmem:[%s7842_s29 + $0x30] sm:$0xff] %v5706_v27  ;;  %v5707_v46 = vsel %vm9464_vm10, %v5683_v1, %v10144_v26  ;;  %7645 = vrcp.f32 %v5664_v16  ;;  %v5665_v17 = vmax.f32 %v5637_v55, 1e-12  ;;  %v5643_v49 = vand.u32 2147483648, %v9813_v21  ;;  %v10147_v1 = vld [vmem:[#allocation9_spill] sm:$0xff] }
 0x6c9   : > { %v7634_v18 = vpop.eup %7633  ;;  %5723 = vst [vmem:[%s7842_s29 + $0x38] sm:$0xff] %v5707_v46  ;;  %v5677_v8 = vmul.f32 %v7632_v15, %v9495_v23  ;;  %v5641_v5 = vsel %vm5640_vm1, %v9813_v21, %v5639_v33  ;;  %v5393_v22 = vmax.f32 %v9747_v57, 0.0001  ;;  %v10145_v23 = vsel %vm9600_vm14, %v9661_v39, %v9671_v61  ;;  %v10149_v33 = vld [vmem:[#allocation12_spill] sm:$0xff] }
 0x6ca   : > { %v7636_v25 = vpop.eup %7635  ;;  %v5679_v19 = vmul.f32 %v7634_v18, %v9505_v12  ;;  %7647 = vrcp.f32 %v5665_v17  ;;  %v5644_v34 = vsel %vm5642_vm2, %v5643_v49, %v5641_v5  ;;  %v5396_v12 = vmax.f32 %v9761_v0, 0.0001 }
 0x6cb   : > { %v5704_v21 = vsel %vm9464_vm10, %v5677_v8, %v10145_v23  ;;  %v5666_v31 = vmax.f32 %v5644_v34, 1e-12  ;;  %v5646_v24 = vmul.f32 %v7636_v25, %v9833_v59  ;;  %v7638_v10 = vpop.eup %7637  ;;  %v10146_v7 = vsel %vm9600_vm14, %v9701_v62, %v9686_v37  ;;  %v10151_v23 = vld [vmem:[#allocation11_spill] sm:$0xff] }
 0x6cc   : > { %5720 = vst [vmem:[%s7842_s29 + $0x20] sm:$0xff] %v5704_v21  ;;  %v5705_v42 = vsel %vm9464_vm10, %v5679_v19, %v10146_v7  ;;  %vm5647_vm3 = vcmp.eq.f32.partialorder %v9833_v59, inf  ;;  %v5650_v39 = vand.u32 2147483648, %v9833_v59  ;;  %v5689_v61 = vmul.f32 %v7638_v10, %v9514_v40 }
 0x6cd   : > { %5721 = vst [vmem:[%s7842_s29 + $0x28] sm:$0xff] %v5705_v42  ;;  %7649 = vrcp.f32 %v5666_v31  ;;  %v5648_v43 = vsel %vm5647_vm3, %v9833_v59, %v5646_v24  ;;  %vm5649_vm4 = vcmp.eq.f32.partialorder %v9833_v59, 0.0  ;;  %v5465_v37 = vsel %vm9600_vm14, %v9712_v38, %v9721_v30 }
 0x6ce   : > { %v7640_v47 = vpop.eup %7639  ;;  %v5409_v62 = vmin.f32 %v5393_v22, 0.9999  ;;  %v5397_v32 = vmax.f32 %v9784_v13, 0.0001  ;;  %v5651_v54 = vsel %vm5649_vm4, %v5650_v39, %v5648_v43  ;;  %v5710_v58 = vsel %vm9464_vm10, %v5689_v61, %v5465_v37 }
 0x6cf   : > { %v5691_v40 = vmul.f32 %v7640_v47, %v9528_v4  ;;  %v5667_v41 = vmax.f32 %v5651_v54, 1e-12  ;;  %v5466_v59 = vsel %vm9600_vm14, %v6044_v45, %v5429_v60  ;;  %v5398_v35 = vmax.f32 %v9757_v36, 0.0001  ;;  %5726 = vst [vmem:[%s7842_s29 + $0x50] sm:$0xff] %v5710_v58  ;;  %v10150_v45 = vld [vmem:[#allocation10_spill] sm:$0xff] }
 0x6d0   : > { %v5412_v44 = vmin.f32 %v5396_v12, 0.9999  ;;  %v5426_v38 = vsel %vm5383_vm11, %v9723_v11, %v9521_v56  ;;  %v6041_v4 = vadd.f32 -0.5, %v9641_v2  ;;  %v5427_v3 = vsel %vm5383_vm11, %v5409_v62, %v9533_v53 }
 0x6d1   : > { %v5711_v30 = vsel %vm9464_vm10, %v5691_v40, %v5466_v59  ;;  %7651 = vrcp.f32 %v5667_v41  ;;  %v5413_v48 = vmin.f32 %v5397_v32, 0.9999  ;;  %v6042_v14 = vadd.f32 -0.5, %v9747_v57  ;;  %v10148_v57 = vld [vmem:[#allocation13_spill] sm:$0xff] }
 0x6d2   : > { %v7642_v6 = vpop.eup %7641  ;;  %5727 = vst [vmem:[%s7842_s29 + $0x58] sm:$0xff] %v5711_v30  ;;  %v5463_v11 = vsel %vm9600_vm14, %v6041_v4, %v5426_v38  ;;  %v5414_v29 = vmin.f32 %v5398_v35, 0.9999  ;;  %v5430_v2 = vsel %vm5383_vm11, %v5412_v44, %v10147_v1  ;;  %v6045_v27 = vadd.f32 -0.5, %v9761_v0 }
 0x6d3   : > { %v7644_v20 = vpop.eup %7643  ;;  %v5685_v50 = vmul.f32 %v7642_v6, %v9521_v56  ;;  %v5464_v52 = vsel %vm9600_vm14, %v6042_v14, %v5427_v3  ;;  %v5399_v56 = vmax.f32 %v10148_v57, 0.0001  ;;  %v5431_v15 = vsel %vm5383_vm11, %v5413_v48, %v10149_v33 }
 0x6d4   : > { %v5687_v16 = vmul.f32 %v7644_v20, %v9533_v53  ;;  %v5467_v0 = vsel %vm9600_vm14, %v6045_v27, %v5430_v2  ;;  %v6046_v17 = vadd.f32 -0.5, %v9784_v13  ;;  %v5432_v8 = vsel %vm5383_vm11, %v5414_v29, %v10150_v45 }
 0x6d5   : > { %v7646_v9 = vpop.eup %7645  ;;  %v5708_v55 = vsel %vm9464_vm10, %v5685_v50, %v5463_v11  ;;  %v5415_v5 = vmin.f32 %v5399_v56, 0.9999  ;;  %v6047_v13 = vadd.f32 -0.5, %v9757_v36  ;;  %v6048_v10 = vadd.f32 -0.5, %v10148_v57 }
 0x6d6   : > { %5724 = vst [vmem:[%s7842_s29 + $0x40] sm:$0xff] %v5708_v55  ;;  %v5709_v53 = vsel %vm9464_vm10, %v5687_v16, %v5464_v52  ;;  %v5693_v26 = vmul.f32 %v7646_v9, %v10147_v1  ;;  %v5468_v25 = vsel %vm9600_vm14, %v6046_v17, %v5431_v15 }
 0x6d7   : > { %v7648_v46 = vpop.eup %7647  ;;  %5725 = vst [vmem:[%s7842_s29 + $0x48] sm:$0xff] %v5709_v53  ;;  %v5469_v60 = vsel %vm9600_vm14, %v6047_v13, %v5432_v8  ;;  %v5433_v21 = vsel %vm5383_vm11, %v5415_v5, %v10151_v23 }
 0x6d8   : > { %v5712_v49 = vsel %vm9464_vm10, %v5693_v26, %v5467_v0  ;;  %v5695_v18 = vmul.f32 %v7648_v46, %v10149_v33  ;;  %v5470_v12 = vsel %vm9600_vm14, %v6048_v10, %v5433_v21 }
 0x6d9   : > { %5728 = vst [vmem:[%s7842_s29 + $0x60] sm:$0xff] %v5712_v49 }
 0x6da   : > { %v7650_v22 = vpop.eup %7649  ;;  %v5713_v19 = vsel %vm9464_vm10, %v5695_v18, %v5468_v25 }
 0x6db   : > { %5729 = vst [vmem:[%s7842_s29 + $0x68] sm:$0xff] %v5713_v19  ;;  %v5697_v34 = vmul.f32 %v7650_v22, %v10150_v45 }
 0x6dd   : > { %v5714_v31 = vsel %vm9464_vm10, %v5697_v34, %v5469_v60 }
 0x6de   : > { %v7652_v24 = vpop.eup %7651  ;;  %5730 = vst [vmem:[%s7842_s29 + $0x70] sm:$0xff] %v5714_v31 }
 0x6df   : > { %v5699_v36 = vmul.f32 %v7652_v24, %v10151_v23 }
 0x6e1   : > { %v5715_v7 = vsel %vm9464_vm10, %v5699_v36, %v5470_v12 }
 0x6e2   : > { %5731 = vst [vmem:[%s7842_s29 + $0x78] sm:$0xff] %v5715_v7 }
 0x6e3 PF: > { %s19_s15 = sadd.s32 1, %s7707_s15   ;;  %s10152_s21 = sld [smem:[#allocation4_spill]] }
 0x6e4   : > { %p16_p13 = scmp.ge.s32.totalorder %s19_s15, 10   ;;  %s10153_s30 = smov %s7695_s12 }
 0x6e5   : > { %s10154_s10 = smov %s7699_s13  ;;  %s10155_s11 = smov %s7703_s14 }
 0x6e6   : > { %s10156_s12 = smov %s10160_s16  ;;  %s10157_s13 = smov %s10164_s17 }
 0x6e7   :  { %18 = sbr.rel (!%p16_p13) target bundleno = 4 (0x4), region = 109 }
 0x6e9   : > { %s10158_s14 = smov %s10152_s21 }

</bundles_post_ra>
